<compile_context>
chip_gen: v7x
topology: tpu7x:2x2x1
jax: 0.10.0
libtpu: 0.0.40
codegen_flags: <defaults>
</compile_context>

<pallas_src>
import functools

import jax
import jax.numpy as jnp
from jax import lax
from jax.experimental import pallas as pl
from jax.experimental.pallas import tpu as pltpu

NUM_CLASSES = 20            # cfg.MODEL.NUM_CLASSES
REFINE_TIMES = 3            # cfg.REFINE_TIMES
POOL_RES = 4                # RoI pooling resolution (7 in the real cfg, small here)
SPATIAL_SCALE = 0.25        # conv-body stride 4 (1/16 in the real cfg)
BBOX_NORMALIZE_STDS = (0.1, 0.1, 0.2, 0.2)
BBOX_NORMALIZE_MEANS = (0.0, 0.0, 0.0, 0.0)

LANE = 128                  # TPU lane width
NCLS1 = NUM_CLASSES + 1     # 21
NBOX = 4 * NCLS1            # 84
HEAD_N = 8 * LANE           # packed head-weight width (8 x 128-lane blocks)
OUT_N = 6 * LANE            # packed head-output width (6 x 128-lane blocks)


# ----------------------------- Pallas kernels -----------------------------

def _conv3x3_kernel(xf_ref, w_ref, b_ref, o_ref, *, wp):
    """3x3 'same' conv + ReLU over one M-tile of the flattened (row-major,
    width-padded) activation.  3 sublane-aligned loads (one per kh) + XLU rolls
    for the kw taps; bf16 MXU operands, f32 accumulate."""
    m, cout = o_ref.shape
    base = pl.multiple_of(pl.program_id(0) * m, 8)
    acc = jnp.zeros((m, cout), jnp.float32)
    for dh in range(3):
        row0 = pl.multiple_of(base + (dh + 1) * wp, 8)
        slab = xf_ref[pl.ds(row0, m), :]                       # aligned (m, Cin) load
        lhs_l = pltpu.roll(slab, 1, 0)                         # x[j-1]  (kw = 0)
        lhs_r = pltpu.roll(slab, m - 1, 0)                     # x[j+1]  (kw = 2)
        for dw, lhs in ((0, lhs_l), (1, slab), (2, lhs_r)):
            wt = w_ref[dh * 3 + dw]                            # (Cin, Cout) bf16 tap
            acc = acc + jnp.dot(lhs.astype(jnp.bfloat16), wt,
                                preferred_element_type=jnp.float32)
    o_ref[...] = jnp.maximum(acc + b_ref[...], 0.0)
    # Wrapped / padded columns hold garbage; they are dropped by the caller.


def _roi_pool_kernel(bins_ref, feat_ref, o_ref, *, res):
    """RoIPoolF, one roi per grid step.  Separable max: res column-bin passes
    over the (H, W, C) map, then res*res tiny row-bin reductions; the nb bin
    maxima are packed into one (1, nb*C) value -> single lane-dense store."""
    H, W, C = feat_ref.shape
    r = pl.program_id(0)
    base = r * (4 * res)
    feat = feat_ref[...]                                       # (H, W, C)
    neg = jnp.float32(-1e30)
    wcol = lax.broadcasted_iota(jnp.int32, (1, W, 1), 1)
    hrow = lax.broadcasted_iota(jnp.int32, (H, 1), 0)

    # pass 1: per column-bin max over w -> (H, C) partial maxima
    colmax = []
    for wb in range(res):
        ws = bins_ref[base + 2 * res + wb]
        we = bins_ref[base + 3 * res + wb]
        wm = (wcol >= ws) & (wcol < we)
        colmax.append((jnp.max(jnp.where(wm, feat, neg), axis=1), we > ws))

    # pass 2: per row-bin max over h, empty bins -> 0 (Caffe RoIPoolF semantics)
    outs = []
    for hb in range(res):
        hs = bins_ref[base + hb]
        he = bins_ref[base + res + hb]
        hm = (hrow >= hs) & (hrow < he)
        for wb in range(res):
            cm, w_valid = colmax[wb]
            v = jnp.max(jnp.where(hm, cm, neg), axis=0, keepdims=True)   # (1, C)
            valid = jnp.logical_and(he > hs, w_valid)
            outs.append(jnp.where(valid, v, 0.0))
    o_ref[...] = jnp.concatenate(outs, axis=1)[None]           # (1, 1, nb*C)


def _box_head_kernel(x_ref, w6_ref, b6_ref, w7_ref, b7_ref, wh_ref, bh_ref, ps_ref, o_ref):
    """fc6 -> fc7 -> all heads, fused.  Head columns are packed into 128-lane
    blocks so all slices / stores are aligned; bf16 matmuls, f32 epilogue."""
    f32 = jnp.float32
    bf16 = jnp.bfloat16
    h6 = jnp.maximum(jnp.dot(x_ref[...].astype(bf16), w6_ref[...],
                             preferred_element_type=f32) + b6_ref[...], 0.0)
    h7 = jnp.maximum(jnp.dot(h6.astype(bf16), w7_ref[...],
                             preferred_element_type=f32) + b7_ref[...], 0.0)
    y = jnp.dot(h7.astype(bf16), wh_ref[...], preferred_element_type=f32) + bh_ref[...]
    ps = ps_ref[...]
    y = y * ps[0:1, :] + ps[1:2, :]          # bbox-delta stds/means folded in (identity elsewhere)

    R = y.shape[0]
    neg = jnp.float32(-1e30)
    col = lax.broadcasted_iota(jnp.int32, (R, LANE), 1)

    def block(k):                                        # aligned 128-lane column block
        return y[:, k * LANE:(k + 1) * LANE]

    def softmax_rows(z, valid):                          # masked, exact softmax along dim 1
        z = jnp.where(valid, z, neg)
        e = jnp.exp(z - jnp.max(z, axis=1, keepdims=True))
        return e / jnp.sum(e, axis=1, keepdims=True)

    # mil_score = softmax(cls_logits, dim=1) * softmax(det_logits, dim=0)
    pc = softmax_rows(block(0), col < NUM_CLASSES)
    det = block(1)
    ed = jnp.exp(det - jnp.max(det, axis=0, keepdims=True))
    pd = ed / jnp.sum(ed, axis=0, keepdims=True)
    o_ref[:, 0:LANE] = pc * pd                           # padded cols: pc == 0 -> product 0
    # TODO(synk): softmax(det, dim=0) couples all rois -- make it 2-pass before R-tiling.

    # iou_score = sigmoid(iou_logit); extracted by direct lane slice (block 7, lane 0)
    iou_logit = y[:, 7 * LANE:7 * LANE + 1]
    iou = 1.0 / (1.0 + jnp.exp(-iou_logit))

    # refine0..2 and cls_score: softmax(dim=1) over 21 classes, then * iou (Bs3_Test_With_IOU 'mul')
    for j in range(REFINE_TIMES + 1):
        p = softmax_rows(block(2 + j), col < NCLS1)
        o_ref[:, (1 + j) * LANE:(2 + j) * LANE] = p * iou

    # bbox deltas (already scaled by stds/means through ps)
    o_ref[:, 5 * LANE:6 * LANE] = block(6)


# ---------------------------- Pallas wrappers ------------------------------

def conv3x3_relu(x, w_hwio, b):
    """x: (1, H, W, Cin) NHWC; 3x3 conv, pad=1, stride=1, + ReLU."""
    _, H, W, Cin = x.shape
    Cout = w_hwio.shape[-1]
    Wp = ((W + 2 + 7) // 8) * 8                                  # padded width, multiple of 8
    # 2 zero rows top/bottom, 1 zero col left, Wp-W-1 zero cols right
    xp = jnp.pad(x[0], ((2, 2), (1, Wp - W - 1), (0, 0)))        # (H+4, Wp, Cin)
    xf = xp.reshape((H + 4) * Wp, Cin)
    w3 = w_hwio.reshape(9, Cin, Cout).astype(jnp.bfloat16)       # tap-major (kh*3+kw, cin, cout)

    # rows-per-tile: largest divisor of H with tile_rows*Wp <= 256 flat rows
    tr = 1
    for d in range(1, H + 1):
        if H % d == 0 and d * Wp <= 256:
            tr = d
    mtile = tr * Wp
    out = pl.pallas_call(
        functools.partial(_conv3x3_kernel, wp=Wp),
        out_shape=jax.ShapeDtypeStruct((H * Wp, Cout), jnp.float32),
        grid=(H // tr,),
        in_specs=[pl.BlockSpec(((H + 4) * Wp, Cin), lambda i: (0, 0)),   # resident input
                  pl.BlockSpec((9, Cin, Cout), lambda i: (0, 0, 0)),
                  pl.BlockSpec((1, Cout), lambda i: (0, 0))],
        out_specs=pl.BlockSpec((mtile, Cout), lambda i: (i, 0)),
        compiler_params=pltpu.CompilerParams(dimension_semantics=("parallel",)),
    )(xf, w3, b.reshape(1, Cout))
    # TODO(synk): at real VGG sizes fuse the 2x2 maxpool + pad-column drop into the kernel
    #             epilogue and tile the input window per M-tile instead of keeping it resident.
    return out.reshape(H, Wp, Cout)[None, :, 1:W + 1, :]         # drop pad columns -> (1,H,W,Cout)


def pallas_roi_pool(feat_hwc, bins, *, res, R):
    H, W, C = feat_hwc.shape
    nb = res * res
    grid_spec = pltpu.PrefetchScalarGridSpec(
        num_scalar_prefetch=1,
        grid=(R,),
        in_specs=[pl.BlockSpec((H, W, C), lambda r, b: (0, 0, 0))],
        out_specs=pl.BlockSpec((1, 1, nb * C), lambda r, b: (r, 0, 0)),
    )
    out = pl.pallas_call(
        functools.partial(_roi_pool_kernel, res=res),
        out_shape=jax.ShapeDtypeStruct((R, 1, nb * C), jnp.float32),
        grid_spec=grid_spec,
        compiler_params=pltpu.CompilerParams(dimension_semantics=("parallel",)),
    )(bins, feat_hwc)
    return out.reshape(R, nb * C)


def pallas_box_head_and_outs(pooled, hp):
    R, K = pooled.shape
    H6 = hp["w6"].shape[1]
    H7 = hp["w7"].shape[1]
    return pl.pallas_call(
        _box_head_kernel,
        out_shape=jax.ShapeDtypeStruct((R, OUT_N), jnp.float32),
        grid=(1,),
        in_specs=[pl.BlockSpec((R, K), lambda i: (0, 0)),
                  pl.BlockSpec((K, H6), lambda i: (0, 0)),
                  pl.BlockSpec((1, H6), lambda i: (0, 0)),
                  pl.BlockSpec((H6, H7), lambda i: (0, 0)),
                  pl.BlockSpec((1, H7), lambda i: (0, 0)),
                  pl.BlockSpec((H7, HEAD_N), lambda i: (0, 0)),
                  pl.BlockSpec((1, HEAD_N), lambda i: (0, 0)),
                  pl.BlockSpec((2, HEAD_N), lambda i: (0, 0))],
        out_specs=pl.BlockSpec((R, OUT_N), lambda i: (0, 0)),
        compiler_params=pltpu.CompilerParams(dimension_semantics=("arbitrary",)),
    )(pooled, hp["w6"], hp["b6"], hp["w7"], hp["b7"], hp["wh"], hp["bh"], hp["ps"])
    # TODO(synk): at real sizes, K-tile fc6 (grid=(R//tR, K//tK), f32 acc scratch,
    #             R "parallel") and move the mil dim-0 softmax to a 2-pass scheme.


# ------------------------------- JAX glue ----------------------------------

def maxpool2x2(x):
    N, H, W, C = x.shape
    return x.reshape(N, H // 2, 2, W // 2, 2, C).max(axis=(2, 4))


def roi_pool_bins(rois, spatial_scale, res, H, W):
    """Separable integer bin boundaries (Caffe RoIPoolF semantics), packed into
    one 1-D int32 table: per roi [hs[0..res), he[.], ws[.], we[.]]."""
    roi_start_w = jnp.round(rois[:, 1] * spatial_scale).astype(jnp.int32)
    roi_start_h = jnp.round(rois[:, 2] * spatial_scale).astype(jnp.int32)
    roi_end_w = jnp.round(rois[:, 3] * spatial_scale).astype(jnp.int32)
    roi_end_h = jnp.round(rois[:, 4] * spatial_scale).astype(jnp.int32)
    roi_h = jnp.maximum(roi_end_h - roi_start_h + 1, 1).astype(jnp.float32)
    roi_w = jnp.maximum(roi_end_w - roi_start_w + 1, 1).astype(jnp.float32)
    bin_h = roi_h / res
    bin_w = roi_w / res
    p = jnp.arange(res, dtype=jnp.float32)
    hstart = jnp.clip(jnp.floor(p[None, :] * bin_h[:, None]).astype(jnp.int32)
                      + roi_start_h[:, None], 0, H)
    hend = jnp.clip(jnp.ceil((p[None, :] + 1.0) * bin_h[:, None]).astype(jnp.int32)
                    + roi_start_h[:, None], 0, H)
    wstart = jnp.clip(jnp.floor(p[None, :] * bin_w[:, None]).astype(jnp.int32)
                      + roi_start_w[:, None], 0, W)
    wend = jnp.clip(jnp.ceil((p[None, :] + 1.0) * bin_w[:, None]).astype(jnp.int32)
                    + roi_start_w[:, None], 0, W)
    return jnp.concatenate([hstart, hend, wstart, wend], axis=1).reshape(-1).astype(jnp.int32)


def prepare_box_head_params(params):
    """fc6 rows permuted to the RoI kernel's bin-major (ph, pw, c) layout (kills the
    pooled-feature transpose); head weights packed into 128-lane column blocks;
    matmul weights cast to bf16."""
    K, H6 = params["fc6_w"].shape
    C = K // (POOL_RES * POOL_RES)
    # PyTorch pooled layout is (c, ph, pw); kernel layout is (ph, pw, c).
    w6 = params["fc6_w"].reshape(C, POOL_RES, POOL_RES, H6).transpose(1, 2, 0, 3).reshape(K, H6)
    H7 = params["fc7_w"].shape[1]

    wh = jnp.zeros((H7, HEAD_N), jnp.float32)
    bh = jnp.zeros((HEAD_N,), jnp.float32)

    def put(wh, bh, blk, w, b):
        n = w.shape[1]
        wh = wh.at[:, blk * LANE: blk * LANE + n].set(w)
        bh = bh.at[blk * LANE: blk * LANE + n].set(b)
        return wh, bh

    wh, bh = put(wh, bh, 0, params["mil_cls_w"], params["mil_cls_b"])
    wh, bh = put(wh, bh, 1, params["mil_det_w"], params["mil_det_b"])
    for i in range(REFINE_TIMES):
        wh, bh = put(wh, bh, 2 + i, params[f"refine{i}_w"], params[f"refine{i}_b"])
    wh, bh = put(wh, bh, 2 + REFINE_TIMES, params["cls_w"], params["cls_b"])
    wh, bh = put(wh, bh, 6, params["bbox_w"], params["bbox_b"])
    wh, bh = put(wh, bh, 7, params["iou_w"], params["iou_b"])

    scale = jnp.ones((HEAD_N,), jnp.float32)
    shift = jnp.zeros((HEAD_N,), jnp.float32)
    scale = scale.at[6 * LANE:6 * LANE + NBOX].set(
        jnp.tile(jnp.asarray(BBOX_NORMALIZE_STDS, jnp.float32), NCLS1))
    shift = shift.at[6 * LANE:6 * LANE + NBOX].set(
        jnp.tile(jnp.asarray(BBOX_NORMALIZE_MEANS, jnp.float32), NCLS1))

    return {"w6": w6.astype(jnp.bfloat16),
            "b6": params["fc6_b"].reshape(1, H6),
            "w7": params["fc7_w"].astype(jnp.bfloat16),
            "b7": params["fc7_b"].reshape(1, H7),
            "wh": wh.astype(jnp.bfloat16),
            "bh": bh.reshape(1, HEAD_N),
            "ps": jnp.stack([scale, shift], axis=0)}


def bbox_transform_inv(boxes, deltas):
    widths = boxes[:, 2] - boxes[:, 0] + 1.0
    heights = boxes[:, 3] - boxes[:, 1] + 1.0
    ctr_x = boxes[:, 0] + 0.5 * widths
    ctr_y = boxes[:, 1] + 0.5 * heights
    dx, dy, dw, dh = deltas[:, 0::4], deltas[:, 1::4], deltas[:, 2::4], deltas[:, 3::4]
    pred_ctr_x = dx * widths[:, None] + ctr_x[:, None]
    pred_ctr_y = dy * heights[:, None] + ctr_y[:, None]
    pred_w = jnp.exp(dw) * widths[:, None]
    pred_h = jnp.exp(dh) * heights[:, None]
    out = jnp.zeros_like(deltas)
    out = out.at[:, 0::4].set(pred_ctr_x - 0.5 * pred_w)
    out = out.at[:, 1::4].set(pred_ctr_y - 0.5 * pred_h)
    out = out.at[:, 2::4].set(pred_ctr_x + 0.5 * pred_w)
    out = out.at[:, 3::4].set(pred_ctr_y + 0.5 * pred_h)
    return out


def clip_boxes_2(boxes, im_shape):
    h, w = im_shape
    boxes = boxes.at[:, 0::4].set(jnp.clip(boxes[:, 0::4], 0.0, w - 1.0))
    boxes = boxes.at[:, 1::4].set(jnp.clip(boxes[:, 1::4], 0.0, h - 1.0))
    boxes = boxes.at[:, 2::4].set(jnp.clip(boxes[:, 2::4], 0.0, w - 1.0))
    boxes = boxes.at[:, 3::4].set(jnp.clip(boxes[:, 3::4], 0.0, h - 1.0))
    return boxes


# ------------------------------ model ---------------------------------------

def init_params(key):
    keys = jax.random.split(key, 16)

    def w(k, shape, scale=0.01):
        return scale * jax.random.normal(k, shape, dtype=jnp.float32)

    params = {
        "conv1_w": w(keys[0], (3, 3, 3, 8), 0.1),
        "conv1_b": jnp.zeros((8,), jnp.float32),
        "conv2_w": w(keys[1], (3, 3, 8, 16), 0.1),
        "conv2_b": jnp.zeros((16,), jnp.float32),
        "fc6_w": w(keys[2], (16 * POOL_RES * POOL_RES, 64), 0.05),
        "fc6_b": jnp.zeros((64,), jnp.float32),
        "fc7_w": w(keys[3], (64, 64), 0.05),
        "fc7_b": jnp.zeros((64,), jnp.float32),
        "mil_cls_w": w(keys[4], (64, NUM_CLASSES)),
        "mil_cls_b": jnp.zeros((NUM_CLASSES,), jnp.float32),
        "mil_det_w": w(keys[5], (64, NUM_CLASSES)),
        "mil_det_b": jnp.zeros((NUM_CLASSES,), jnp.float32),
        "cls_w": w(keys[9], (64, NCLS1)),
        "cls_b": jnp.zeros((NCLS1,), jnp.float32),
        "bbox_w": w(keys[10], (64, NBOX), 0.001),
        "bbox_b": jnp.zeros((NBOX,), jnp.float32),
        "iou_w": w(keys[11], (64, 1)),
        "iou_b": jnp.zeros((1,), jnp.float32),
    }
    for i in range(REFINE_TIMES):
        params[f"refine{i}_w"] = w(keys[6 + i], (64, NCLS1))
        params[f"refine{i}_b"] = jnp.zeros((NCLS1,), jnp.float32)
    return params


def generalized_rcnn_forward(params, data, rois):
    """Inference-mode forward of Generalized_RCNN._forward."""
    # ---- Conv body (NHWC internally, 3x3 conv + relu + 2x2 maxpool, twice) ----
    x = jnp.transpose(data, (0, 2, 3, 1))                        # NCHW -> NHWC
    x = conv3x3_relu(x, params["conv1_w"], params["conv1_b"])
    x = maxpool2x2(x)
    x = conv3x3_relu(x, params["conv2_w"], params["conv2_b"])
    x = maxpool2x2(x)                                            # (1, H/4, W/4, 16)
    blob_conv = jnp.transpose(x, (0, 3, 1, 2))                   # back to NCHW

    # ---- Box head: RoIPoolF -> fused fc6/fc7 + all output heads ----
    _, Hf, Wf, Cf = x.shape
    R = rois.shape[0]
    bins = roi_pool_bins(rois, SPATIAL_SCALE, POOL_RES, Hf, Wf)
    pooled = pallas_roi_pool(x[0], bins, res=POOL_RES, R=R)      # (R, res*res*Cf), bin-major

    hp = prepare_box_head_params(params)                         # fc6 rows match bin-major layout
    out = pallas_box_head_and_outs(pooled, hp)

    mil_score = out[:, 0:NUM_CLASSES]
    refine_score = [out[:, (1 + j) * LANE:(1 + j) * LANE + NCLS1]
                    for j in range(REFINE_TIMES + 1)]            # refine0..2, cls (each * iou)
    deltas = out[:, 5 * LANE:5 * LANE + NBOX]                    # stds/means already applied

    return_dict = {"blob_conv": blob_conv,
                   "mil_score": mil_score,
                   "refine_score": refine_score}

    # cfg.OICR.Need_Reg: decode regressed boxes (bbox_transform_inv + clip_boxes_2)
    pred_boxes = bbox_transform_inv(rois[:, 1:], deltas)
    pred_boxes = clip_boxes_2(pred_boxes, data.shape[-2:])
    return_dict["rois"] = pred_boxes
    return return_dict


if __name__ == "__main__":
    key = jax.random.PRNGKey(0)
    pkey, dkey = jax.random.split(key)
    params = init_params(pkey)
    data = jax.random.normal(dkey, (1, 3, 32, 32), dtype=jnp.float32)   # NCHW image
    rois = jnp.array(
        [[0., 0., 0., 31., 31.],
         [0., 4., 4., 27., 27.],
         [0., 0., 0., 15., 15.],
         [0., 16., 16., 31., 31.],
         [0., 8., 2., 30., 14.],
         [0., 2., 8., 14., 30.],
         [0., 10., 10., 21., 25.],
         [0., 5., 12., 28., 22.]], dtype=jnp.float32)                   # (R, 5)

    fwd = jax.jit(generalized_rcnn_forward)
    out = fwd(params, data, rois)
    jax.block_until_ready(out)

    assert out["blob_conv"].shape == (1, 16, 8, 8)
    assert out["mil_score"].shape == (8, NUM_CLASSES)
    assert len(out["refine_score"]) == REFINE_TIMES + 1
    assert all(r.shape == (8, NCLS1) for r in out["refine_score"])
    assert out["rois"].shape == (8, NBOX)
    assert bool(jnp.isfinite(out["mil_score"]).all())
    assert bool(jnp.isfinite(out["rois"]).all())
    print("KERNEL_OK")
</pallas_src>

<mosaic_0001>
module attributes {stable_mosaic.version = 11 : i64} {
  func.func @_conv3x3_kernel(%arg0: i32, %arg1: memref<1440x3xf32, #tpu.memory_space<vmem>>, %arg2: memref<9x3x8xbf16, #tpu.memory_space<vmem>>, %arg3: memref<1x8xf32, #tpu.memory_space<vmem>>, %arg4: memref<160x8xf32, #tpu.memory_space<vmem>>) attributes {dimension_semantics = [#tpu.dimension_semantics<parallel>], iteration_bounds = array<i64: 8>, scalar_prefetch = 0 : i64, scratch_operands = 0 : i64, tpu.core_type = #tpu.core_type<tc>, window_params = [{pipeline_mode = #tpu.pipeline_mode<synchronous>, transform_indices = @transform_0, window_bounds = array<i64: 1440, 3>}, {pipeline_mode = #tpu.pipeline_mode<synchronous>, transform_indices = @transform_1, window_bounds = array<i64: 9, 3, 8>}, {pipeline_mode = #tpu.pipeline_mode<synchronous>, transform_indices = @transform_2, window_bounds = array<i64: 1, 8>}, {transform_indices = @transform_3, window_bounds = array<i64: 160, 8>}]} {
    %c160_i32 = arith.constant 160 : i32
    %0 = arith.muli %arg0, %c160_i32 : i32
    %1 = tpu.assume_multiple %0, 8 : i32
    %cst = arith.constant 0.000000e+00 : f32
    %2 = vector.broadcast %cst : f32 to vector<160x8xf32>
    %c40_i32 = arith.constant 40 : i32
    %3 = arith.addi %1, %c40_i32 : i32
    %4 = tpu.assume_multiple %3, 8 : i32
    %5 = arith.index_cast %4 : i32 to index
    %c0 = arith.constant 0 : index
    %6 = vector.load %arg1[%5, %c0] : memref<1440x3xf32, #tpu.memory_space<vmem>>, vector<160x3xf32>
    %c1_i32 = arith.constant 1 : i32
    %7 = tpu.dynamic_rotate %6 by %c1_i32 dim 0 : vector<160x3xf32>, i32 -> vector<160x3xf32>
    %c159_i32 = arith.constant 159 : i32
    %8 = tpu.dynamic_rotate %6 by %c159_i32 dim 0 : vector<160x3xf32>, i32 -> vector<160x3xf32>
    %c0_0 = arith.constant 0 : index
    %c0_1 = arith.constant 0 : index
    %c0_2 = arith.constant 0 : index
    %9 = vector.load %arg2[%c0_0, %c0_1, %c0_2] : memref<9x3x8xbf16, #tpu.memory_space<vmem>>, vector<1x3x8xbf16>
    %10 = vector.shape_cast %9 : vector<1x3x8xbf16> to vector<3x8xbf16>
    %11 = arith.truncf %7 : vector<160x3xf32> to vector<160x3xbf16>
    %cst_3 = arith.constant dense<0.000000e+00> : vector<160x8xf32>
    %12 = tpu.matmul %11, %10, %cst_3 {dimension_numbers = #tpu.dot_dimension_numbers<[1], [0], [0], [1], [0, 0, 1, 1], [], []>} : vector<160x3xbf16>, vector<3x8xbf16>, vector<160x8xf32> -> vector<160x8xf32>
    %13 = arith.addf %2, %12 : vector<160x8xf32>
    %c1 = arith.constant 1 : index
    %c0_4 = arith.constant 0 : index
    %c0_5 = arith.constant 0 : index
    %14 = vector.load %arg2[%c1, %c0_4, %c0_5] : memref<9x3x8xbf16, #tpu.memory_space<vmem>>, vector<1x3x8xbf16>
    %15 = vector.shape_cast %14 : vector<1x3x8xbf16> to vector<3x8xbf16>
    %16 = arith.truncf %6 : vector<160x3xf32> to vector<160x3xbf16>
    %cst_6 = arith.constant dense<0.000000e+00> : vector<160x8xf32>
    %17 = tpu.matmul %16, %15, %cst_6 {dimension_numbers = #tpu.dot_dimension_numbers<[1], [0], [0], [1], [0, 0, 1, 1], [], []>} : vector<160x3xbf16>, vector<3x8xbf16>, vector<160x8xf32> -> vector<160x8xf32>
    %18 = arith.addf %13, %17 : vector<160x8xf32>
    %c2 = arith.constant 2 : index
    %c0_7 = arith.constant 0 : index
    %c0_8 = arith.constant 0 : index
    %19 = vector.load %arg2[%c2, %c0_7, %c0_8] : memref<9x3x8xbf16, #tpu.memory_space<vmem>>, vector<1x3x8xbf16>
    %20 = vector.shape_cast %19 : vector<1x3x8xbf16> to vector<3x8xbf16>
    %21 = arith.truncf %8 : vector<160x3xf32> to vector<160x3xbf16>
    %cst_9 = arith.constant dense<0.000000e+00> : vector<160x8xf32>
    %22 = tpu.matmul %21, %20, %cst_9 {dimension_numbers = #tpu.dot_dimension_numbers<[1], [0], [0], [1], [0, 0, 1, 1], [], []>} : vector<160x3xbf16>, vector<3x8xbf16>, vector<160x8xf32> -> vector<160x8xf32>
    %23 = arith.addf %18, %22 : vector<160x8xf32>
    %c80_i32 = arith.constant 80 : i32
    %24 = arith.addi %1, %c80_i32 : i32
    %25 = tpu.assume_multiple %24, 8 : i32
    %26 = arith.index_cast %25 : i32 to index
    %c0_10 = arith.constant 0 : index
    %27 = vector.load %arg1[%26, %c0_10] : memref<1440x3xf32, #tpu.memory_space<vmem>>, vector<160x3xf32>
    %c1_i32_11 = arith.constant 1 : i32
    %28 = tpu.dynamic_rotate %27 by %c1_i32_11 dim 0 : vector<160x3xf32>, i32 -> vector<160x3xf32>
    %c159_i32_12 = arith.constant 159 : i32
    %29 = tpu.dynamic_rotate %27 by %c159_i32_12 dim 0 : vector<160x3xf32>, i32 -> vector<160x3xf32>
    %c3 = arith.constant 3 : index
    %c0_13 = arith.constant 0 : index
    %c0_14 = arith.constant 0 : index
    %30 = vector.load %arg2[%c3, %c0_13, %c0_14] : memref<9x3x8xbf16, #tpu.memory_space<vmem>>, vector<1x3x8xbf16>
    %31 = vector.shape_cast %30 : vector<1x3x8xbf16> to vector<3x8xbf16>
    %32 = arith.truncf %28 : vector<160x3xf32> to vector<160x3xbf16>
    %cst_15 = arith.constant dense<0.000000e+00> : vector<160x8xf32>
    %33 = tpu.matmul %32, %31, %cst_15 {dimension_numbers = #tpu.dot_dimension_numbers<[1], [0], [0], [1], [0, 0, 1, 1], [], []>} : vector<160x3xbf16>, vector<3x8xbf16>, vector<160x8xf32> -> vector<160x8xf32>
    %34 = arith.addf %23, %33 : vector<160x8xf32>
    %c4 = arith.constant 4 : index
    %c0_16 = arith.constant 0 : index
    %c0_17 = arith.constant 0 : index
    %35 = vector.load %arg2[%c4, %c0_16, %c0_17] : memref<9x3x8xbf16, #tpu.memory_space<vmem>>, vector<1x3x8xbf16>
    %36 = vector.shape_cast %35 : vector<1x3x8xbf16> to vector<3x8xbf16>
    %37 = arith.truncf %27 : vector<160x3xf32> to vector<160x3xbf16>
    %cst_18 = arith.constant dense<0.000000e+00> : vector<160x8xf32>
    %38 = tpu.matmul %37, %36, %cst_18 {dimension_numbers = #tpu.dot_dimension_numbers<[1], [0], [0], [1], [0, 0, 1, 1], [], []>} : vector<160x3xbf16>, vector<3x8xbf16>, vector<160x8xf32> -> vector<160x8xf32>
    %39 = arith.addf %34, %38 : vector<160x8xf32>
    %c5 = arith.constant 5 : index
    %c0_19 = arith.constant 0 : index
    %c0_20 = arith.constant 0 : index
    %40 = vector.load %arg2[%c5, %c0_19, %c0_20] : memref<9x3x8xbf16, #tpu.memory_space<vmem>>, vector<1x3x8xbf16>
    %41 = vector.shape_cast %40 : vector<1x3x8xbf16> to vector<3x8xbf16>
    %42 = arith.truncf %29 : vector<160x3xf32> to vector<160x3xbf16>
    %cst_21 = arith.constant dense<0.000000e+00> : vector<160x8xf32>
    %43 = tpu.matmul %42, %41, %cst_21 {dimension_numbers = #tpu.dot_dimension_numbers<[1], [0], [0], [1], [0, 0, 1, 1], [], []>} : vector<160x3xbf16>, vector<3x8xbf16>, vector<160x8xf32> -> vector<160x8xf32>
    %44 = arith.addf %39, %43 : vector<160x8xf32>
    %c120_i32 = arith.constant 120 : i32
    %45 = arith.addi %1, %c120_i32 : i32
    %46 = tpu.assume_multiple %45, 8 : i32
    %47 = arith.index_cast %46 : i32 to index
    %c0_22 = arith.constant 0 : index
    %48 = vector.load %arg1[%47, %c0_22] : memref<1440x3xf32, #tpu.memory_space<vmem>>, vector<160x3xf32>
    %c1_i32_23 = arith.constant 1 : i32
    %49 = tpu.dynamic_rotate %48 by %c1_i32_23 dim 0 : vector<160x3xf32>, i32 -> vector<160x3xf32>
    %c159_i32_24 = arith.constant 159 : i32
    %50 = tpu.dynamic_rotate %48 by %c159_i32_24 dim 0 : vector<160x3xf32>, i32 -> vector<160x3xf32>
    %c6 = arith.constant 6 : index
    %c0_25 = arith.constant 0 : index
    %c0_26 = arith.constant 0 : index
    %51 = vector.load %arg2[%c6, %c0_25, %c0_26] : memref<9x3x8xbf16, #tpu.memory_space<vmem>>, vector<1x3x8xbf16>
    %52 = vector.shape_cast %51 : vector<1x3x8xbf16> to vector<3x8xbf16>
    %53 = arith.truncf %49 : vector<160x3xf32> to vector<160x3xbf16>
    %cst_27 = arith.constant dense<0.000000e+00> : vector<160x8xf32>
    %54 = tpu.matmul %53, %52, %cst_27 {dimension_numbers = #tpu.dot_dimension_numbers<[1], [0], [0], [1], [0, 0, 1, 1], [], []>} : vector<160x3xbf16>, vector<3x8xbf16>, vector<160x8xf32> -> vector<160x8xf32>
    %55 = arith.addf %44, %54 : vector<160x8xf32>
    %c7 = arith.constant 7 : index
    %c0_28 = arith.constant 0 : index
    %c0_29 = arith.constant 0 : index
    %56 = vector.load %arg2[%c7, %c0_28, %c0_29] : memref<9x3x8xbf16, #tpu.memory_space<vmem>>, vector<1x3x8xbf16>
    %57 = vector.shape_cast %56 : vector<1x3x8xbf16> to vector<3x8xbf16>
    %58 = arith.truncf %48 : vector<160x3xf32> to vector<160x3xbf16>
    %cst_30 = arith.constant dense<0.000000e+00> : vector<160x8xf32>
    %59 = tpu.matmul %58, %57, %cst_30 {dimension_numbers = #tpu.dot_dimension_numbers<[1], [0], [0], [1], [0, 0, 1, 1], [], []>} : vector<160x3xbf16>, vector<3x8xbf16>, vector<160x8xf32> -> vector<160x8xf32>
    %60 = arith.addf %55, %59 : vector<160x8xf32>
    %c8 = arith.constant 8 : index
    %c0_31 = arith.constant 0 : index
    %c0_32 = arith.constant 0 : index
    %61 = vector.load %arg2[%c8, %c0_31, %c0_32] : memref<9x3x8xbf16, #tpu.memory_space<vmem>>, vector<1x3x8xbf16>
    %62 = vector.shape_cast %61 : vector<1x3x8xbf16> to vector<3x8xbf16>
    %63 = arith.truncf %50 : vector<160x3xf32> to vector<160x3xbf16>
    %cst_33 = arith.constant dense<0.000000e+00> : vector<160x8xf32>
    %64 = tpu.matmul %63, %62, %cst_33 {dimension_numbers = #tpu.dot_dimension_numbers<[1], [0], [0], [1], [0, 0, 1, 1], [], []>} : vector<160x3xbf16>, vector<3x8xbf16>, vector<160x8xf32> -> vector<160x8xf32>
    %65 = arith.addf %60, %64 : vector<160x8xf32>
    %c0_34 = arith.constant 0 : index
    %c0_35 = arith.constant 0 : index
    %66 = vector.load %arg3[%c0_34, %c0_35] : memref<1x8xf32, #tpu.memory_space<vmem>>, vector<1x8xf32>
    %67 = vector.broadcast %66 : vector<1x8xf32> to vector<160x8xf32>
    %68 = arith.addf %65, %67 : vector<160x8xf32>
    %cst_36 = arith.constant 0.000000e+00 : f32
    %69 = vector.broadcast %cst_36 : f32 to vector<160x8xf32>
    %70 = arith.maximumf %68, %69 : vector<160x8xf32>
    %c0_37 = arith.constant 0 : index
    %c0_38 = arith.constant 0 : index
    %71 = vector.load %arg4[%c0_37, %c0_38] : memref<160x8xf32, #tpu.memory_space<vmem>>, vector<160x8xf32>
    tpu.vector_store %arg4[%c0_37, %c0_38], %70 {strides = array<i32>} : memref<160x8xf32, #tpu.memory_space<vmem>>, vector<160x8xf32>,
    return
  }
  func.func @transform_0(%arg0: i32) -> (i32, i32) {
    %c0_i32 = arith.constant 0 : i32
    %c0_i32_0 = arith.constant 0 : i32
    %c0_i32_1 = arith.constant 0 : i32
    return %c0_i32, %c0_i32_0 : i32, i32
  }
  func.func @transform_1(%arg0: i32) -> (i32, i32, i32) {
    %c0_i32 = arith.constant 0 : i32
    %c0_i32_0 = arith.constant 0 : i32
    %c0_i32_1 = arith.constant 0 : i32
    %c0_i32_2 = arith.constant 0 : i32
    return %c0_i32, %c0_i32_0, %c0_i32_1 : i32, i32, i32
  }
  func.func @transform_2(%arg0: i32) -> (i32, i32) {
    %c0_i32 = arith.constant 0 : i32
    %c0_i32_0 = arith.constant 0 : i32
    %c0_i32_1 = arith.constant 0 : i32
    return %c0_i32, %c0_i32_0 : i32, i32
  }
  func.func @transform_3(%arg0: i32) -> (i32, i32) {
    %c0_i32 = arith.constant 0 : i32
    %c0_i32_0 = arith.constant 0 : i32
    return %arg0, %c0_i32 : i32, i32
  }
}

module attributes {stable_mosaic.version = 11 : i64} {
  func.func @_conv3x3_kernel(%arg0: i32, %arg1: memref<480x8xf32, #tpu.memory_space<vmem>>, %arg2: memref<9x8x16xbf16, #tpu.memory_space<vmem>>, %arg3: memref<1x16xf32, #tpu.memory_space<vmem>>, %arg4: memref<192x16xf32, #tpu.memory_space<vmem>>) attributes {dimension_semantics = [#tpu.dimension_semantics<parallel>], iteration_bounds = array<i64: 2>, scalar_prefetch = 0 : i64, scratch_operands = 0 : i64, tpu.core_type = #tpu.core_type<tc>, window_params = [{pipeline_mode = #tpu.pipeline_mode<synchronous>, transform_indices = @transform_0, window_bounds = array<i64: 480, 8>}, {pipeline_mode = #tpu.pipeline_mode<synchronous>, transform_indices = @transform_1, window_bounds = array<i64: 9, 8, 16>}, {pipeline_mode = #tpu.pipeline_mode<synchronous>, transform_indices = @transform_2, window_bounds = array<i64: 1, 16>}, {transform_indices = @transform_3, window_bounds = array<i64: 192, 16>}]} {
    %c192_i32 = arith.constant 192 : i32
    %0 = arith.muli %arg0, %c192_i32 : i32
    %1 = tpu.assume_multiple %0, 8 : i32
    %cst = arith.constant 0.000000e+00 : f32
    %2 = vector.broadcast %cst : f32 to vector<192x16xf32>
    %c24_i32 = arith.constant 24 : i32
    %3 = arith.addi %1, %c24_i32 : i32
    %4 = tpu.assume_multiple %3, 8 : i32
    %5 = arith.index_cast %4 : i32 to index
    %c0 = arith.constant 0 : index
    %6 = vector.load %arg1[%5, %c0] : memref<480x8xf32, #tpu.memory_space<vmem>>, vector<192x8xf32>
    %c1_i32 = arith.constant 1 : i32
    %7 = tpu.dynamic_rotate %6 by %c1_i32 dim 0 : vector<192x8xf32>, i32 -> vector<192x8xf32>
    %c191_i32 = arith.constant 191 : i32
    %8 = tpu.dynamic_rotate %6 by %c191_i32 dim 0 : vector<192x8xf32>, i32 -> vector<192x8xf32>
    %c0_0 = arith.constant 0 : index
    %c0_1 = arith.constant 0 : index
    %c0_2 = arith.constant 0 : index
    %9 = vector.load %arg2[%c0_0, %c0_1, %c0_2] : memref<9x8x16xbf16, #tpu.memory_space<vmem>>, vector<1x8x16xbf16>
    %10 = vector.shape_cast %9 : vector<1x8x16xbf16> to vector<8x16xbf16>
    %11 = arith.truncf %7 : vector<192x8xf32> to vector<192x8xbf16>
    %cst_3 = arith.constant dense<0.000000e+00> : vector<192x16xf32>
    %12 = tpu.matmul %11, %10, %cst_3 {dimension_numbers = #tpu.dot_dimension_numbers<[1], [0], [0], [1], [0, 0, 1, 1], [], []>} : vector<192x8xbf16>, vector<8x16xbf16>, vector<192x16xf32> -> vector<192x16xf32>
    %13 = arith.addf %2, %12 : vector<192x16xf32>
    %c1 = arith.constant 1 : index
    %c0_4 = arith.constant 0 : index
    %c0_5 = arith.constant 0 : index
    %14 = vector.load %arg2[%c1, %c0_4, %c0_5] : memref<9x8x16xbf16, #tpu.memory_space<vmem>>, vector<1x8x16xbf16>
    %15 = vector.shape_cast %14 : vector<1x8x16xbf16> to vector<8x16xbf16>
    %16 = arith.truncf %6 : vector<192x8xf32> to vector<192x8xbf16>
    %cst_6 = arith.constant dense<0.000000e+00> : vector<192x16xf32>
    %17 = tpu.matmul %16, %15, %cst_6 {dimension_numbers = #tpu.dot_dimension_numbers<[1], [0], [0], [1], [0, 0, 1, 1], [], []>} : vector<192x8xbf16>, vector<8x16xbf16>, vector<192x16xf32> -> vector<192x16xf32>
    %18 = arith.addf %13, %17 : vector<192x16xf32>
    %c2 = arith.constant 2 : index
    %c0_7 = arith.constant 0 : index
    %c0_8 = arith.constant 0 : index
    %19 = vector.load %arg2[%c2, %c0_7, %c0_8] : memref<9x8x16xbf16, #tpu.memory_space<vmem>>, vector<1x8x16xbf16>
    %20 = vector.shape_cast %19 : vector<1x8x16xbf16> to vector<8x16xbf16>
    %21 = arith.truncf %8 : vector<192x8xf32> to vector<192x8xbf16>
    %cst_9 = arith.constant dense<0.000000e+00> : vector<192x16xf32>
    %22 = tpu.matmul %21, %20, %cst_9 {dimension_numbers = #tpu.dot_dimension_numbers<[1], [0], [0], [1], [0, 0, 1, 1], [], []>} : vector<192x8xbf16>, vector<8x16xbf16>, vector<192x16xf32> -> vector<192x16xf32>
    %23 = arith.addf %18, %22 : vector<192x16xf32>
    %c48_i32 = arith.constant 48 : i32
    %24 = arith.addi %1, %c48_i32 : i32
    %25 = tpu.assume_multiple %24, 8 : i32
    %26 = arith.index_cast %25 : i32 to index
    %c0_10 = arith.constant 0 : index
    %27 = vector.load %arg1[%26, %c0_10] : memref<480x8xf32, #tpu.memory_space<vmem>>, vector<192x8xf32>
    %c1_i32_11 = arith.constant 1 : i32
    %28 = tpu.dynamic_rotate %27 by %c1_i32_11 dim 0 : vector<192x8xf32>, i32 -> vector<192x8xf32>
    %c191_i32_12 = arith.constant 191 : i32
    %29 = tpu.dynamic_rotate %27 by %c191_i32_12 dim 0 : vector<192x8xf32>, i32 -> vector<192x8xf32>
    %c3 = arith.constant 3 : index
    %c0_13 = arith.constant 0 : index
    %c0_14 = arith.constant 0 : index
    %30 = vector.load %arg2[%c3, %c0_13, %c0_14] : memref<9x8x16xbf16, #tpu.memory_space<vmem>>, vector<1x8x16xbf16>
    %31 = vector.shape_cast %30 : vector<1x8x16xbf16> to vector<8x16xbf16>
    %32 = arith.truncf %28 : vector<192x8xf32> to vector<192x8xbf16>
    %cst_15 = arith.constant dense<0.000000e+00> : vector<192x16xf32>
    %33 = tpu.matmul %32, %31, %cst_15 {dimension_numbers = #tpu.dot_dimension_numbers<[1], [0], [0], [1], [0, 0, 1, 1], [], []>} : vector<192x8xbf16>, vector<8x16xbf16>, vector<192x16xf32> -> vector<192x16xf32>
    %34 = arith.addf %23, %33 : vector<192x16xf32>
    %c4 = arith.constant 4 : index
    %c0_16 = arith.constant 0 : index
    %c0_17 = arith.constant 0 : index
    %35 = vector.load %arg2[%c4, %c0_16, %c0_17] : memref<9x8x16xbf16, #tpu.memory_space<vmem>>, vector<1x8x16xbf16>
    %36 = vector.shape_cast %35 : vector<1x8x16xbf16> to vector<8x16xbf16>
    %37 = arith.truncf %27 : vector<192x8xf32> to vector<192x8xbf16>
    %cst_18 = arith.constant dense<0.000000e+00> : vector<192x16xf32>
    %38 = tpu.matmul %37, %36, %cst_18 {dimension_numbers = #tpu.dot_dimension_numbers<[1], [0], [0], [1], [0, 0, 1, 1], [], []>} : vector<192x8xbf16>, vector<8x16xbf16>, vector<192x16xf32> -> vector<192x16xf32>
    %39 = arith.addf %34, %38 : vector<192x16xf32>
    %c5 = arith.constant 5 : index
    %c0_19 = arith.constant 0 : index
    %c0_20 = arith.constant 0 : index
    %40 = vector.load %arg2[%c5, %c0_19, %c0_20] : memref<9x8x16xbf16, #tpu.memory_space<vmem>>, vector<1x8x16xbf16>
    %41 = vector.shape_cast %40 : vector<1x8x16xbf16> to vector<8x16xbf16>
    %42 = arith.truncf %29 : vector<192x8xf32> to vector<192x8xbf16>
    %cst_21 = arith.constant dense<0.000000e+00> : vector<192x16xf32>
    %43 = tpu.matmul %42, %41, %cst_21 {dimension_numbers = #tpu.dot_dimension_numbers<[1], [0], [0], [1], [0, 0, 1, 1], [], []>} : vector<192x8xbf16>, vector<8x16xbf16>, vector<192x16xf32> -> vector<192x16xf32>
    %44 = arith.addf %39, %43 : vector<192x16xf32>
    %c72_i32 = arith.constant 72 : i32
    %45 = arith.addi %1, %c72_i32 : i32
    %46 = tpu.assume_multiple %45, 8 : i32
    %47 = arith.index_cast %46 : i32 to index
    %c0_22 = arith.constant 0 : index
    %48 = vector.load %arg1[%47, %c0_22] : memref<480x8xf32, #tpu.memory_space<vmem>>, vector<192x8xf32>
    %c1_i32_23 = arith.constant 1 : i32
    %49 = tpu.dynamic_rotate %48 by %c1_i32_23 dim 0 : vector<192x8xf32>, i32 -> vector<192x8xf32>
    %c191_i32_24 = arith.constant 191 : i32
    %50 = tpu.dynamic_rotate %48 by %c191_i32_24 dim 0 : vector<192x8xf32>, i32 -> vector<192x8xf32>
    %c6 = arith.constant 6 : index
    %c0_25 = arith.constant 0 : index
    %c0_26 = arith.constant 0 : index
    %51 = vector.load %arg2[%c6, %c0_25, %c0_26] : memref<9x8x16xbf16, #tpu.memory_space<vmem>>, vector<1x8x16xbf16>
    %52 = vector.shape_cast %51 : vector<1x8x16xbf16> to vector<8x16xbf16>
    %53 = arith.truncf %49 : vector<192x8xf32> to vector<192x8xbf16>
    %cst_27 = arith.constant dense<0.000000e+00> : vector<192x16xf32>
    %54 = tpu.matmul %53, %52, %cst_27 {dimension_numbers = #tpu.dot_dimension_numbers<[1], [0], [0], [1], [0, 0, 1, 1], [], []>} : vector<192x8xbf16>, vector<8x16xbf16>, vector<192x16xf32> -> vector<192x16xf32>
    %55 = arith.addf %44, %54 : vector<192x16xf32>
    %c7 = arith.constant 7 : index
    %c0_28 = arith.constant 0 : index
    %c0_29 = arith.constant 0 : index
    %56 = vector.load %arg2[%c7, %c0_28, %c0_29] : memref<9x8x16xbf16, #tpu.memory_space<vmem>>, vector<1x8x16xbf16>
    %57 = vector.shape_cast %56 : vector<1x8x16xbf16> to vector<8x16xbf16>
    %58 = arith.truncf %48 : vector<192x8xf32> to vector<192x8xbf16>
    %cst_30 = arith.constant dense<0.000000e+00> : vector<192x16xf32>
    %59 = tpu.matmul %58, %57, %cst_30 {dimension_numbers = #tpu.dot_dimension_numbers<[1], [0], [0], [1], [0, 0, 1, 1], [], []>} : vector<192x8xbf16>, vector<8x16xbf16>, vector<192x16xf32> -> vector<192x16xf32>
    %60 = arith.addf %55, %59 : vector<192x16xf32>
    %c8 = arith.constant 8 : index
    %c0_31 = arith.constant 0 : index
    %c0_32 = arith.constant 0 : index
    %61 = vector.load %arg2[%c8, %c0_31, %c0_32] : memref<9x8x16xbf16, #tpu.memory_space<vmem>>, vector<1x8x16xbf16>
    %62 = vector.shape_cast %61 : vector<1x8x16xbf16> to vector<8x16xbf16>
    %63 = arith.truncf %50 : vector<192x8xf32> to vector<192x8xbf16>
    %cst_33 = arith.constant dense<0.000000e+00> : vector<192x16xf32>
    %64 = tpu.matmul %63, %62, %cst_33 {dimension_numbers = #tpu.dot_dimension_numbers<[1], [0], [0], [1], [0, 0, 1, 1], [], []>} : vector<192x8xbf16>, vector<8x16xbf16>, vector<192x16xf32> -> vector<192x16xf32>
    %65 = arith.addf %60, %64 : vector<192x16xf32>
    %c0_34 = arith.constant 0 : index
    %c0_35 = arith.constant 0 : index
    %66 = vector.load %arg3[%c0_34, %c0_35] : memref<1x16xf32, #tpu.memory_space<vmem>>, vector<1x16xf32>
    %67 = vector.broadcast %66 : vector<1x16xf32> to vector<192x16xf32>
    %68 = arith.addf %65, %67 : vector<192x16xf32>
    %cst_36 = arith.constant 0.000000e+00 : f32
    %69 = vector.broadcast %cst_36 : f32 to vector<192x16xf32>
    %70 = arith.maximumf %68, %69 : vector<192x16xf32>
    %c0_37 = arith.constant 0 : index
    %c0_38 = arith.constant 0 : index
    %71 = vector.load %arg4[%c0_37, %c0_38] : memref<192x16xf32, #tpu.memory_space<vmem>>, vector<192x16xf32>
    tpu.vector_store %arg4[%c0_37, %c0_38], %70 {strides = array<i32>} : memref<192x16xf32, #tpu.memory_space<vmem>>, vector<192x16xf32>,
    return
  }
  func.func @transform_0(%arg0: i32) -> (i32, i32) {
    %c0_i32 = arith.constant 0 : i32
    %c0_i32_0 = arith.constant 0 : i32
    %c0_i32_1 = arith.constant 0 : i32
    return %c0_i32, %c0_i32_0 : i32, i32
  }
  func.func @transform_1(%arg0: i32) -> (i32, i32, i32) {
    %c0_i32 = arith.constant 0 : i32
    %c0_i32_0 = arith.constant 0 : i32
    %c0_i32_1 = arith.constant 0 : i32
    %c0_i32_2 = arith.constant 0 : i32
    return %c0_i32, %c0_i32_0, %c0_i32_1 : i32, i32, i32
  }
  func.func @transform_2(%arg0: i32) -> (i32, i32) {
    %c0_i32 = arith.constant 0 : i32
    %c0_i32_0 = arith.constant 0 : i32
    %c0_i32_1 = arith.constant 0 : i32
    return %c0_i32, %c0_i32_0 : i32, i32
  }
  func.func @transform_3(%arg0: i32) -> (i32, i32) {
    %c0_i32 = arith.constant 0 : i32
    %c0_i32_0 = arith.constant 0 : i32
    return %arg0, %c0_i32 : i32, i32
  }
}

module attributes {stable_mosaic.version = 11 : i64} {
  func.func @_roi_pool_kernel(%arg0: i32, %arg1: memref<128xi32, #tpu.memory_space<smem>>, %arg2: memref<8x8x16xf32, #tpu.memory_space<vmem>>, %arg3: memref<1x1x256xf32, #tpu.memory_space<vmem>>) attributes {dimension_semantics = [#tpu.dimension_semantics<parallel>], iteration_bounds = array<i64: 8>, scalar_prefetch = 1 : i64, scratch_operands = 0 : i64, tpu.core_type = #tpu.core_type<tc>, window_params = [{pipeline_mode = #tpu.pipeline_mode<synchronous>, transform_indices = @transform_0, window_bounds = array<i64: 8, 8, 16>}, {transform_indices = @transform_1, window_bounds = array<i64: 1, 1, 256>}]} {
    %c16_i32 = arith.constant 16 : i32
    %0 = arith.muli %arg0, %c16_i32 : i32
    %c0 = arith.constant 0 : index
    %c0_0 = arith.constant 0 : index
    %c0_1 = arith.constant 0 : index
    %1 = vector.load %arg2[%c0, %c0_0, %c0_1] : memref<8x8x16xf32, #tpu.memory_space<vmem>>, vector<8x8x16xf32>
    %2 = tpu.iota {dimensions = array<i32: 1>} : vector<1x8x1xi32>
    %3 = tpu.iota {dimensions = array<i32: 0>} : vector<8x1xi32>
    %c8_i32 = arith.constant 8 : i32
    %4 = arith.addi %0, %c8_i32 : i32
    %c0_i32 = arith.constant 0 : i32
    %5 = arith.addi %4, %c0_i32 : i32
    %6 = arith.index_cast %5 : i32 to index
    %7 = memref.load %arg1[%6] : memref<128xi32, #tpu.memory_space<smem>>
    %c12_i32 = arith.constant 12 : i32
    %8 = arith.addi %0, %c12_i32 : i32
    %c0_i32_2 = arith.constant 0 : i32
    %9 = arith.addi %8, %c0_i32_2 : i32
    %10 = arith.index_cast %9 : i32 to index
    %11 = memref.load %arg1[%10] : memref<128xi32, #tpu.memory_space<smem>>
    %12 = vector.broadcast %7 : i32 to vector<1x8x1xi32>
    %13 = arith.cmpi sge, %2, %12 : vector<1x8x1xi32>
    %14 = vector.broadcast %11 : i32 to vector<1x8x1xi32>
    %15 = arith.cmpi slt, %2, %14 : vector<1x8x1xi32>
    %16 = arith.andi %13, %15 : vector<1x8x1xi1>
    %cst = arith.constant -1.000000e+30 : f32
    %17 = vector.shape_cast %16 : vector<1x8x1xi1> to vector<1x8x1xi1>
    %18 = vector.broadcast %17 : vector<1x8x1xi1> to vector<8x8x16xi1>
    %19 = vector.broadcast %cst : f32 to vector<8x8x16xf32>
    %20 = arith.select %18, %1, %19 : vector<8x8x16xi1>, vector<8x8x16xf32>
    %cst_3 = arith.constant dense<0xFF800000> : vector<8x16xf32>
    %21 = vector.multi_reduction <maximumf>, %20, %cst_3 [1] : vector<8x8x16xf32> to vector<8x16xf32>
    %22 = arith.cmpi sgt, %11, %7 : i32
    %c8_i32_4 = arith.constant 8 : i32
    %23 = arith.addi %0, %c8_i32_4 : i32
    %c1_i32 = arith.constant 1 : i32
    %24 = arith.addi %23, %c1_i32 : i32
    %25 = arith.index_cast %24 : i32 to index
    %26 = memref.load %arg1[%25] : memref<128xi32, #tpu.memory_space<smem>>
    %c12_i32_5 = arith.constant 12 : i32
    %27 = arith.addi %0, %c12_i32_5 : i32
    %c1_i32_6 = arith.constant 1 : i32
    %28 = arith.addi %27, %c1_i32_6 : i32
    %29 = arith.index_cast %28 : i32 to index
    %30 = memref.load %arg1[%29] : memref<128xi32, #tpu.memory_space<smem>>
    %31 = vector.broadcast %26 : i32 to vector<1x8x1xi32>
    %32 = arith.cmpi sge, %2, %31 : vector<1x8x1xi32>
    %33 = vector.broadcast %30 : i32 to vector<1x8x1xi32>
    %34 = arith.cmpi slt, %2, %33 : vector<1x8x1xi32>
    %35 = arith.andi %32, %34 : vector<1x8x1xi1>
    %cst_7 = arith.constant -1.000000e+30 : f32
    %36 = vector.shape_cast %35 : vector<1x8x1xi1> to vector<1x8x1xi1>
    %37 = vector.broadcast %36 : vector<1x8x1xi1> to vector<8x8x16xi1>
    %38 = vector.broadcast %cst_7 : f32 to vector<8x8x16xf32>
    %39 = arith.select %37, %1, %38 : vector<8x8x16xi1>, vector<8x8x16xf32>
    %cst_8 = arith.constant dense<0xFF800000> : vector<8x16xf32>
    %40 = vector.multi_reduction <maximumf>, %39, %cst_8 [1] : vector<8x8x16xf32> to vector<8x16xf32>
    %41 = arith.cmpi sgt, %30, %26 : i32
    %c8_i32_9 = arith.constant 8 : i32
    %42 = arith.addi %0, %c8_i32_9 : i32
    %c2_i32 = arith.constant 2 : i32
    %43 = arith.addi %42, %c2_i32 : i32
    %44 = arith.index_cast %43 : i32 to index
    %45 = memref.load %arg1[%44] : memref<128xi32, #tpu.memory_space<smem>>
    %c12_i32_10 = arith.constant 12 : i32
    %46 = arith.addi %0, %c12_i32_10 : i32
    %c2_i32_11 = arith.constant 2 : i32
    %47 = arith.addi %46, %c2_i32_11 : i32
    %48 = arith.index_cast %47 : i32 to index
    %49 = memref.load %arg1[%48] : memref<128xi32, #tpu.memory_space<smem>>
    %50 = vector.broadcast %45 : i32 to vector<1x8x1xi32>
    %51 = arith.cmpi sge, %2, %50 : vector<1x8x1xi32>
    %52 = vector.broadcast %49 : i32 to vector<1x8x1xi32>
    %53 = arith.cmpi slt, %2, %52 : vector<1x8x1xi32>
    %54 = arith.andi %51, %53 : vector<1x8x1xi1>
    %cst_12 = arith.constant -1.000000e+30 : f32
    %55 = vector.shape_cast %54 : vector<1x8x1xi1> to vector<1x8x1xi1>
    %56 = vector.broadcast %55 : vector<1x8x1xi1> to vector<8x8x16xi1>
    %57 = vector.broadcast %cst_12 : f32 to vector<8x8x16xf32>
    %58 = arith.select %56, %1, %57 : vector<8x8x16xi1>, vector<8x8x16xf32>
    %cst_13 = arith.constant dense<0xFF800000> : vector<8x16xf32>
    %59 = vector.multi_reduction <maximumf>, %58, %cst_13 [1] : vector<8x8x16xf32> to vector<8x16xf32>
    %60 = arith.cmpi sgt, %49, %45 : i32
    %c8_i32_14 = arith.constant 8 : i32
    %61 = arith.addi %0, %c8_i32_14 : i32
    %c3_i32 = arith.constant 3 : i32
    %62 = arith.addi %61, %c3_i32 : i32
    %63 = arith.index_cast %62 : i32 to index
    %64 = memref.load %arg1[%63] : memref<128xi32, #tpu.memory_space<smem>>
    %c12_i32_15 = arith.constant 12 : i32
    %65 = arith.addi %0, %c12_i32_15 : i32
    %c3_i32_16 = arith.constant 3 : i32
    %66 = arith.addi %65, %c3_i32_16 : i32
    %67 = arith.index_cast %66 : i32 to index
    %68 = memref.load %arg1[%67] : memref<128xi32, #tpu.memory_space<smem>>
    %69 = vector.broadcast %64 : i32 to vector<1x8x1xi32>
    %70 = arith.cmpi sge, %2, %69 : vector<1x8x1xi32>
    %71 = vector.broadcast %68 : i32 to vector<1x8x1xi32>
    %72 = arith.cmpi slt, %2, %71 : vector<1x8x1xi32>
    %73 = arith.andi %70, %72 : vector<1x8x1xi1>
    %cst_17 = arith.constant -1.000000e+30 : f32
    %74 = vector.shape_cast %73 : vector<1x8x1xi1> to vector<1x8x1xi1>
    %75 = vector.broadcast %74 : vector<1x8x1xi1> to vector<8x8x16xi1>
    %76 = vector.broadcast %cst_17 : f32 to vector<8x8x16xf32>
    %77 = arith.select %75, %1, %76 : vector<8x8x16xi1>, vector<8x8x16xf32>
    %cst_18 = arith.constant dense<0xFF800000> : vector<8x16xf32>
    %78 = vector.multi_reduction <maximumf>, %77, %cst_18 [1] : vector<8x8x16xf32> to vector<8x16xf32>
    %79 = arith.cmpi sgt, %68, %64 : i32
    %c0_i32_19 = arith.constant 0 : i32
    %80 = arith.addi %0, %c0_i32_19 : i32
    %81 = arith.index_cast %80 : i32 to index
    %82 = memref.load %arg1[%81] : memref<128xi32, #tpu.memory_space<smem>>
    %c4_i32 = arith.constant 4 : i32
    %83 = arith.addi %0, %c4_i32 : i32
    %c0_i32_20 = arith.constant 0 : i32
    %84 = arith.addi %83, %c0_i32_20 : i32
    %85 = arith.index_cast %84 : i32 to index
    %86 = memref.load %arg1[%85] : memref<128xi32, #tpu.memory_space<smem>>
    %87 = vector.broadcast %82 : i32 to vector<8x1xi32>
    %88 = arith.cmpi sge, %3, %87 : vector<8x1xi32>
    %89 = vector.broadcast %86 : i32 to vector<8x1xi32>
    %90 = arith.cmpi slt, %3, %89 : vector<8x1xi32>
    %91 = arith.andi %88, %90 : vector<8x1xi1>
    %cst_21 = arith.constant -1.000000e+30 : f32
    %92 = vector.shape_cast %91 : vector<8x1xi1> to vector<8x1xi1>
    %93 = vector.broadcast %92 : vector<8x1xi1> to vector<8x16xi1>
    %94 = vector.broadcast %cst_21 : f32 to vector<8x16xf32>
    %95 = arith.select %93, %21, %94 : vector<8x16xi1>, vector<8x16xf32>
    %cst_22 = arith.constant dense<0xFF800000> : vector<16xf32>
    %96 = vector.multi_reduction <maximumf>, %95, %cst_22 [0] : vector<8x16xf32> to vector<16xf32>
    %97 = vector.shape_cast %96 : vector<16xf32> to vector<1x16xf32>
    %98 = arith.cmpi sgt, %86, %82 : i32
    %99 = arith.andi %98, %22 : i1
    %cst_23 = arith.constant 0.000000e+00 : f32
    %100 = vector.broadcast %cst_23 : f32 to vector<1x16xf32>
    %101 = arith.select %99, %97, %100 : vector<1x16xf32>
    %cst_24 = arith.constant -1.000000e+30 : f32
    %102 = vector.shape_cast %91 : vector<8x1xi1> to vector<8x1xi1>
    %103 = vector.broadcast %102 : vector<8x1xi1> to vector<8x16xi1>
    %104 = vector.broadcast %cst_24 : f32 to vector<8x16xf32>
    %105 = arith.select %103, %40, %104 : vector<8x16xi1>, vector<8x16xf32>
    %cst_25 = arith.constant dense<0xFF800000> : vector<16xf32>
    %106 = vector.multi_reduction <maximumf>, %105, %cst_25 [0] : vector<8x16xf32> to vector<16xf32>
    %107 = vector.shape_cast %106 : vector<16xf32> to vector<1x16xf32>
    %108 = arith.cmpi sgt, %86, %82 : i32
    %109 = arith.andi %108, %41 : i1
    %cst_26 = arith.constant 0.000000e+00 : f32
    %110 = vector.broadcast %cst_26 : f32 to vector<1x16xf32>
    %111 = arith.select %109, %107, %110 : vector<1x16xf32>
    %cst_27 = arith.constant -1.000000e+30 : f32
    %112 = vector.shape_cast %91 : vector<8x1xi1> to vector<8x1xi1>
    %113 = vector.broadcast %112 : vector<8x1xi1> to vector<8x16xi1>
    %114 = vector.broadcast %cst_27 : f32 to vector<8x16xf32>
    %115 = arith.select %113, %59, %114 : vector<8x16xi1>, vector<8x16xf32>
    %cst_28 = arith.constant dense<0xFF800000> : vector<16xf32>
    %116 = vector.multi_reduction <maximumf>, %115, %cst_28 [0] : vector<8x16xf32> to vector<16xf32>
    %117 = vector.shape_cast %116 : vector<16xf32> to vector<1x16xf32>
    %118 = arith.cmpi sgt, %86, %82 : i32
    %119 = arith.andi %118, %60 : i1
    %cst_29 = arith.constant 0.000000e+00 : f32
    %120 = vector.broadcast %cst_29 : f32 to vector<1x16xf32>
    %121 = arith.select %119, %117, %120 : vector<1x16xf32>
    %cst_30 = arith.constant -1.000000e+30 : f32
    %122 = vector.shape_cast %91 : vector<8x1xi1> to vector<8x1xi1>
    %123 = vector.broadcast %122 : vector<8x1xi1> to vector<8x16xi1>
    %124 = vector.broadcast %cst_30 : f32 to vector<8x16xf32>
    %125 = arith.select %123, %78, %124 : vector<8x16xi1>, vector<8x16xf32>
    %cst_31 = arith.constant dense<0xFF800000> : vector<16xf32>
    %126 = vector.multi_reduction <maximumf>, %125, %cst_31 [0] : vector<8x16xf32> to vector<16xf32>
    %127 = vector.shape_cast %126 : vector<16xf32> to vector<1x16xf32>
    %128 = arith.cmpi sgt, %86, %82 : i32
    %129 = arith.andi %128, %79 : i1
    %cst_32 = arith.constant 0.000000e+00 : f32
    %130 = vector.broadcast %cst_32 : f32 to vector<1x16xf32>
    %131 = arith.select %129, %127, %130 : vector<1x16xf32>
    %c1_i32_33 = arith.constant 1 : i32
    %132 = arith.addi %0, %c1_i32_33 : i32
    %133 = arith.index_cast %132 : i32 to index
    %134 = memref.load %arg1[%133] : memref<128xi32, #tpu.memory_space<smem>>
    %c4_i32_34 = arith.constant 4 : i32
    %135 = arith.addi %0, %c4_i32_34 : i32
    %c1_i32_35 = arith.constant 1 : i32
    %136 = arith.addi %135, %c1_i32_35 : i32
    %137 = arith.index_cast %136 : i32 to index
    %138 = memref.load %arg1[%137] : memref<128xi32, #tpu.memory_space<smem>>
    %139 = vector.broadcast %134 : i32 to vector<8x1xi32>
    %140 = arith.cmpi sge, %3, %139 : vector<8x1xi32>
    %141 = vector.broadcast %138 : i32 to vector<8x1xi32>
    %142 = arith.cmpi slt, %3, %141 : vector<8x1xi32>
    %143 = arith.andi %140, %142 : vector<8x1xi1>
    %cst_36 = arith.constant -1.000000e+30 : f32
    %144 = vector.shape_cast %143 : vector<8x1xi1> to vector<8x1xi1>
    %145 = vector.broadcast %144 : vector<8x1xi1> to vector<8x16xi1>
    %146 = vector.broadcast %cst_36 : f32 to vector<8x16xf32>
    %147 = arith.select %145, %21, %146 : vector<8x16xi1>, vector<8x16xf32>
    %cst_37 = arith.constant dense<0xFF800000> : vector<16xf32>
    %148 = vector.multi_reduction <maximumf>, %147, %cst_37 [0] : vector<8x16xf32> to vector<16xf32>
    %149 = vector.shape_cast %148 : vector<16xf32> to vector<1x16xf32>
    %150 = arith.cmpi sgt, %138, %134 : i32
    %151 = arith.andi %150, %22 : i1
    %cst_38 = arith.constant 0.000000e+00 : f32
    %152 = vector.broadcast %cst_38 : f32 to vector<1x16xf32>
    %153 = arith.select %151, %149, %152 : vector<1x16xf32>
    %cst_39 = arith.constant -1.000000e+30 : f32
    %154 = vector.shape_cast %143 : vector<8x1xi1> to vector<8x1xi1>
    %155 = vector.broadcast %154 : vector<8x1xi1> to vector<8x16xi1>
    %156 = vector.broadcast %cst_39 : f32 to vector<8x16xf32>
    %157 = arith.select %155, %40, %156 : vector<8x16xi1>, vector<8x16xf32>
    %cst_40 = arith.constant dense<0xFF800000> : vector<16xf32>
    %158 = vector.multi_reduction <maximumf>, %157, %cst_40 [0] : vector<8x16xf32> to vector<16xf32>
    %159 = vector.shape_cast %158 : vector<16xf32> to vector<1x16xf32>
    %160 = arith.cmpi sgt, %138, %134 : i32
    %161 = arith.andi %160, %41 : i1
    %cst_41 = arith.constant 0.000000e+00 : f32
    %162 = vector.broadcast %cst_41 : f32 to vector<1x16xf32>
    %163 = arith.select %161, %159, %162 : vector<1x16xf32>
    %cst_42 = arith.constant -1.000000e+30 : f32
    %164 = vector.shape_cast %143 : vector<8x1xi1> to vector<8x1xi1>
    %165 = vector.broadcast %164 : vector<8x1xi1> to vector<8x16xi1>
    %166 = vector.broadcast %cst_42 : f32 to vector<8x16xf32>
    %167 = arith.select %165, %59, %166 : vector<8x16xi1>, vector<8x16xf32>
    %cst_43 = arith.constant dense<0xFF800000> : vector<16xf32>
    %168 = vector.multi_reduction <maximumf>, %167, %cst_43 [0] : vector<8x16xf32> to vector<16xf32>
    %169 = vector.shape_cast %168 : vector<16xf32> to vector<1x16xf32>
    %170 = arith.cmpi sgt, %138, %134 : i32
    %171 = arith.andi %170, %60 : i1
    %cst_44 = arith.constant 0.000000e+00 : f32
    %172 = vector.broadcast %cst_44 : f32 to vector<1x16xf32>
    %173 = arith.select %171, %169, %172 : vector<1x16xf32>
    %cst_45 = arith.constant -1.000000e+30 : f32
    %174 = vector.shape_cast %143 : vector<8x1xi1> to vector<8x1xi1>
    %175 = vector.broadcast %174 : vector<8x1xi1> to vector<8x16xi1>
    %176 = vector.broadcast %cst_45 : f32 to vector<8x16xf32>
    %177 = arith.select %175, %78, %176 : vector<8x16xi1>, vector<8x16xf32>
    %cst_46 = arith.constant dense<0xFF800000> : vector<16xf32>
    %178 = vector.multi_reduction <maximumf>, %177, %cst_46 [0] : vector<8x16xf32> to vector<16xf32>
    %179 = vector.shape_cast %178 : vector<16xf32> to vector<1x16xf32>
    %180 = arith.cmpi sgt, %138, %134 : i32
    %181 = arith.andi %180, %79 : i1
    %cst_47 = arith.constant 0.000000e+00 : f32
    %182 = vector.broadcast %cst_47 : f32 to vector<1x16xf32>
    %183 = arith.select %181, %179, %182 : vector<1x16xf32>
    %c2_i32_48 = arith.constant 2 : i32
    %184 = arith.addi %0, %c2_i32_48 : i32
    %185 = arith.index_cast %184 : i32 to index
    %186 = memref.load %arg1[%185] : memref<128xi32, #tpu.memory_space<smem>>
    %c4_i32_49 = arith.constant 4 : i32
    %187 = arith.addi %0, %c4_i32_49 : i32
    %c2_i32_50 = arith.constant 2 : i32
    %188 = arith.addi %187, %c2_i32_50 : i32
    %189 = arith.index_cast %188 : i32 to index
    %190 = memref.load %arg1[%189] : memref<128xi32, #tpu.memory_space<smem>>
    %191 = vector.broadcast %186 : i32 to vector<8x1xi32>
    %192 = arith.cmpi sge, %3, %191 : vector<8x1xi32>
    %193 = vector.broadcast %190 : i32 to vector<8x1xi32>
    %194 = arith.cmpi slt, %3, %193 : vector<8x1xi32>
    %195 = arith.andi %192, %194 : vector<8x1xi1>
    %cst_51 = arith.constant -1.000000e+30 : f32
    %196 = vector.shape_cast %195 : vector<8x1xi1> to vector<8x1xi1>
    %197 = vector.broadcast %196 : vector<8x1xi1> to vector<8x16xi1>
    %198 = vector.broadcast %cst_51 : f32 to vector<8x16xf32>
    %199 = arith.select %197, %21, %198 : vector<8x16xi1>, vector<8x16xf32>
    %cst_52 = arith.constant dense<0xFF800000> : vector<16xf32>
    %200 = vector.multi_reduction <maximumf>, %199, %cst_52 [0] : vector<8x16xf32> to vector<16xf32>
    %201 = vector.shape_cast %200 : vector<16xf32> to vector<1x16xf32>
    %202 = arith.cmpi sgt, %190, %186 : i32
    %203 = arith.andi %202, %22 : i1
    %cst_53 = arith.constant 0.000000e+00 : f32
    %204 = vector.broadcast %cst_53 : f32 to vector<1x16xf32>
    %205 = arith.select %203, %201, %204 : vector<1x16xf32>
    %cst_54 = arith.constant -1.000000e+30 : f32
    %206 = vector.shape_cast %195 : vector<8x1xi1> to vector<8x1xi1>
    %207 = vector.broadcast %206 : vector<8x1xi1> to vector<8x16xi1>
    %208 = vector.broadcast %cst_54 : f32 to vector<8x16xf32>
    %209 = arith.select %207, %40, %208 : vector<8x16xi1>, vector<8x16xf32>
    %cst_55 = arith.constant dense<0xFF800000> : vector<16xf32>
    %210 = vector.multi_reduction <maximumf>, %209, %cst_55 [0] : vector<8x16xf32> to vector<16xf32>
    %211 = vector.shape_cast %210 : vector<16xf32> to vector<1x16xf32>
    %212 = arith.cmpi sgt, %190, %186 : i32
    %213 = arith.andi %212, %41 : i1
    %cst_56 = arith.constant 0.000000e+00 : f32
    %214 = vector.broadcast %cst_56 : f32 to vector<1x16xf32>
    %215 = arith.select %213, %211, %214 : vector<1x16xf32>
    %cst_57 = arith.constant -1.000000e+30 : f32
    %216 = vector.shape_cast %195 : vector<8x1xi1> to vector<8x1xi1>
    %217 = vector.broadcast %216 : vector<8x1xi1> to vector<8x16xi1>
    %218 = vector.broadcast %cst_57 : f32 to vector<8x16xf32>
    %219 = arith.select %217, %59, %218 : vector<8x16xi1>, vector<8x16xf32>
    %cst_58 = arith.constant dense<0xFF800000> : vector<16xf32>
    %220 = vector.multi_reduction <maximumf>, %219, %cst_58 [0] : vector<8x16xf32> to vector<16xf32>
    %221 = vector.shape_cast %220 : vector<16xf32> to vector<1x16xf32>
    %222 = arith.cmpi sgt, %190, %186 : i32
    %223 = arith.andi %222, %60 : i1
    %cst_59 = arith.constant 0.000000e+00 : f32
    %224 = vector.broadcast %cst_59 : f32 to vector<1x16xf32>
    %225 = arith.select %223, %221, %224 : vector<1x16xf32>
    %cst_60 = arith.constant -1.000000e+30 : f32
    %226 = vector.shape_cast %195 : vector<8x1xi1> to vector<8x1xi1>
    %227 = vector.broadcast %226 : vector<8x1xi1> to vector<8x16xi1>
    %228 = vector.broadcast %cst_60 : f32 to vector<8x16xf32>
    %229 = arith.select %227, %78, %228 : vector<8x16xi1>, vector<8x16xf32>
    %cst_61 = arith.constant dense<0xFF800000> : vector<16xf32>
    %230 = vector.multi_reduction <maximumf>, %229, %cst_61 [0] : vector<8x16xf32> to vector<16xf32>
    %231 = vector.shape_cast %230 : vector<16xf32> to vector<1x16xf32>
    %232 = arith.cmpi sgt, %190, %186 : i32
    %233 = arith.andi %232, %79 : i1
    %cst_62 = arith.constant 0.000000e+00 : f32
    %234 = vector.broadcast %cst_62 : f32 to vector<1x16xf32>
    %235 = arith.select %233, %231, %234 : vector<1x16xf32>
    %c3_i32_63 = arith.constant 3 : i32
    %236 = arith.addi %0, %c3_i32_63 : i32
    %237 = arith.index_cast %236 : i32 to index
    %238 = memref.load %arg1[%237] : memref<128xi32, #tpu.memory_space<smem>>
    %c4_i32_64 = arith.constant 4 : i32
    %239 = arith.addi %0, %c4_i32_64 : i32
    %c3_i32_65 = arith.constant 3 : i32
    %240 = arith.addi %239, %c3_i32_65 : i32
    %241 = arith.index_cast %240 : i32 to index
    %242 = memref.load %arg1[%241] : memref<128xi32, #tpu.memory_space<smem>>
    %243 = vector.broadcast %238 : i32 to vector<8x1xi32>
    %244 = arith.cmpi sge, %3, %243 : vector<8x1xi32>
    %245 = vector.broadcast %242 : i32 to vector<8x1xi32>
    %246 = arith.cmpi slt, %3, %245 : vector<8x1xi32>
    %247 = arith.andi %244, %246 : vector<8x1xi1>
    %cst_66 = arith.constant -1.000000e+30 : f32
    %248 = vector.shape_cast %247 : vector<8x1xi1> to vector<8x1xi1>
    %249 = vector.broadcast %248 : vector<8x1xi1> to vector<8x16xi1>
    %250 = vector.broadcast %cst_66 : f32 to vector<8x16xf32>
    %251 = arith.select %249, %21, %250 : vector<8x16xi1>, vector<8x16xf32>
    %cst_67 = arith.constant dense<0xFF800000> : vector<16xf32>
    %252 = vector.multi_reduction <maximumf>, %251, %cst_67 [0] : vector<8x16xf32> to vector<16xf32>
    %253 = vector.shape_cast %252 : vector<16xf32> to vector<1x16xf32>
    %254 = arith.cmpi sgt, %242, %238 : i32
    %255 = arith.andi %254, %22 : i1
    %cst_68 = arith.constant 0.000000e+00 : f32
    %256 = vector.broadcast %cst_68 : f32 to vector<1x16xf32>
    %257 = arith.select %255, %253, %256 : vector<1x16xf32>
    %cst_69 = arith.constant -1.000000e+30 : f32
    %258 = vector.shape_cast %247 : vector<8x1xi1> to vector<8x1xi1>
    %259 = vector.broadcast %258 : vector<8x1xi1> to vector<8x16xi1>
    %260 = vector.broadcast %cst_69 : f32 to vector<8x16xf32>
    %261 = arith.select %259, %40, %260 : vector<8x16xi1>, vector<8x16xf32>
    %cst_70 = arith.constant dense<0xFF800000> : vector<16xf32>
    %262 = vector.multi_reduction <maximumf>, %261, %cst_70 [0] : vector<8x16xf32> to vector<16xf32>
    %263 = vector.shape_cast %262 : vector<16xf32> to vector<1x16xf32>
    %264 = arith.cmpi sgt, %242, %238 : i32
    %265 = arith.andi %264, %41 : i1
    %cst_71 = arith.constant 0.000000e+00 : f32
    %266 = vector.broadcast %cst_71 : f32 to vector<1x16xf32>
    %267 = arith.select %265, %263, %266 : vector<1x16xf32>
    %cst_72 = arith.constant -1.000000e+30 : f32
    %268 = vector.shape_cast %247 : vector<8x1xi1> to vector<8x1xi1>
    %269 = vector.broadcast %268 : vector<8x1xi1> to vector<8x16xi1>
    %270 = vector.broadcast %cst_72 : f32 to vector<8x16xf32>
    %271 = arith.select %269, %59, %270 : vector<8x16xi1>, vector<8x16xf32>
    %cst_73 = arith.constant dense<0xFF800000> : vector<16xf32>
    %272 = vector.multi_reduction <maximumf>, %271, %cst_73 [0] : vector<8x16xf32> to vector<16xf32>
    %273 = vector.shape_cast %272 : vector<16xf32> to vector<1x16xf32>
    %274 = arith.cmpi sgt, %242, %238 : i32
    %275 = arith.andi %274, %60 : i1
    %cst_74 = arith.constant 0.000000e+00 : f32
    %276 = vector.broadcast %cst_74 : f32 to vector<1x16xf32>
    %277 = arith.select %275, %273, %276 : vector<1x16xf32>
    %cst_75 = arith.constant -1.000000e+30 : f32
    %278 = vector.shape_cast %247 : vector<8x1xi1> to vector<8x1xi1>
    %279 = vector.broadcast %278 : vector<8x1xi1> to vector<8x16xi1>
    %280 = vector.broadcast %cst_75 : f32 to vector<8x16xf32>
    %281 = arith.select %279, %78, %280 : vector<8x16xi1>, vector<8x16xf32>
    %cst_76 = arith.constant dense<0xFF800000> : vector<16xf32>
    %282 = vector.multi_reduction <maximumf>, %281, %cst_76 [0] : vector<8x16xf32> to vector<16xf32>
    %283 = vector.shape_cast %282 : vector<16xf32> to vector<1x16xf32>
    %284 = arith.cmpi sgt, %242, %238 : i32
    %285 = arith.andi %284, %79 : i1
    %cst_77 = arith.constant 0.000000e+00 : f32
    %286 = vector.broadcast %cst_77 : f32 to vector<1x16xf32>
    %287 = arith.select %285, %283, %286 : vector<1x16xf32>
    %288 = tpu.concatenate %101, %111, %121, %131, %153, %163, %173, %183, %205, %215, %225, %235, %257, %267, %277, %287 in 1 : vector<1x16xf32>, vector<1x16xf32>, vector<1x16xf32>, vector<1x16xf32>, vector<1x16xf32>, vector<1x16xf32>, vector<1x16xf32>, vector<1x16xf32>, vector<1x16xf32>, vector<1x16xf32>, vector<1x16xf32>, vector<1x16xf32>, vector<1x16xf32>, vector<1x16xf32>, vector<1x16xf32>, vector<1x16xf32> -> vector<1x256xf32>
    %289 = vector.shape_cast %288 : vector<1x256xf32> to vector<1x1x256xf32>
    %c0_78 = arith.constant 0 : index
    %c0_79 = arith.constant 0 : index
    %c0_80 = arith.constant 0 : index
    %290 = vector.load %arg3[%c0_78, %c0_79, %c0_80] : memref<1x1x256xf32, #tpu.memory_space<vmem>>, vector<1x1x256xf32>
    tpu.vector_store %arg3[%c0_78, %c0_79, %c0_80], %289 {strides = array<i32>} : memref<1x1x256xf32, #tpu.memory_space<vmem>>, vector<1x1x256xf32>,
    return
  }
  func.func @transform_0(%arg0: i32, %arg1: memref<128xi32, #tpu.memory_space<smem>>) -> (i32, i32, i32) {
    %c0_i32 = arith.constant 0 : i32
    %c0_i32_0 = arith.constant 0 : i32
    %c0_i32_1 = arith.constant 0 : i32
    %c0_i32_2 = arith.constant 0 : i32
    return %c0_i32, %c0_i32_0, %c0_i32_1 : i32, i32, i32
  }
  func.func @transform_1(%arg0: i32, %arg1: memref<128xi32, #tpu.memory_space<smem>>) -> (i32, i32, i32) {
    %c0_i32 = arith.constant 0 : i32
    %c0_i32_0 = arith.constant 0 : i32
    %c0_i32_1 = arith.constant 0 : i32
    return %arg0, %c0_i32, %c0_i32_0 : i32, i32, i32
  }
}

module attributes {stable_mosaic.version = 11 : i64} {
  func.func @_box_head_kernel(%arg0: i32, %arg1: memref<8x256xf32, #tpu.memory_space<vmem>>, %arg2: memref<256x64xbf16, #tpu.memory_space<vmem>>, %arg3: memref<1x64xf32, #tpu.memory_space<vmem>>, %arg4: memref<64x64xbf16, #tpu.memory_space<vmem>>, %arg5: memref<1x64xf32, #tpu.memory_space<vmem>>, %arg6: memref<64x1024xbf16, #tpu.memory_space<vmem>>, %arg7: memref<1x1024xf32, #tpu.memory_space<vmem>>, %arg8: memref<2x1024xf32, #tpu.memory_space<vmem>>, %arg9: memref<8x768xf32, #tpu.memory_space<vmem>>) attributes {dimension_semantics = [#tpu.dimension_semantics<arbitrary>], iteration_bounds = array<i64: 1>, scalar_prefetch = 0 : i64, scratch_operands = 0 : i64, tpu.core_type = #tpu.core_type<tc>, window_params = [{pipeline_mode = #tpu.pipeline_mode<synchronous>, transform_indices = @transform_0, window_bounds = array<i64: 8, 256>}, {pipeline_mode = #tpu.pipeline_mode<synchronous>, transform_indices = @transform_1, window_bounds = array<i64: 256, 64>}, {pipeline_mode = #tpu.pipeline_mode<synchronous>, transform_indices = @transform_2, window_bounds = array<i64: 1, 64>}, {pipeline_mode = #tpu.pipeline_mode<synchronous>, transform_indices = @transform_3, window_bounds = array<i64: 64, 64>}, {pipeline_mode = #tpu.pipeline_mode<synchronous>, transform_indices = @transform_4, window_bounds = array<i64: 1, 64>}, {pipeline_mode = #tpu.pipeline_mode<synchronous>, transform_indices = @transform_5, window_bounds = array<i64: 64, 1024>}, {pipeline_mode = #tpu.pipeline_mode<synchronous>, transform_indices = @transform_6, window_bounds = array<i64: 1, 1024>}, {pipeline_mode = #tpu.pipeline_mode<synchronous>, transform_indices = @transform_7, window_bounds = array<i64: 2, 1024>}, {pipeline_mode = #tpu.pipeline_mode<synchronous>, transform_indices = @transform_8, window_bounds = array<i64: 8, 768>}]} {
    %c0 = arith.constant 0 : index
    %c0_0 = arith.constant 0 : index
    %0 = vector.load %arg1[%c0, %c0_0] : memref<8x256xf32, #tpu.memory_space<vmem>>, vector<8x256xf32>
    %1 = arith.truncf %0 : vector<8x256xf32> to vector<8x256xbf16>
    %c0_1 = arith.constant 0 : index
    %c0_2 = arith.constant 0 : index
    %2 = vector.load %arg2[%c0_1, %c0_2] : memref<256x64xbf16, #tpu.memory_space<vmem>>, vector<256x64xbf16>
    %cst = arith.constant dense<0.000000e+00> : vector<8x64xf32>
    %3 = tpu.matmul %1, %2, %cst {dimension_numbers = #tpu.dot_dimension_numbers<[1], [0], [0], [1], [0, 0, 1, 1], [], []>} : vector<8x256xbf16>, vector<256x64xbf16>, vector<8x64xf32> -> vector<8x64xf32>
    %c0_3 = arith.constant 0 : index
    %c0_4 = arith.constant 0 : index
    %4 = vector.load %arg3[%c0_3, %c0_4] : memref<1x64xf32, #tpu.memory_space<vmem>>, vector<1x64xf32>
    %5 = vector.broadcast %4 : vector<1x64xf32> to vector<8x64xf32>
    %6 = arith.addf %3, %5 : vector<8x64xf32>
    %cst_5 = arith.constant 0.000000e+00 : f32
    %7 = vector.broadcast %cst_5 : f32 to vector<8x64xf32>
    %8 = arith.maximumf %6, %7 : vector<8x64xf32>
    %9 = arith.truncf %8 : vector<8x64xf32> to vector<8x64xbf16>
    %c0_6 = arith.constant 0 : index
    %c0_7 = arith.constant 0 : index
    %10 = vector.load %arg4[%c0_6, %c0_7] : memref<64x64xbf16, #tpu.memory_space<vmem>>, vector<64x64xbf16>
    %cst_8 = arith.constant dense<0.000000e+00> : vector<8x64xf32>
    %11 = tpu.matmul %9, %10, %cst_8 {dimension_numbers = #tpu.dot_dimension_numbers<[1], [0], [0], [1], [0, 0, 1, 1], [], []>} : vector<8x64xbf16>, vector<64x64xbf16>, vector<8x64xf32> -> vector<8x64xf32>
    %c0_9 = arith.constant 0 : index
    %c0_10 = arith.constant 0 : index
    %12 = vector.load %arg5[%c0_9, %c0_10] : memref<1x64xf32, #tpu.memory_space<vmem>>, vector<1x64xf32>
    %13 = vector.broadcast %12 : vector<1x64xf32> to vector<8x64xf32>
    %14 = arith.addf %11, %13 : vector<8x64xf32>
    %cst_11 = arith.constant 0.000000e+00 : f32
    %15 = vector.broadcast %cst_11 : f32 to vector<8x64xf32>
    %16 = arith.maximumf %14, %15 : vector<8x64xf32>
    %17 = arith.truncf %16 : vector<8x64xf32> to vector<8x64xbf16>
    %c0_12 = arith.constant 0 : index
    %c0_13 = arith.constant 0 : index
    %18 = vector.load %arg6[%c0_12, %c0_13] : memref<64x1024xbf16, #tpu.memory_space<vmem>>, vector<64x1024xbf16>
    %cst_14 = arith.constant dense<0.000000e+00> : vector<8x1024xf32>
    %19 = tpu.matmul %17, %18, %cst_14 {dimension_numbers = #tpu.dot_dimension_numbers<[1], [0], [0], [1], [0, 0, 1, 1], [], []>} : vector<8x64xbf16>, vector<64x1024xbf16>, vector<8x1024xf32> -> vector<8x1024xf32>
    %c0_15 = arith.constant 0 : index
    %c0_16 = arith.constant 0 : index
    %20 = vector.load %arg7[%c0_15, %c0_16] : memref<1x1024xf32, #tpu.memory_space<vmem>>, vector<1x1024xf32>
    %21 = vector.broadcast %20 : vector<1x1024xf32> to vector<8x1024xf32>
    %22 = arith.addf %19, %21 : vector<8x1024xf32>
    %c0_17 = arith.constant 0 : index
    %c0_18 = arith.constant 0 : index
    %23 = vector.load %arg8[%c0_17, %c0_18] : memref<2x1024xf32, #tpu.memory_space<vmem>>, vector<2x1024xf32>
    %24 = vector.extract_strided_slice %23 {offsets = [0, 0], sizes = [1, 1024], strides = [1, 1]} : vector<2x1024xf32> to vector<1x1024xf32>
    %25 = vector.broadcast %24 : vector<1x1024xf32> to vector<8x1024xf32>
    %26 = arith.mulf %22, %25 : vector<8x1024xf32>
    %27 = vector.extract_strided_slice %23 {offsets = [1, 0], sizes = [1, 1024], strides = [1, 1]} : vector<2x1024xf32> to vector<1x1024xf32>
    %28 = vector.broadcast %27 : vector<1x1024xf32> to vector<8x1024xf32>
    %29 = arith.addf %26, %28 : vector<8x1024xf32>
    %30 = tpu.iota {dimensions = array<i32: 1>} : vector<8x128xi32>
    %31 = vector.extract_strided_slice %29 {offsets = [0, 0], sizes = [8, 128], strides = [1, 1]} : vector<8x1024xf32> to vector<8x128xf32>
    %c20_i32 = arith.constant 20 : i32
    %32 = vector.broadcast %c20_i32 : i32 to vector<8x128xi32>
    %33 = arith.cmpi slt, %30, %32 : vector<8x128xi32>
    %cst_19 = arith.constant -1.000000e+30 : f32
    %34 = vector.broadcast %cst_19 : f32 to vector<8x128xf32>
    %35 = arith.select %33, %31, %34 : vector<8x128xi1>, vector<8x128xf32>
    %cst_20 = arith.constant dense<0xFF800000> : vector<8xf32>
    %36 = vector.multi_reduction <maximumf>, %35, %cst_20 [1] : vector<8x128xf32> to vector<8xf32>
    %37 = vector.shape_cast %36 : vector<8xf32> to vector<8x1xf32>
    %38 = vector.broadcast %37 : vector<8x1xf32> to vector<8x128xf32>
    %39 = arith.subf %35, %38 : vector<8x128xf32>
    %40 = math.exp %39 : vector<8x128xf32>
    %cst_21 = arith.constant dense<0.000000e+00> : vector<8xf32>
    %41 = vector.multi_reduction <add>, %40, %cst_21 [1] : vector<8x128xf32> to vector<8xf32>
    %42 = vector.shape_cast %41 : vector<8xf32> to vector<8x1xf32>
    %43 = vector.broadcast %42 : vector<8x1xf32> to vector<8x128xf32>
    %44 = arith.divf %40, %43 : vector<8x128xf32>
    %45 = vector.extract_strided_slice %29 {offsets = [0, 128], sizes = [8, 128], strides = [1, 1]} : vector<8x1024xf32> to vector<8x128xf32>
    %cst_22 = arith.constant dense<0xFF800000> : vector<128xf32>
    %46 = vector.multi_reduction <maximumf>, %45, %cst_22 [0] : vector<8x128xf32> to vector<128xf32>
    %47 = vector.shape_cast %46 : vector<128xf32> to vector<1x128xf32>
    %48 = vector.broadcast %47 : vector<1x128xf32> to vector<8x128xf32>
    %49 = arith.subf %45, %48 : vector<8x128xf32>
    %50 = math.exp %49 : vector<8x128xf32>
    %cst_23 = arith.constant dense<0.000000e+00> : vector<128xf32>
    %51 = vector.multi_reduction <add>, %50, %cst_23 [0] : vector<8x128xf32> to vector<128xf32>
    %52 = vector.shape_cast %51 : vector<128xf32> to vector<1x128xf32>
    %53 = vector.broadcast %52 : vector<1x128xf32> to vector<8x128xf32>
    %54 = arith.divf %50, %53 : vector<8x128xf32>
    %55 = arith.mulf %44, %54 : vector<8x128xf32>
    %c0_24 = arith.constant 0 : index
    %c0_25 = arith.constant 0 : index
    %56 = vector.load %arg9[%c0_24, %c0_25] : memref<8x768xf32, #tpu.memory_space<vmem>>, vector<8x128xf32>
    tpu.vector_store %arg9[%c0_24, %c0_25], %55 {strides = array<i32>} : memref<8x768xf32, #tpu.memory_space<vmem>>, vector<8x128xf32>,
    %57 = vector.extract_strided_slice %29 {offsets = [0, 896], sizes = [8, 1], strides = [1, 1]} : vector<8x1024xf32> to vector<8x1xf32>
    %cst_26 = arith.constant 0.000000e+00 : f32
    %58 = vector.broadcast %cst_26 : f32 to vector<8x1xf32>
    %59 = arith.subf %58, %57 : vector<8x1xf32>
    %60 = math.exp %59 : vector<8x1xf32>
    %cst_27 = arith.constant 1.000000e+00 : f32
    %61 = vector.broadcast %cst_27 : f32 to vector<8x1xf32>
    %62 = arith.addf %61, %60 : vector<8x1xf32>
    %cst_28 = arith.constant 1.000000e+00 : f32
    %63 = vector.broadcast %cst_28 : f32 to vector<8x1xf32>
    %64 = arith.divf %63, %62 : vector<8x1xf32>
    %65 = vector.extract_strided_slice %29 {offsets = [0, 256], sizes = [8, 128], strides = [1, 1]} : vector<8x1024xf32> to vector<8x128xf32>
    %c21_i32 = arith.constant 21 : i32
    %66 = vector.broadcast %c21_i32 : i32 to vector<8x128xi32>
    %67 = arith.cmpi slt, %30, %66 : vector<8x128xi32>
    %cst_29 = arith.constant -1.000000e+30 : f32
    %68 = vector.broadcast %cst_29 : f32 to vector<8x128xf32>
    %69 = arith.select %67, %65, %68 : vector<8x128xi1>, vector<8x128xf32>
    %cst_30 = arith.constant dense<0xFF800000> : vector<8xf32>
    %70 = vector.multi_reduction <maximumf>, %69, %cst_30 [1] : vector<8x128xf32> to vector<8xf32>
    %71 = vector.shape_cast %70 : vector<8xf32> to vector<8x1xf32>
    %72 = vector.broadcast %71 : vector<8x1xf32> to vector<8x128xf32>
    %73 = arith.subf %69, %72 : vector<8x128xf32>
    %74 = math.exp %73 : vector<8x128xf32>
    %cst_31 = arith.constant dense<0.000000e+00> : vector<8xf32>
    %75 = vector.multi_reduction <add>, %74, %cst_31 [1] : vector<8x128xf32> to vector<8xf32>
    %76 = vector.shape_cast %75 : vector<8xf32> to vector<8x1xf32>
    %77 = vector.broadcast %76 : vector<8x1xf32> to vector<8x128xf32>
    %78 = arith.divf %74, %77 : vector<8x128xf32>
    %79 = vector.broadcast %64 : vector<8x1xf32> to vector<8x128xf32>
    %80 = arith.mulf %78, %79 : vector<8x128xf32>
    %c0_32 = arith.constant 0 : index
    %c128 = arith.constant 128 : index
    %81 = vector.load %arg9[%c0_32, %c128] : memref<8x768xf32, #tpu.memory_space<vmem>>, vector<8x128xf32>
    tpu.vector_store %arg9[%c0_32, %c128], %80 {strides = array<i32>} : memref<8x768xf32, #tpu.memory_space<vmem>>, vector<8x128xf32>,
    %82 = vector.extract_strided_slice %29 {offsets = [0, 384], sizes = [8, 128], strides = [1, 1]} : vector<8x1024xf32> to vector<8x128xf32>
    %c21_i32_33 = arith.constant 21 : i32
    %83 = vector.broadcast %c21_i32_33 : i32 to vector<8x128xi32>
    %84 = arith.cmpi slt, %30, %83 : vector<8x128xi32>
    %cst_34 = arith.constant -1.000000e+30 : f32
    %85 = vector.broadcast %cst_34 : f32 to vector<8x128xf32>
    %86 = arith.select %84, %82, %85 : vector<8x128xi1>, vector<8x128xf32>
    %cst_35 = arith.constant dense<0xFF800000> : vector<8xf32>
    %87 = vector.multi_reduction <maximumf>, %86, %cst_35 [1] : vector<8x128xf32> to vector<8xf32>
    %88 = vector.shape_cast %87 : vector<8xf32> to vector<8x1xf32>
    %89 = vector.broadcast %88 : vector<8x1xf32> to vector<8x128xf32>
    %90 = arith.subf %86, %89 : vector<8x128xf32>
    %91 = math.exp %90 : vector<8x128xf32>
    %cst_36 = arith.constant dense<0.000000e+00> : vector<8xf32>
    %92 = vector.multi_reduction <add>, %91, %cst_36 [1] : vector<8x128xf32> to vector<8xf32>
    %93 = vector.shape_cast %92 : vector<8xf32> to vector<8x1xf32>
    %94 = vector.broadcast %93 : vector<8x1xf32> to vector<8x128xf32>
    %95 = arith.divf %91, %94 : vector<8x128xf32>
    %96 = vector.broadcast %64 : vector<8x1xf32> to vector<8x128xf32>
    %97 = arith.mulf %95, %96 : vector<8x128xf32>
    %c0_37 = arith.constant 0 : index
    %c256 = arith.constant 256 : index
    %98 = vector.load %arg9[%c0_37, %c256] : memref<8x768xf32, #tpu.memory_space<vmem>>, vector<8x128xf32>
    tpu.vector_store %arg9[%c0_37, %c256], %97 {strides = array<i32>} : memref<8x768xf32, #tpu.memory_space<vmem>>, vector<8x128xf32>,
    %99 = vector.extract_strided_slice %29 {offsets = [0, 512], sizes = [8, 128], strides = [1, 1]} : vector<8x1024xf32> to vector<8x128xf32>
    %c21_i32_38 = arith.constant 21 : i32
    %100 = vector.broadcast %c21_i32_38 : i32 to vector<8x128xi32>
    %101 = arith.cmpi slt, %30, %100 : vector<8x128xi32>
    %cst_39 = arith.constant -1.000000e+30 : f32
    %102 = vector.broadcast %cst_39 : f32 to vector<8x128xf32>
    %103 = arith.select %101, %99, %102 : vector<8x128xi1>, vector<8x128xf32>
    %cst_40 = arith.constant dense<0xFF800000> : vector<8xf32>
    %104 = vector.multi_reduction <maximumf>, %103, %cst_40 [1] : vector<8x128xf32> to vector<8xf32>
    %105 = vector.shape_cast %104 : vector<8xf32> to vector<8x1xf32>
    %106 = vector.broadcast %105 : vector<8x1xf32> to vector<8x128xf32>
    %107 = arith.subf %103, %106 : vector<8x128xf32>
    %108 = math.exp %107 : vector<8x128xf32>
    %cst_41 = arith.constant dense<0.000000e+00> : vector<8xf32>
    %109 = vector.multi_reduction <add>, %108, %cst_41 [1] : vector<8x128xf32> to vector<8xf32>
    %110 = vector.shape_cast %109 : vector<8xf32> to vector<8x1xf32>
    %111 = vector.broadcast %110 : vector<8x1xf32> to vector<8x128xf32>
    %112 = arith.divf %108, %111 : vector<8x128xf32>
    %113 = vector.broadcast %64 : vector<8x1xf32> to vector<8x128xf32>
    %114 = arith.mulf %112, %113 : vector<8x128xf32>
    %c0_42 = arith.constant 0 : index
    %c384 = arith.constant 384 : index
    %115 = vector.load %arg9[%c0_42, %c384] : memref<8x768xf32, #tpu.memory_space<vmem>>, vector<8x128xf32>
    tpu.vector_store %arg9[%c0_42, %c384], %114 {strides = array<i32>} : memref<8x768xf32, #tpu.memory_space<vmem>>, vector<8x128xf32>,
    %116 = vector.extract_strided_slice %29 {offsets = [0, 640], sizes = [8, 128], strides = [1, 1]} : vector<8x1024xf32> to vector<8x128xf32>
    %c21_i32_43 = arith.constant 21 : i32
    %117 = vector.broadcast %c21_i32_43 : i32 to vector<8x128xi32>
    %118 = arith.cmpi slt, %30, %117 : vector<8x128xi32>
    %cst_44 = arith.constant -1.000000e+30 : f32
    %119 = vector.broadcast %cst_44 : f32 to vector<8x128xf32>
    %120 = arith.select %118, %116, %119 : vector<8x128xi1>, vector<8x128xf32>
    %cst_45 = arith.constant dense<0xFF800000> : vector<8xf32>
    %121 = vector.multi_reduction <maximumf>, %120, %cst_45 [1] : vector<8x128xf32> to vector<8xf32>
    %122 = vector.shape_cast %121 : vector<8xf32> to vector<8x1xf32>
    %123 = vector.broadcast %122 : vector<8x1xf32> to vector<8x128xf32>
    %124 = arith.subf %120, %123 : vector<8x128xf32>
    %125 = math.exp %124 : vector<8x128xf32>
    %cst_46 = arith.constant dense<0.000000e+00> : vector<8xf32>
    %126 = vector.multi_reduction <add>, %125, %cst_46 [1] : vector<8x128xf32> to vector<8xf32>
    %127 = vector.shape_cast %126 : vector<8xf32> to vector<8x1xf32>
    %128 = vector.broadcast %127 : vector<8x1xf32> to vector<8x128xf32>
    %129 = arith.divf %125, %128 : vector<8x128xf32>
    %130 = vector.broadcast %64 : vector<8x1xf32> to vector<8x128xf32>
    %131 = arith.mulf %129, %130 : vector<8x128xf32>
    %c0_47 = arith.constant 0 : index
    %c512 = arith.constant 512 : index
    %132 = vector.load %arg9[%c0_47, %c512] : memref<8x768xf32, #tpu.memory_space<vmem>>, vector<8x128xf32>
    tpu.vector_store %arg9[%c0_47, %c512], %131 {strides = array<i32>} : memref<8x768xf32, #tpu.memory_space<vmem>>, vector<8x128xf32>,
    %133 = vector.extract_strided_slice %29 {offsets = [0, 768], sizes = [8, 128], strides = [1, 1]} : vector<8x1024xf32> to vector<8x128xf32>
    %c0_48 = arith.constant 0 : index
    %c640 = arith.constant 640 : index
    %134 = vector.load %arg9[%c0_48, %c640] : memref<8x768xf32, #tpu.memory_space<vmem>>, vector<8x128xf32>
    tpu.vector_store %arg9[%c0_48, %c640], %133 {strides = array<i32>} : memref<8x768xf32, #tpu.memory_space<vmem>>, vector<8x128xf32>,
    return
  }
  func.func @transform_0(%arg0: i32) -> (i32, i32) {
    %c0_i32 = arith.constant 0 : i32
    %c0_i32_0 = arith.constant 0 : i32
    %c0_i32_1 = arith.constant 0 : i32
    return %c0_i32, %c0_i32_0 : i32, i32
  }
  func.func @transform_1(%arg0: i32) -> (i32, i32) {
    %c0_i32 = arith.constant 0 : i32
    %c0_i32_0 = arith.constant 0 : i32
    %c0_i32_1 = arith.constant 0 : i32
    return %c0_i32, %c0_i32_0 : i32, i32
  }
  func.func @transform_2(%arg0: i32) -> (i32, i32) {
    %c0_i32 = arith.constant 0 : i32
    %c0_i32_0 = arith.constant 0 : i32
    %c0_i32_1 = arith.constant 0 : i32
    return %c0_i32, %c0_i32_0 : i32, i32
  }
  func.func @transform_3(%arg0: i32) -> (i32, i32) {
    %c0_i32 = arith.constant 0 : i32
    %c0_i32_0 = arith.constant 0 : i32
    %c0_i32_1 = arith.constant 0 : i32
    return %c0_i32, %c0_i32_0 : i32, i32
  }
  func.func @transform_4(%arg0: i32) -> (i32, i32) {
    %c0_i32 = arith.constant 0 : i32
    %c0_i32_0 = arith.constant 0 : i32
    %c0_i32_1 = arith.constant 0 : i32
    return %c0_i32, %c0_i32_0 : i32, i32
  }
  func.func @transform_5(%arg0: i32) -> (i32, i32) {
    %c0_i32 = arith.constant 0 : i32
    %c0_i32_0 = arith.constant 0 : i32
    %c0_i32_1 = arith.constant 0 : i32
    return %c0_i32, %c0_i32_0 : i32, i32
  }
  func.func @transform_6(%arg0: i32) -> (i32, i32) {
    %c0_i32 = arith.constant 0 : i32
    %c0_i32_0 = arith.constant 0 : i32
    %c0_i32_1 = arith.constant 0 : i32
    return %c0_i32, %c0_i32_0 : i32, i32
  }
  func.func @transform_7(%arg0: i32) -> (i32, i32) {
    %c0_i32 = arith.constant 0 : i32
    %c0_i32_0 = arith.constant 0 : i32
    %c0_i32_1 = arith.constant 0 : i32
    return %c0_i32, %c0_i32_0 : i32, i32
  }
  func.func @transform_8(%arg0: i32) -> (i32, i32) {
    %c0_i32 = arith.constant 0 : i32
    %c0_i32_0 = arith.constant 0 : i32
    %c0_i32_1 = arith.constant 0 : i32
    return %c0_i32, %c0_i32_0 : i32, i32
  }
}

</mosaic_0001>

<bundles_post_ra>
// kernel: generalized_rcnn_forward.4
= control target key start
LH: loop header
LB: loop body
LE: loop exit
PB: predicated region body
PF: predicated region fallthrough
CT: control target
= control target key end

     0   :  { %s2814_s12 = smov 0   ;;  %s3789_s0 = inlined_call_operand.vmem [shape: f32[1440,3], index: 0, kind: input, shape index: {}]   ;;  %s3790_s1 = inlined_call_operand.vmem [shape: bf16[9,3,8], index: 1, kind: input, shape index: {}]   ;;  %s3791_s2 = inlined_call_operand.vmem [shape: f32[1,8], index: 2, kind: input, shape index: {}]   ;;  %s3792_s3 = inlined_call_operand.vmem [shape: f32[1280,8], index: 3, kind: output, shape index: {}]  }
   0x1 LB: > { %s2151_s13 = sadd.s32 4294967295, %s2791_s12   ;;  %p2154_p0 = scmp.ge.s32.totalorder %s2791_s12, 1  ;;  %s2791_s12 = sphi %s2814_s12, %s13_s12  }
   0x2   : > { %p127_p1 = scmp.lt.s32.totalorder %s2791_s12, 9 }
   0x4   : > { %p128_p2 = pnand %p2154_p0, %p127_p1 }
   0x6   : > { %131 = sbr.rel (%p128_p2) target bundleno = 420 (0x1a4), region = 32 }
   0xd   : > { %v2176_v0 = vld [vmem:[%s3790_s1 + $0x2] sm:$0x3]  ;;  %vm314_vm0 = vcmask 1040384   ;;  %vm315_vm1 = vcmask 1041408   ;;  %s2124_s16 = smul.u32 160, %s2151_s13  ;;  %v196_v1 = vlaneseq  ;;  %v2793_v2 = vmov 65535  }
   0xe   : > { %v316_v3 = vsel %vm314_vm0, 4294967295, %v2793_v2  ;;  %v2239_v4 = vld [vmem:[%s3790_s1 + $0x8] sm:$0x3]  ;;  %v2250_v5 = vld [vmem:[%s3790_s1 + $0xa] sm:$0x3]  ;;  %vm283_vm2 = vcmask 23552  }
   0xf   : > { %v2833_v6 = vsel %vm315_vm1, %v316_v3, 0  ;;  %s2838_s23 = scalar_lea.vmem %s3789_s0, %s2124_s16  ;;  %v260_v7 = vld [vmem:[%s3790_s1] sm:$0x3]  ;;  %v2860_v15 = vshrl.u32 %v196_v1, 7  ;;  %v2281_v42 = vld [vmem:[%s3790_s1 + $0xc] sm:$0x3] }
  0x10   : > { %v319_v8 = vand.u32 %v2176_v0, %v2833_v6  ;;  %v2845_v9 = vand.u32 %v2239_v4, %v2833_v6  ;;  %v2848_v10 = vld [vmem:[%s2838_s23 + $0x28] sm:$0xff]  ;;  %v2851_v11 = vld [vmem:[%s2838_s23 + $0x30] sm:$0xff]  ;;  %v1259_v13 = vand.u32 %v2250_v5, %v2833_v6  ;;  %v2858_v14 = vld [vmem:[%s2838_s23 + $0x58] sm:$0xff]  ;;  %v465_v16 = vand.u32 %v2833_v6, %v260_v7  ;;  %s146_s9 = smul.u32 20, %s2151_s13 }
  0x11   : > { %v2854_v12 = vld [vmem:[%s2838_s23 + $0x50] sm:$0xff]  ;;  %v273_v17 = vpack.c.bf16 %v2851_v11, %v2848_v10  ;;  %v2867_v18 = vld [vmem:[%s2838_s23 + $0x38] sm:$0xff]  ;;  %v2870_v19 = vld [vmem:[%s2838_s23 + $0x40] sm:$0xff]  ;;  %vm239_vm3 = vcmp.lt.s32.totalorder %v2860_v15, 7  ;;  %v821_v45 = vrot.slane %v2858_v14, 1  ;;  %v2951_v47 = vand.u32 %v2281_v42, %v2833_v6 }
  0x12   : > { %3823 = vst [vmem:[#allocation2_spill] sm:$0xff] %v2845_v9  ;;  %2416 = vmatprep.subr.bf16.mxu1 %v319_v8  ;;  %2504 = vmatprep.subr.bf16.mxu0 %v2845_v9  ;;  %v1040_v20 = vpack.c.bf16 %v2858_v14, %v2854_v12  ;;  %v3797_v21 = vrot.slane %v2867_v18, 1  ;;  %v222_v22 = vrot.slane %v2870_v19, 1  ;;  %v2879_v23 = vld [vmem:[%s2838_s23 + $0x60] sm:$0xff]  ;;  %v2882_v24 = vld [vmem:[%s2838_s23 + $0x68] sm:$0xff]  ;;  %v274_v25 = vpack.c.bf16 %v2870_v19, %v2867_v18  ;;  %v2902_v30 = vld [vmem:[%s2838_s23 + $0x70] sm:$0xff] }
  0x13   : > { %2417 = vmatpush3.bf16.msra.mxu1 %v319_v8  ;;  %2505 = vmatpush3.bf16.msra.mxu0 %v2845_v9  ;;  %v2889_v26 = vld [vmem:[%s2838_s23 + $0x48] sm:$0xff]  ;;  %v1041_v28 = vpack.c.bf16 %v2882_v24, %v2879_v23  ;;  %v2905_v31 = vld [vmem:[%s2838_s23 + $0x78] sm:$0xff]  ;;  %v2920_v35 = vld [vmem:[%s2838_s23 + $0x80] sm:$0xff]  ;;  %v276_v37 = vpack.c.bf16 %v2879_v23, %v2858_v14  ;;  %v277_v40 = vpack.c.bf16 %v2902_v30, %v2882_v24  ;;  %v2944_v44 = vrot.slane %v2854_v12, 1  ;;  %p147_p3 = scmp.lt.s32.totalorder %s146_s9, 159 }
  0x14   : > { %2418 = vmatprep.mubr.msk.bf16.mxu1 %vm283_vm2, %v273_v17  ;;  %2526 = vmatprep.subr.bf16.mxu0 %v1259_v13  ;;  %3824 = vst [vmem:[#allocation3_spill] sm:$0xff] %v2889_v26  ;;  %v2895_v27 = vsel %vm239_vm3, %v3797_v21, %v222_v22  ;;  %v3793_v29 = vrot.slane %v2889_v26, 1  ;;  %v275_v32 = vpack.c.bf16 %v2854_v12, %v2889_v26  ;;  %v2923_v36 = vld [vmem:[%s2838_s23 + $0x88] sm:$0xff]  ;;  %v2928_v38 = vld [vmem:[%s2838_s23 + $0x90] sm:$0xff]  ;;  %v2931_v39 = vld [vmem:[%s2838_s23 + $0x98] sm:$0xff]  ;;  %v822_v46 = vrot.slane %v2879_v23, 1 }
  0x15   : > { %2506 = vmatprep.mubr.msk.bf16.mxu0 %vm283_vm2, %v1040_v20  ;;  %2438 = vmatprep.subr.bf16.mxu1 %v465_v16  ;;  %3825 = vst [vmem:[#allocation4_spill] sm:$0xff] %v2895_v27  ;;  %v1042_v34 = vpack.c.bf16 %v2905_v31, %v2902_v30  ;;  %v1043_v41 = vpack.c.bf16 %v2923_v36, %v2920_v35  ;;  %v2956_v48 = vld [vmem:[%s2838_s23 + $0xa0] sm:$0xff]  ;;  %v2959_v49 = vld [vmem:[%s2838_s23 + $0xa8] sm:$0xff]  ;;  %v177_v53 = vrot.slane %v2851_v11, 7  ;;  %v3795_v54 = vrot.slane %v2858_v14, 7  ;;  %v3031_v20 = vld [vmem:[%s2838_s23 + $0xb0] sm:$0xff] }
  0x16   : > { %2419 = vmatmul.mubr.msk.bf16.vlgmr.msra.gmra.mrb[0].mxu1 %vm283_vm2, %v274_v25  ;;  %2507 = vmatmul.mubr.msk.bf16.vlgmr.msra.gmra.mrb[0].mxu0 %vm283_vm2, %v1041_v28  ;;  %v2914_v33 = vsel %vm239_vm3, %v222_v22, %v3793_v29  ;;  %v1044_v43 = vpack.c.bf16 %v2931_v39, %v2928_v38  ;;  %v2964_v50 = vpack.c.bf16 %v2920_v35, %v2905_v31  ;;  %v178_v56 = vrot.slane %v2867_v18, 7  ;;  %v2197_v60 = vld [vmem:[%s3790_s1 + $0x4] sm:$0x3]  ;;  %v3132_v4 = vld [vmem:[%s2838_s23 + $0xc8] sm:$0xff]  ;;  %s3931_s9 = smov (!%p147_p3, %s146_s9), 159 }
  0x17   : > { %2439 = vmatpush3.bf16.msra.mxu1 %v465_v16  ;;  %3826 = vst [vmem:[#allocation5_spill] sm:$0xff] %v2914_v33  ;;  %2527 = vmatpush3.bf16.msra.mxu0 %v1259_v13  ;;  %v2968_v51 = vsel %vm239_vm3, %v821_v45, %v822_v46  ;;  %v2973_v52 = vsel %vm239_vm3, %v2944_v44, %v821_v45  ;;  %v3796_v57 = vrot.slane %v2870_v19, 7  ;;  %v782_v58 = vrot.slane %v2879_v23, 7  ;;  %v3290_v27 = vld [vmem:[%s2838_s23 + $0xe8] sm:$0xff]  ;;  %s2155_s14 = sshll.u32 %s3931_s9, 3 }
  0x18   : > { %2422 = vmatprep.mubr.msk.bf16.mxu1 %vm283_vm2, %v275_v32  ;;  %2510 = vmatprep.mubr.msk.bf16.mxu0 %vm283_vm2, %v1042_v34  ;;  %3827 = vst [vmem:[#allocation6_spill] sm:$0xff] %v2964_v50  ;;  %3828 = vst [vmem:[#allocation7_spill] sm:$0xff] %v2968_v51  ;;  %v2979_v55 = vpack.c.bf16 %v2928_v38, %v2923_v36  ;;  %v1045_v59 = vpack.c.bf16 %v2959_v49, %v2956_v48  ;;  %vm198_vm4 = vcmp.lt.s32.totalorder %v2860_v15, 1  ;;  %v3045_v32 = vld [vmem:[%s2838_s23 + $0xc0] sm:$0xff]  ;;  %s3725_s16 = scalar_lea.vmem %s3792_s3, %s2155_s14  ;;  %vm2077_vm5 = vcmask 64512  }
  0x19   : > { %2548 = vmatprep.subr.bf16.mxu0 %v2951_v47  ;;  %3829 = vst [vmem:[#allocation8_spill] sm:$0xff] %v2973_v52  ;;  %v823_v61 = vrot.slane %v2882_v24, 1  ;;  %v824_v62 = vrot.slane %v2902_v30, 1  ;;  %v1218_v63 = vpack.c.bf16 %v2968_v51, %v2973_v52  ;;  %v176_v0 = vrot.slane %v2848_v10, 7  ;;  %v3229_v51 = vld [vmem:[%s2838_s23 + $0x110] sm:$0xff] }
  0x1a   : > { %3830 = vst [vmem:[#allocation9_spill] sm:$0xff] %v2979_v55  ;;  %v2997_v2 = vrot.slane %v2905_v31, 1  ;;  %v826_v3 = vrot.slane %v2920_v35, 1  ;;  %v3004_v5 = vrot.slane %v2854_v12, 7  ;;  %v3794_v7 = vrot.slane %v2882_v24, 7 }
  0x1b   : > { %v3010_v8 = vand.u32 %v2197_v60, %v2833_v6  ;;  %v3016_v13 = vsel %vm198_vm4, %v178_v56, %v3796_v57  ;;  %v3020_v16 = vsel %vm198_vm4, %v177_v53, %v178_v56  ;;  %v3026_v12 = vsel %vm198_vm4, %v3795_v54, %v782_v58 }
  0x1c   : > { %3831 = vst [vmem:[#allocation10_spill] sm:$0xff] %v3026_v12  ;;  %v3035_v22 = vsel %vm239_vm3, %v822_v46, %v823_v61  ;;  %v3039_v23 = vsel %vm239_vm3, %v823_v61, %v824_v62  ;;  %v827_v25 = vrot.slane %v2923_v36, 1  ;;  %v828_v28 = vrot.slane %v2928_v38, 1 }
  0x1d   : > { %3832 = vst [vmem:[#allocation11_spill] sm:$0xff] %v3035_v22  ;;  %3833 = vst [vmem:[#allocation12_spill] sm:$0xff] %v3039_v23  ;;  %2460 = vmatprep.subr.bf16.mxu1 %v3010_v8  ;;  %v3050_v34 = vpack.c.bf16 %v2956_v48, %v2931_v39  ;;  %v3069_v42 = vsel %vm198_vm4, %v782_v58, %v3794_v7  ;;  %v830_v45 = vrot.slane %v2956_v48, 1  ;;  %v2292_v58 = vld [vmem:[%s3790_s1 + $0xe] sm:$0x3]  ;;  %v236_v29 = vrot.slane %v3031_v20, 1 }
  0x1e   : > { %2423 = vmatmul.mubr.msk.bf16.gmra.mrb[4].mxu1 %vm283_vm2, %v276_v37  ;;  %2511 = vmatmul.mubr.msk.bf16.gmra.mrb[4].mxu0 %vm283_vm2, %v1043_v41  ;;  %v3055_v37 = vsel %vm239_vm3, %v2997_v2, %v826_v3  ;;  %v3063_v41 = vrot.slane %v3045_v32, 7  ;;  %v3075_v46 = vpack.c.bf16 %v3031_v20, %v2959_v49  ;;  %v1219_v61 = vpack.c.bf16 %v3039_v23, %v3035_v22 }
  0x1f   : > { %2426 = vmatprep.mubr.msk.bf16.mxu1 %vm283_vm2, %v277_v40  ;;  %2514 = vmatprep.mubr.msk.bf16.mxu0 %vm283_vm2, %v1044_v43  ;;  %3834 = vst [vmem:[#allocation13_spill] sm:$0xff] %v3050_v34  ;;  %v3060_v40 = vsel %vm239_vm3, %v824_v62, %v2997_v2  ;;  %v829_v43 = vrot.slane %v2931_v39, 1  ;;  %v3099_v60 = vsel %vm239_vm3, %v827_v25, %v828_v28  ;;  %v3129_v1 = vrot.slane %v3045_v32, 1 }
  0x20   : > { %3835 = vst [vmem:[#allocation14_spill] sm:$0xff] %v3060_v40  ;;  %3836 = vst [vmem:[#allocation15_spill] sm:$0xff] %v3075_v46  ;;  %v1220_v7 = vpack.c.bf16 %v3055_v37, %v3060_v40  ;;  %v3103_v62 = vsel %vm239_vm3, %v826_v3, %v827_v25  ;;  %v217_v56 = vsel %vm198_vm4, %v176_v0, %v177_v53  ;;  %v3847_v40 = vrot.slane %v2870_v19, 7 }
  0x21   : > { %v218_v54 = vsel %vm198_vm4, %v3063_v41, %v176_v0  ;;  %v3115_v17 = vsel %vm239_vm3, %v829_v43, %v830_v45  ;;  %v3119_v3 = vsel %vm239_vm3, %v828_v28, %v829_v43  ;;  %v3122_v25 = vand.u32 %v2292_v58, %v2833_v6  ;;  %v3135_v28 = vld [vmem:[%s2838_s23 + $0xd0] sm:$0xff] }
  0x22   : > { %v261_v0 = vpack.c.bf16 %v217_v56, %v218_v54  ;;  %v1222_v53 = vpack.c.bf16 %v3115_v17, %v3119_v3  ;;  %v3839_v43 = vrot.slane %v2867_v18, 1  ;;  %v835_v56 = vrot.slane %v3132_v4, 1 }
  0x23   : > { %v3299_v52 = vrot.slane %v3290_v27, 7 }
  0x26   : > { %2427 = vmatmul.mubr.msk.bf16.gmra.mrb[8].mxu1 %vm283_vm2, %v2964_v50  ;;  %2515 = vmatmul.mubr.msk.bf16.gmra.mrb[8].mxu0 %vm283_vm2, %v1045_v59  ;;  %v3079_v59 = vrot.slane %v2905_v31, 7  ;;  %v3095_v31 = vld [vmem:[%s2838_s23 + $0xb8] sm:$0xff] }
  0x27   : > { %2430 = vmatprep.mubr.msk.bf16.mxu1 %vm283_vm2, %v2979_v55  ;;  %2528 = vmatprep.mubr.msk.bf16.mxu0 %vm283_vm2, %v1218_v63  ;;  %v831_v63 = vrot.slane %v2959_v49, 1  ;;  %v237_v57 = vrot.slane %v3095_v31, 1  ;;  %v3142_v58 = vpack.c.bf16 %v3045_v32, %v3095_v31  ;;  %v3171_v55 = vld [vmem:[%s2838_s23 + $0xe0] sm:$0xff] }
  0x28   : > { %v3853_v9 = vrot.slane %v3171_v55, 1 }
  0x29   : > { %3837 = vst [vmem:[#allocation16_spill] sm:$0xff] %v3142_v58  ;;  %v3150_v21 = vsel %vm239_vm3, %v831_v63, %v236_v29 }
  0x2a   : > { %3838 = vst [vmem:[#allocation17_spill] sm:$0xff] %v3150_v21 }
  0x2e   : > { %2431 = vmatmul.mubr.msk.bf16.gmra.mrb[12].mxu1 %vm283_vm2, %v3050_v34  ;;  %2529 = vmatmul.mubr.msk.bf16.vlgmr.msra.gmra.mrb[0].mxu0 %vm283_vm2, %v1219_v61  ;;  %v1221_v61 = vpack.c.bf16 %v3099_v60, %v3103_v62  ;;  %v836_v34 = vrot.slane %v3135_v28, 1 }
  0x2f   : > { %2434 = vmatprep.mubr.msk.bf16.mxu1 %vm283_vm2, %v3075_v46  ;;  %2549 = vmatpush3.bf16.msra.mxu0 %v2951_v47  ;;  %v3154_v47 = vsel %vm239_vm3, %v830_v45, %v831_v63  ;;  %v3840_v46 = vrot.slane %v2851_v11, 1  ;;  %v3843_v63 = vrot.slane %v2848_v10, 1 }
  0x30   : > { %2532 = vmatprep.mubr.msk.bf16.mxu0 %vm283_vm2, %v1220_v7  ;;  %v3157_v7 = vld [vmem:[%s2838_s23 + $0xd8] sm:$0xff]  ;;  %2570 = vmatprep.subr.bf16.mxu0 %v3122_v25 }
  0x31   : > { %v3166_v54 = vsel %vm239_vm3, %v3840_v46, %v3839_v43  ;;  %v3842_v45 = vmov %v3840_v46  ;;  %v3845_v43 = vrot.slane %v2889_v26, 7  ;;  %v3203_v46 = vsel %vm239_vm3, %v236_v29, %v237_v57 }
  0x32   : > { %3841 = vst [vmem:[#allocation18_spill] sm:$0xff] %v3166_v54  ;;  %v3179_v18 = vsel %vm239_vm3, %v3843_v63, %v3842_v45  ;;  %v3197_v45 = vsel %vm239_vm3, %v237_v57, %v3129_v1  ;;  %3848 = vst [vmem:[#allocation20_spill] sm:$0xff] %v3203_v46  ;;  %v837_v63 = vrot.slane %v3157_v7, 1  ;;  %v193_v29 = vrot.slane %v3031_v20, 7 }
  0x33   : > { %3844 = vst [vmem:[#allocation19_spill] sm:$0xff] %v3179_v18  ;;  %v213_v50 = vsel %vm198_vm4, %v3845_v43, %v3004_v5  ;;  %v3846_v11 = vmov %v3845_v43  ;;  %v3849_v43 = vrot.slane %v2858_v14, 7  ;;  %v262_v14 = vpack.c.bf16 %v3016_v13, %v3020_v16 }
  0x34   : > { %v214_v23 = vsel %vm198_vm4, %v3847_v40, %v3846_v11  ;;  %v3850_v40 = vrot.slane %v2902_v30, 7  ;;  %v3851_v11 = vrot.slane %v2882_v24, 7  ;;  %v3232_v24 = vld [vmem:[%s2838_s23 + $0x100] sm:$0xff]  ;;  %v3247_v13 = vsel %vm239_vm3, %v3129_v1, %v835_v56 }
  0x35   : > { %v3210_v19 = vsel %vm198_vm4, %v3004_v5, %v3849_v43  ;;  %v263_v57 = vpack.c.bf16 %v213_v50, %v214_v23  ;;  %v1224_v16 = vpack.c.bf16 %v3197_v45, %v3203_v46  ;;  %v3852_v23 = vrot.slane %v2920_v35, 7  ;;  %v2228_v46 = vld [vmem:[%s3790_s1 + $0x6] sm:$0x3] }
  0x36   : > { %v3218_v22 = vsel %vm198_vm4, %v3851_v11, %v3850_v40  ;;  %2435 = vmatmul.mubr.msk.bf16.gmra.mrb[16].mxu1 %vm283_vm2, %v3142_v58  ;;  %v3235_v40 = vld [vmem:[%s2838_s23 + $0x108] sm:$0xff]  ;;  %v1223_v11 = vpack.c.bf16 %v3150_v21, %v3154_v47  ;;  %v3242_v58 = vsel %vm239_vm3, %v835_v56, %v836_v34  ;;  %2533 = vmatmul.mubr.msk.bf16.gmra.mrb[4].mxu0 %vm283_vm2, %v1221_v61  ;;  %v3855_v50 = vrot.slane %v2959_v49, 7 }
  0x37   : > { %2440 = vmatprep.mubr.msk.bf16.mxu1 %vm283_vm2, %v261_v0  ;;  %v264_v0 = vpack.c.bf16 %v3026_v12, %v3210_v19  ;;  %v3261_v43 = vsel %vm198_vm4, %v3079_v59, %v3852_v23  ;;  %2536 = vmatprep.mubr.msk.bf16.mxu0 %vm283_vm2, %v1222_v53  ;;  %v3266_v61 = vsel %vm239_vm3, %v836_v34, %v837_v63  ;;  %v1434_v21 = vrot.slane %v3235_v40, 7 }
  0x38   : > { %v1225_v23 = vpack.c.bf16 %v3242_v58, %v3247_v13  ;;  %v3280_v53 = vsel %vm239_vm3, %v837_v63, %v3853_v9  ;;  %v3854_v34 = vrot.slane %v2902_v30, 7  ;;  %v3296_v33 = vsel %vm198_vm4, %v3855_v50, %v193_v29 }
  0x39   : > { %v3856_v9 = vrot.slane %v3229_v51, 7  ;;  %v3857_v63 = vrot.slane %v3232_v24, 7  ;;  %v3858_v26 = vrot.slane %v3095_v31, 7  ;;  %v3320_v18 = vand.u32 %v2228_v46, %v2833_v6 }
  0x3a   : > { %v3287_v56 = vsel %vm198_vm4, %v3854_v34, %v3079_v59  ;;  %v3861_v46 = vrot.slane %v2920_v35, 7  ;;  %v3866_v54 = vrot.slane %v2959_v49, 7  ;;  %v3867_v12 = vrot.slane %v2956_v48, 7 }
  0x3b   : > { %v3305_v30 = vsel %vm198_vm4, %v1434_v21, %v3856_v9  ;;  %v3311_v34 = vsel %vm198_vm4, %v3857_v63, %v1434_v21  ;;  %v3317_v50 = vsel %vm198_vm4, %v193_v29, %v3858_v26  ;;  %v3859_v9 = vrot.slane %v2848_v10, 1  ;;  %v3350_v63 = vld [vmem:[%s2838_s23 + $0xf0] sm:$0xff] }
  0x3c   : > { %v3335_v26 = vsel %vm198_vm4, %v3299_v52, %v3004_v5  ;;  %v839_v5 = vrot.slane %v3290_v27, 1  ;;  %v3865_v10 = vrot.slane %v2923_v36, 7  ;;  %v266_v49 = vpack.c.bf16 %v3261_v43, %v3287_v56 }
  0x3d   : > { %v3329_v21 = vsel %vm239_vm3, %v3129_v1, %v3859_v9  ;;  %v3860_v9 = vrot.slane %v2923_v36, 7  ;;  %v1471_v1 = vrot.slane %v3350_v63, 1  ;;  %v3869_v36 = vrot.slane %v2931_v39, 7 }
  0x3e   : > { %2441 = vmatmul.mubr.msk.bf16.vlgmr.msra.gmra.mrb[0].mxu1 %vm283_vm2, %v262_v14  ;;  %2537 = vmatmul.mubr.msk.bf16.gmra.mrb[8].mxu0 %vm283_vm2, %v1223_v11  ;;  %v3863_v11 = vrot.slane %v2928_v38, 7  ;;  %v3868_v38 = vmov %v3867_v12  ;;  %v3420_v48 = vpack.c.bf16 %v3103_v62, %v3055_v37  ;;  %v3894_v15 = vpack.c.bf16 %v3305_v30, %v3311_v34 }
  0x3f   : > { %2444 = vmatprep.mubr.msk.bf16.mxu1 %vm283_vm2, %v263_v57  ;;  %2461 = vmatpush3.bf16.msra.mxu1 %v3010_v8  ;;  %v3360_v29 = vsel %vm198_vm4, %v3861_v46, %v3860_v9  ;;  %v3365_v8 = vld [vmem:[%s2838_s23 + $0xf8] sm:$0xff]  ;;  %v3862_v46 = vrot.slane %v2931_v39, 7  ;;  %v1226_v39 = vpack.c.bf16 %v3280_v53, %v3266_v61  ;;  %v3900_v30 = vpack.c.bf16 %v3329_v21, %v3197_v45 }
  0x40   : > { %2482 = vmatprep.subr.bf16.mxu1 %v3320_v18  ;;  %2540 = vmatprep.mubr.msk.bf16.mxu0 %vm283_vm2, %v1224_v16  ;;  %v3864_v57 = vmov %v3863_v11  ;;  %v1472_v16 = vrot.slane %v3365_v8, 1  ;;  %v3901_v34 = vpack.c.bf16 %v3210_v19, %v3335_v26  ;;  %v3906_v21 = vpack.c.bf16 %v3287_v56, %v3218_v22 }
  0x41   : > { %v3381_v9 = vsel %vm198_vm4, %v3863_v11, %v3862_v46  ;;  %v3389_v14 = vsel %vm198_vm4, %v3865_v10, %v3864_v57  ;;  %v3400_v46 = vsel %vm198_vm4, %v3867_v12, %v3866_v54  ;;  %v3408_v10 = vsel %vm198_vm4, %v3869_v36, %v3868_v38 }
  0x42   : > { %v3870_v54 = vrot.slane %v3171_v55, 1  ;;  %v3432_v36 = vpack.c.bf16 %v3119_v3, %v3099_v60  ;;  %v3436_v57 = vpack.c.bf16 %v3154_v47, %v3115_v17  ;;  %v3455_v47 = vsel %vm239_vm3, %v1471_v1, %v1472_v16 }
  0x43   : > { %v3871_v12 = vpack.c.bf16 %v3218_v22, %v3069_v42  ;;  %v1474_v17 = vrot.slane %v3235_v40, 1  ;;  %v1475_v60 = vrot.slane %v3229_v51, 1  ;;  %v859_v3 = vsel %vm239_vm3, %v839_v5, %v2944_v44 }
  0x44   : > { %v3428_v38 = vsel %vm239_vm3, %v3870_v54, %v839_v5  ;;  %v1473_v54 = vrot.slane %v3232_v24, 1  ;;  %v3907_v19 = vpack.c.bf16 %v3135_v28, %v3132_v4  ;;  %v3908_v26 = vpack.c.bf16 %v3171_v55, %v3157_v7 }
  0x45   : > { %v3909_v22 = vpack.c.bf16 %v3360_v29, %v3261_v43  ;;  %v3910_v56 = vpack.c.bf16 %v3381_v9, %v3389_v14 }
  0x46   : > { %2445 = vmatmul.mubr.msk.bf16.gmra.mrb[4].mxu1 %vm283_vm2, %v264_v0  ;;  %v3463_v0 = vsel %vm239_vm3, %v839_v5, %v1471_v1  ;;  %2541 = vmatmul.mubr.msk.bf16.gmra.mrb[12].mxu0 %vm283_vm2, %v1225_v23  ;;  %v3477_v1 = vsel %vm239_vm3, %v1473_v54, %v1474_v17  ;;  %v3485_v23 = vsel %vm239_vm3, %v1474_v17, %v1475_v60 }
  0x47   : > { %2448 = vmatprep.mubr.msk.bf16.mxu1 %vm283_vm2, %v3871_v12  ;;  %3872 = vst [vmem:[#allocation21_spill] sm:$0xff] %v3463_v0  ;;  %2544 = vmatprep.mubr.msk.bf16.mxu0 %vm283_vm2, %v1226_v39  ;;  %3873 = vst [vmem:[#allocation22_spill] sm:$0xff] %v3477_v1  ;;  %v3481_v12 = vsel %vm239_vm3, %v1472_v16, %v1473_v54  ;;  %v3490_v5 = vsel %vm239_vm3, %v1475_v60, %v2997_v2  ;;  %v3877_v39 = vrot.slane %v3229_v51, 7  ;;  %v3879_v16 = vld [vmem:[#allocation18_spill] sm:$0xff] }
  0x48   : > { %3874 = vst [vmem:[#allocation23_spill] sm:$0xff] %v3481_v12  ;;  %3875 = vst [vmem:[#allocation24_spill] sm:$0xff] %v3485_v23  ;;  %v267_v54 = vpack.c.bf16 %v3389_v14, %v3360_v29  ;;  %v1227_v17 = vpack.c.bf16 %v859_v3, %v3428_v38  ;;  %v269_v60 = vpack.c.bf16 %v3296_v33, %v3400_v46  ;;  %v2303_v3 = vld [vmem:[%s3790_s1 + $0x10] sm:$0x3]  ;;  %v1432_v1 = vrot.slane %v3365_v8, 7 }
  0x49   : > { %3876 = vst [vmem:[#allocation25_spill] sm:$0xff] %v3490_v5  ;;  %v1455_v62 = vsel %vm198_vm4, %v3877_v39, %v3079_v59  ;;  %v268_v59 = vpack.c.bf16 %v3408_v10, %v3381_v9  ;;  %v3914_v29 = vpack.c.bf16 %v3229_v51, %v3235_v40  ;;  %v3915_v51 = vpack.c.bf16 %v3095_v31, %v3031_v20 }
  0x4a   : > { %v1498_v2 = vpack.c.bf16 %v3261_v43, %v1455_v62  ;;  %v3878_v62 = vrot.slane %v3095_v31, 7  ;;  %v3913_v43 = vpack.c.bf16 %v3317_v50, %v3296_v33  ;;  %v3916_v40 = vpack.c.bf16 %v3247_v13, %v3197_v45 }
  0x4b   : > { %v3919_v20 = vpack.c.bf16 %v3266_v61, %v3242_v58  ;;  %v3920_v31 = vpack.c.bf16 %v3428_v38, %v3280_v53 }
  0x4c   : > { %v3524_v39 = vsel %vm198_vm4, %v3878_v62, %v3063_v41  ;;  %v1429_v62 = vrot.slane %v3171_v55, 7 }
  0x4e   : > { %2449 = vmatmul.mubr.msk.bf16.gmra.mrb[8].mxu1 %vm283_vm2, %v266_v49  ;;  %2545 = vmatmul.mubr.msk.bf16.gmra.mrb[16].mxu0 %vm283_vm2, %v1227_v17  ;;  %v1895_v49 = vand.u32 %v2303_v3, %v2833_v6  ;;  %v270_v17 = vpack.c.bf16 %v3524_v39, %v3317_v50  ;;  %v1426_v6 = vrot.slane %v3132_v4, 7  ;;  %v1428_v3 = vrot.slane %v3157_v7, 7 }
  0x4f   : > { %2452 = vmatprep.mubr.msk.bf16.mxu1 %vm283_vm2, %v267_v54  ;;  %2550 = vmatprep.mubr.msk.bf16.mxu0 %vm283_vm2, %v1498_v2  ;;  %v1427_v2 = vrot.slane %v3135_v28, 7  ;;  %v3917_v50 = vpack.c.bf16 %v3132_v4, %v3045_v32  ;;  %v3921_v4 = vpack.c.bf16 %v3290_v27, %v3171_v55  ;;  %v3922_v32 = vld [vmem:[#allocation21_spill] sm:$0xff]  ;;  %v3925_v45 = vld [vmem:[#allocation23_spill] sm:$0xff]  ;;  %v3928_v61 = vld [vmem:[#allocation24_spill] sm:$0xff] }
  0x50   : > { %v1445_v23 = vsel %vm198_vm4, %v3063_v41, %v1426_v6  ;;  %v3888_v41 = vld [vmem:[#allocation2_spill] sm:$0xff]  ;;  %v3927_v13 = vld [vmem:[#allocation25_spill] sm:$0xff] }
  0x51   : > { %v1444_v35 = vsel %vm198_vm4, %v1426_v6, %v1427_v2  ;;  %v3889_v6 = vld [vmem:[#allocation7_spill] sm:$0xff]  ;;  %v3929_v53 = vpack.c.bf16 %v3927_v13, %v3928_v61 }
  0x56   : > { %2453 = vmatmul.mubr.msk.bf16.gmra.mrb[12].mxu1 %vm283_vm2, %v268_v59  ;;  %2551 = vmatmul.mubr.msk.bf16.vlgmr.msra.gmra.mrb[0].mxu0 %vm283_vm2, %v267_v54  ;;  %v3880_v54 = vld [vmem:[#allocation19_spill] sm:$0xff] }
  0x57   : > { %2456 = vmatprep.mubr.msk.bf16.mxu1 %vm283_vm2, %v269_v60  ;;  %2571 = vmatpush3.bf16.msra.mxu0 %v3122_v25  ;;  %v3881_v37 = vpack.c.bf16 %v3879_v16, %v3880_v54  ;;  %v3882_v25 = vld [vmem:[#allocation3_spill] sm:$0xff]  ;;  %v1443_v16 = vsel %vm198_vm4, %v1427_v2, %v1428_v3 }
  0x58   : > { %2554 = vmatprep.mubr.msk.bf16.mxu0 %vm283_vm2, %v268_v59  ;;  %2592 = vmatprep.subr.bf16.mxu0 %v1895_v49  ;;  %v3883_v59 = vrot.slane %v3882_v25, 1  ;;  %v1503_v25 = vpack.c.bf16 %v1444_v35, %v1445_v23  ;;  %v3890_v2 = vld [vmem:[#allocation11_spill] sm:$0xff]  ;;  %v870_v14 = vpack.c.bf16 %v1443_v16, %v1444_v35 }
  0x5a   : > { %v254_v11 = vsel %vm239_vm3, %v3883_v59, %v2944_v44  ;;  %v1431_v44 = vrot.slane %v3350_v63, 7  ;;  %v3886_v59 = vld [vmem:[#allocation4_spill] sm:$0xff] }
  0x5e   : > { %2457 = vmatmul.mubr.msk.bf16.gmra.mrb[16].mxu1 %vm283_vm2, %v270_v17  ;;  %2555 = vmatmul.mubr.msk.bf16.gmra.mrb[4].mxu0 %vm283_vm2, %v269_v60  ;;  %v3884_v60 = vld [vmem:[#allocation8_spill] sm:$0xff] }
  0x5f   : > { %2462 = vmatprep.mubr.msk.bf16.mxu1 %vm283_vm2, %v3881_v37  ;;  %2558 = vmatprep.mubr.msk.bf16.mxu0 %vm283_vm2, %v270_v17  ;;  %v1442_v37 = vsel %vm198_vm4, %v1428_v3, %v1429_v62  ;;  %v584_v54 = vpack.c.bf16 %v3884_v60, %v254_v11  ;;  %v3885_v17 = vld [vmem:[#allocation5_spill] sm:$0xff]  ;;  %v1440_v11 = vsel %vm198_vm4, %v3299_v52, %v1431_v44  ;;  %v3891_v60 = vrot.slane %v3232_v24, 7 }
  0x60   : > { %v1504_v5 = vpack.c.bf16 %v1442_v37, %v1443_v16  ;;  %v3887_v12 = vpack.c.bf16 %v3885_v17, %v3886_v59  ;;  %v585_v3 = vpack.c.bf16 %v3890_v2, %v3889_v6  ;;  %v3902_v6 = vld [vmem:[#allocation15_spill] sm:$0xff]  ;;  %v3903_v2 = vld [vmem:[#allocation16_spill] sm:$0xff] }
  0x66   : > { %2463 = vmatmul.mubr.msk.bf16.vlgmr.msra.gmra.mrb[0].mxu1 %vm283_vm2, %v3887_v12  ;;  %2559 = vmatmul.mubr.msk.bf16.gmra.mrb[8].mxu0 %vm283_vm2, %v1503_v25  ;;  %v1441_v12 = vsel %vm198_vm4, %v1429_v62, %v3299_v52  ;;  %v3893_v25 = vld [vmem:[#allocation14_spill] sm:$0xff]  ;;  %v3897_v62 = vld [vmem:[#allocation20_spill] sm:$0xff] }
  0x67   : > { %2466 = vmatprep.mubr.msk.bf16.mxu1 %vm283_vm2, %v584_v54  ;;  %2483 = vmatpush3.bf16.msra.mxu1 %v3320_v18  ;;  %v1438_v18 = vsel %vm198_vm4, %v1432_v1, %v3891_v60  ;;  %v1439_v54 = vsel %vm198_vm4, %v1431_v44, %v1432_v1  ;;  %v1505_v59 = vpack.c.bf16 %v1440_v11, %v1441_v12  ;;  %v3895_v52 = vld [vmem:[#allocation6_spill] sm:$0xff]  ;;  %v3896_v1 = vld [vmem:[#allocation17_spill] sm:$0xff] }
  0x68   : > { %2614 = vmatprep.subr.bf16.mxu1 %v3888_v41  ;;  %2562 = vmatprep.mubr.msk.bf16.mxu0 %vm283_vm2, %v1504_v5  ;;  %v3892_v5 = vld [vmem:[#allocation12_spill] sm:$0xff]  ;;  %v1506_v0 = vpack.c.bf16 %v1438_v18, %v1439_v54  ;;  %v590_v44 = vpack.c.bf16 %v3897_v62, %v3896_v1  ;;  %v3899_v11 = vld [vmem:[#allocation13_spill] sm:$0xff]  ;;  %v871_v33 = vpack.c.bf16 %v1441_v12, %v1442_v37  ;;  %v3719_v37 = vld [vmem:[%s3791_s2] ss:$0 sm:$0xff] }
  0x69   : > { %v586_v17 = vpack.c.bf16 %v3893_v25, %v3892_v5 }
  0x6e   : > { %2467 = vmatmul.mubr.msk.bf16.gmra.mrb[4].mxu1 %vm283_vm2, %v585_v3  ;;  %2563 = vmatmul.mubr.msk.bf16.gmra.mrb[12].mxu0 %vm283_vm2, %v1505_v59 }
  0x6f   : > { %2470 = vmatprep.mubr.msk.bf16.mxu1 %vm283_vm2, %v586_v17  ;;  %2566 = vmatprep.mubr.msk.bf16.mxu0 %vm283_vm2, %v1506_v0  ;;  %v3898_v0 = vld [vmem:[#allocation9_spill] sm:$0xff] }
  0x76   : > { %2471 = vmatmul.mubr.msk.bf16.gmra.mrb[8].mxu1 %vm283_vm2, %v3420_v48  ;;  %2567 = vmatmul.mubr.msk.bf16.gmra.mrb[16].mxu0 %vm283_vm2, %v3894_v15 }
  0x77   : > { %2474 = vmatprep.mubr.msk.bf16.mxu1 %vm283_vm2, %v3432_v36  ;;  %2572 = vmatprep.mubr.msk.bf16.mxu0 %vm283_vm2, %v3895_v52 }
  0x7e   : > { %2475 = vmatmul.mubr.msk.bf16.gmra.mrb[12].mxu1 %vm283_vm2, %v3436_v57  ;;  %2573 = vmatmul.mubr.msk.bf16.vlgmr.msra.gmra.mrb[0].mxu0 %vm283_vm2, %v3898_v0 }
  0x7f   : > { %2478 = vmatprep.mubr.msk.bf16.mxu1 %vm283_vm2, %v590_v44  ;;  %2593 = vmatpush3.bf16.msra.mxu0 %v1895_v49  ;;  %v3904_v49 = vld [vmem:[#allocation10_spill] sm:$0xff] }
  0x80   : > { %2576 = vmatprep.mubr.msk.bf16.mxu0 %vm283_vm2, %v3899_v11  ;;  %v3905_v3 = vpack.c.bf16 %v3069_v42, %v3904_v49  ;;  %v1684_v42 = vpack.c.bf16 %v3232_v24, %v3365_v8  ;;  %v3912_v24 = vpack.c.bf16 %v3400_v46, %v3408_v10  ;;  %v3918_v8 = vpack.c.bf16 %v3157_v7, %v3135_v28  ;;  %v3924_v7 = vld [vmem:[#allocation22_spill] sm:$0xff] }
  0x81   : > { %v3923_v28 = vpack.c.bf16 %v3455_v47, %v3922_v32  ;;  %v3926_v58 = vpack.c.bf16 %v3924_v7, %v3925_v45 }
  0x86   : > { %2479 = vmatmul.mubr.msk.bf16.gmra.mrb[16].mxu1 %vm283_vm2, %v3900_v30  ;;  %2577 = vmatmul.mubr.msk.bf16.gmra.mrb[4].mxu0 %vm283_vm2, %v3902_v6 }
  0x87   : > { %2484 = vmatprep.mubr.msk.bf16.mxu1 %vm283_vm2, %v3901_v34  ;;  %2580 = vmatprep.mubr.msk.bf16.mxu0 %vm283_vm2, %v3903_v2 }
  0x8e   : > { %2485 = vmatmul.mubr.msk.bf16.vlgmr.msra.gmra.mrb[0].mxu1 %vm283_vm2, %v3905_v3  ;;  %2581 = vmatmul.mubr.msk.bf16.gmra.mrb[8].mxu0 %vm283_vm2, %v3907_v19 }
  0x8f   : > { %2488 = vmatprep.mubr.msk.bf16.mxu1 %vm283_vm2, %v3906_v21  ;;  %2615 = vmatpush3.bf16.msra.mxu1 %v3888_v41  ;;  %v3911_v41 = vpack.c.bf16 %v3350_v63, %v3290_v27  ;;  %v869_v63 = vpack.c.bf16 %v1445_v23, %v3524_v39 }
  0x90   : > { %2584 = vmatprep.mubr.msk.bf16.mxu0 %vm283_vm2, %v3908_v26 }
  0x96   : > { %2489 = vmatmul.mubr.msk.bf16.gmra.mrb[4].mxu1 %vm283_vm2, %v3909_v22  ;;  %2585 = vmatmul.mubr.msk.bf16.gmra.mrb[12].mxu0 %vm283_vm2, %v3911_v41 }
  0x97   : > { %2492 = vmatprep.mubr.msk.bf16.mxu1 %vm283_vm2, %v3910_v56  ;;  %2588 = vmatprep.mubr.msk.bf16.mxu0 %vm283_vm2, %v1684_v42 }
  0x9e   : > { %2493 = vmatmul.mubr.msk.bf16.gmra.mrb[8].mxu1 %vm283_vm2, %v3912_v24  ;;  %2589 = vmatmul.mubr.msk.bf16.gmra.mrb[16].mxu0 %vm283_vm2, %v3914_v29 }
  0x9f   : > { %2496 = vmatprep.mubr.msk.bf16.mxu1 %vm283_vm2, %v3913_v43  ;;  %2594 = vmatprep.mubr.msk.bf16.mxu0 %vm283_vm2, %v3420_v48 }
  0xa6   : > { %2497 = vmatmul.mubr.msk.bf16.gmra.mrb[12].mxu1 %vm283_vm2, %v869_v63  ;;  %2595 = vmatmul.mubr.msk.bf16.vlgmr.msra.gmra.mrb[0].mxu0 %vm283_vm2, %v3432_v36 }
  0xa7   : > { %2500 = vmatprep.mubr.msk.bf16.mxu1 %vm283_vm2, %v870_v14  ;;  %2598 = vmatprep.mubr.msk.bf16.mxu0 %vm283_vm2, %v3436_v57 }
  0xae   : > { %2501 = vmatmul.mubr.msk.bf16.gmra.mrb[16].mxu1 %vm283_vm2, %v871_v33  ;;  %2599 = vmatmul.mubr.msk.bf16.gmra.mrb[4].mxu0 %vm283_vm2, %v590_v44 }
  0xaf   : > { %2518 = vmatprep.mubr.msk.bf16.mxu1 %vm283_vm2, %v3915_v51  ;;  %2602 = vmatprep.mubr.msk.bf16.mxu0 %vm283_vm2, %v3916_v40 }
  0xb6   : > { %2519 = vmatmul.mubr.msk.bf16.vlgmr.msra.gmra.mrb[12].mxu1 %vm283_vm2, %v3917_v50  ;;  %2603 = vmatmul.mubr.msk.bf16.gmra.mrb[8].mxu0 %vm283_vm2, %v3919_v20 }
  0xb7   : > { %2522 = vmatprep.mubr.msk.bf16.mxu1 %vm283_vm2, %v3918_v8  ;;  %2606 = vmatprep.mubr.msk.bf16.mxu0 %vm283_vm2, %v3920_v31 }
  0xbe   : > { %2523 = vmatmul.mubr.msk.bf16.gmra.mrb[16].mxu1 %vm283_vm2, %v3921_v4  ;;  %2607 = vmatmul.mubr.msk.bf16.gmra.mrb[12].mxu0 %vm283_vm2, %v3923_v28 }
  0xbf   : > { %2610 = vmatprep.mubr.msk.bf16.mxu0 %vm283_vm2, %v3926_v58 }
  0xc6   : > { %2611 = vmatmul.mubr.msk.bf16.gmra.mrb[16].mxu0 %vm283_vm2, %v3929_v53 }
 0x161   : > { %v2486_v35 = vpop.f32.mrb[0].mxu1 }
 0x162   : > { %v939_v9 = vpop.f32.mrb[1].mxu1 }
 0x163   : > { %v2487_v27 = vpop.f32.mrb[2].mxu1 }
 0x164   : > { %v942_v55 = vpop.f32.mrb[3].mxu1 }
 0x169   : > { %v2490_v46 = vpop.f32.mrb[4].mxu1 }
 0x16a   : > { %v955_v10 = vpop.f32.mrb[5].mxu1 }
 0x16b   : > { %v2491_v57 = vpop.f32.mrb[6].mxu1 }
 0x16c   : > { %v958_v48 = vpop.f32.mrb[7].mxu1 }
 0x171   : > { %v2494_v38 = vpop.f32.mrb[8].mxu1 }
 0x172   : > { %v971_v36 = vpop.f32.mrb[9].mxu1 }
 0x173   : > { %v2495_v47 = vpop.f32.mrb[10].mxu1 }
 0x174   : > { %v974_v23 = vpop.f32.mrb[11].mxu1 }
 0x179   : > { %v2596_v39 = vpop.f32.mrb[0].mxu0 }
 0x17a   : > { %v2616_v16 = vadd.f32 %v2596_v39, %v2486_v35  ;;  %v1931_v12 = vpop.f32.mrb[1].mxu0 }
 0x17b   : > { %v2617_v60 = vadd.f32 %v1931_v12, %v939_v9  ;;  %v2597_v18 = vpop.f32.mrb[2].mxu0 }
 0x17c   : > { %v2039_v54 = vadd.f32 %v2616_v16, %v3719_v37  ;;  %v2618_v5 = vadd.f32 %v2597_v18, %v2487_v27  ;;  %v1934_v25 = vpop.f32.mrb[3].mxu0 }
 0x17d   : > { %v2037_v17 = vadd.f32 %v2617_v60, %v3719_v37  ;;  %v2619_v59 = vadd.f32 %v1934_v25, %v942_v55 }
 0x17e   : > { %v2059_v15 = vmax.f32 %v2039_v54, 0.0  ;;  %v2040_v52 = vadd.f32 %v2618_v5, %v3719_v37 }
 0x17f   : > { %v2057_v1 = vmax.f32 %v2037_v17, 0.0  ;;  %v2038_v62 = vadd.f32 %v2619_v59, %v3719_v37 }
 0x180   : > { %2080 = vst.msk [vmem:[%s3725_s16 + $0x10] sm:$0xff] %vm2077_vm5, %v2059_v15  ;;  %v2060_v44 = vmax.f32 %v2040_v52, 0.0 }
 0x181   : > { %2078 = vst.msk [vmem:[%s3725_s16] sm:$0xff] %vm2077_vm5, %v2057_v1  ;;  %v2058_v0 = vmax.f32 %v2038_v62, 0.0  ;;  %v2600_v11 = vpop.f32.mrb[4].mxu0 }
 0x182   : > { %2081 = vst.msk [vmem:[%s3725_s16 + $0x18] sm:$0xff] %vm2077_vm5, %v2060_v44  ;;  %v2620_v30 = vadd.f32 %v2600_v11, %v2490_v46  ;;  %v1947_v34 = vpop.f32.mrb[5].mxu0 }
 0x183   : > { %2079 = vst.msk [vmem:[%s3725_s16 + $0x8] sm:$0xff] %vm2077_vm5, %v2058_v0  ;;  %v2621_v6 = vadd.f32 %v1947_v34, %v955_v10  ;;  %v2601_v2 = vpop.f32.mrb[6].mxu0 }
 0x184   : > { %v2043_v49 = vadd.f32 %v2620_v30, %v3719_v37  ;;  %v2622_v3 = vadd.f32 %v2601_v2, %v2491_v57  ;;  %v1950_v21 = vpop.f32.mrb[7].mxu0 }
 0x185   : > { %v2041_v19 = vadd.f32 %v2621_v6, %v3719_v37  ;;  %v2623_v26 = vadd.f32 %v1950_v21, %v958_v48 }
 0x186   : > { %v2063_v42 = vmax.f32 %v2043_v49, 0.0  ;;  %v2044_v22 = vadd.f32 %v2622_v3, %v3719_v37 }
 0x187   : > { %v2061_v56 = vmax.f32 %v2041_v19, 0.0  ;;  %v2042_v41 = vadd.f32 %v2623_v26, %v3719_v37 }
 0x188   : > { %2084 = vst.msk [vmem:[%s3725_s16 + $0x30] sm:$0xff] %vm2077_vm5, %v2063_v42  ;;  %v2064_v43 = vmax.f32 %v2044_v22, 0.0 }
 0x189   : > { %v2520_v24 = vpop.f32.mrb[12].mxu1  ;;  %2082 = vst.msk [vmem:[%s3725_s16 + $0x20] sm:$0xff] %vm2077_vm5, %v2061_v56  ;;  %v2062_v63 = vmax.f32 %v2042_v41, 0.0  ;;  %v2604_v14 = vpop.f32.mrb[8].mxu0 }
 0x18a   : > { %v1165_v29 = vpop.f32.mrb[13].mxu1  ;;  %2085 = vst.msk [vmem:[%s3725_s16 + $0x38] sm:$0xff] %vm2077_vm5, %v2064_v43  ;;  %v2624_v51 = vadd.f32 %v2604_v14, %v2494_v38  ;;  %v1963_v40 = vpop.f32.mrb[9].mxu0 }
 0x18b   : > { %v2521_v33 = vpop.f32.mrb[14].mxu1  ;;  %2083 = vst.msk [vmem:[%s3725_s16 + $0x28] sm:$0xff] %vm2077_vm5, %v2062_v63  ;;  %v2625_v8 = vadd.f32 %v1963_v40, %v971_v36  ;;  %v2605_v20 = vpop.f32.mrb[10].mxu0 }
 0x18c   : > { %v1168_v50 = vpop.f32.mrb[15].mxu1  ;;  %v2047_v31 = vadd.f32 %v2624_v51, %v3719_v37  ;;  %v2626_v4 = vadd.f32 %v2605_v20, %v2495_v47  ;;  %v1966_v32 = vpop.f32.mrb[11].mxu0 }
 0x18d   : > { %v2045_v28 = vadd.f32 %v2625_v8, %v3719_v37  ;;  %v2627_v7 = vadd.f32 %v1966_v32, %v974_v23 }
 0x18e   : > { %v2067_v45 = vmax.f32 %v2047_v31, 0.0  ;;  %v2048_v58 = vadd.f32 %v2626_v4, %v3719_v37 }
 0x18f   : > { %v2065_v13 = vmax.f32 %v2045_v28, 0.0  ;;  %v2046_v61 = vadd.f32 %v2627_v7, %v3719_v37 }
 0x190   : > { %2088 = vst.msk [vmem:[%s3725_s16 + $0x50] sm:$0xff] %vm2077_vm5, %v2067_v45  ;;  %v2068_v35 = vmax.f32 %v2048_v58, 0.0 }
 0x191   : > { %v2524_v53 = vpop.f32.mrb[16].mxu1  ;;  %2086 = vst.msk [vmem:[%s3725_s16 + $0x40] sm:$0xff] %vm2077_vm5, %v2065_v13  ;;  %v2066_v27 = vmax.f32 %v2046_v61, 0.0  ;;  %v2608_v55 = vpop.f32.mrb[12].mxu0 }
 0x192   : > { %v1181_v9 = vpop.f32.mrb[17].mxu1  ;;  %2089 = vst.msk [vmem:[%s3725_s16 + $0x58] sm:$0xff] %vm2077_vm5, %v2068_v35  ;;  %v2628_v10 = vadd.f32 %v2608_v55, %v2520_v24  ;;  %v1979_v57 = vpop.f32.mrb[13].mxu0 }
 0x193   : > { %v2525_v46 = vpop.f32.mrb[18].mxu1  ;;  %2087 = vst.msk [vmem:[%s3725_s16 + $0x48] sm:$0xff] %vm2077_vm5, %v2066_v27  ;;  %v2629_v38 = vadd.f32 %v1979_v57, %v1165_v29  ;;  %v2609_v36 = vpop.f32.mrb[14].mxu0 }
 0x194   : > { %v1184_v48 = vpop.f32.mrb[19].mxu1  ;;  %v2051_v47 = vadd.f32 %v2628_v10, %v3719_v37  ;;  %v2630_v23 = vadd.f32 %v2609_v36, %v2521_v33  ;;  %v1982_v39 = vpop.f32.mrb[15].mxu0 }
 0x195   : > { %v2049_v16 = vadd.f32 %v2629_v38, %v3719_v37  ;;  %v2631_v12 = vadd.f32 %v1982_v39, %v1168_v50 }
 0x196   : > { %v2071_v60 = vmax.f32 %v2051_v47, 0.0  ;;  %v2052_v18 = vadd.f32 %v2630_v23, %v3719_v37 }
 0x197   : > { %v2069_v54 = vmax.f32 %v2049_v16, 0.0  ;;  %v2050_v5 = vadd.f32 %v2631_v12, %v3719_v37 }
 0x198   : > { %2092 = vst.msk [vmem:[%s3725_s16 + $0x70] sm:$0xff] %vm2077_vm5, %v2071_v60  ;;  %v2072_v25 = vmax.f32 %v2052_v18, 0.0 }
 0x199   : > { %2090 = vst.msk [vmem:[%s3725_s16 + $0x60] sm:$0xff] %vm2077_vm5, %v2069_v54  ;;  %v2070_v17 = vmax.f32 %v2050_v5, 0.0  ;;  %v2612_v59 = vpop.f32.mrb[16].mxu0 }
 0x19a   : > { %2093 = vst.msk [vmem:[%s3725_s16 + $0x78] sm:$0xff] %vm2077_vm5, %v2072_v25  ;;  %v2632_v15 = vadd.f32 %v2612_v59, %v2524_v53  ;;  %v1995_v52 = vpop.f32.mrb[17].mxu0 }
 0x19b   : > { %2091 = vst.msk [vmem:[%s3725_s16 + $0x68] sm:$0xff] %vm2077_vm5, %v2070_v17  ;;  %v2633_v1 = vadd.f32 %v1995_v52, %v1181_v9  ;;  %v2613_v62 = vpop.f32.mrb[18].mxu0 }
 0x19c   : > { %v2055_v44 = vadd.f32 %v2632_v15, %v3719_v37  ;;  %v2634_v0 = vadd.f32 %v2613_v62, %v2525_v46  ;;  %v1998_v11 = vpop.f32.mrb[19].mxu0 }
 0x19d   : > { %v2053_v30 = vadd.f32 %v2633_v1, %v3719_v37  ;;  %v2635_v34 = vadd.f32 %v1998_v11, %v1184_v48 }
 0x19e   : > { %v2075_v6 = vmax.f32 %v2055_v44, 0.0  ;;  %v2056_v2 = vadd.f32 %v2634_v0, %v3719_v37 }
 0x19f   : > { %v2073_v49 = vmax.f32 %v2053_v30, 0.0  ;;  %v2054_v3 = vadd.f32 %v2635_v34, %v3719_v37 }
 0x1a0   : > { %2096 = vst.msk [vmem:[%s3725_s16 + $0x90] sm:$0xff] %vm2077_vm5, %v2075_v6  ;;  %v2076_v21 = vmax.f32 %v2056_v2, 0.0 }
 0x1a1   : > { %2094 = vst.msk [vmem:[%s3725_s16 + $0x80] sm:$0xff] %vm2077_vm5, %v2073_v49  ;;  %v2074_v19 = vmax.f32 %v2054_v3, 0.0 }
 0x1a2   : > { %2097 = vst.msk [vmem:[%s3725_s16 + $0x98] sm:$0xff] %vm2077_vm5, %v2076_v21 }
 0x1a3   : > { %2095 = vst.msk [vmem:[%s3725_s16 + $0x88] sm:$0xff] %vm2077_vm5, %v2074_v19 }
 0x1a4 PF: > { %s13_s12 = sadd.s32 1, %s2791_s12  }
 0x1a5   : > { %p10_p4 = scmp.ge.s32.totalorder %s13_s12, 10  }
 0x1a7   :  { %12 = sbr.rel (!%p10_p4) target bundleno = 1 (0x1), region = 70 }

// kernel: generalized_rcnn_forward.5
= control target key start
LH: loop header
LB: loop body
LE: loop exit
PB: predicated region body
PF: predicated region fallthrough
CT: control target
= control target key end

     0   :  { %s3251_s12 = smov 0   ;;  %s4393_s0 = inlined_call_operand.vmem [shape: f32[480,8], index: 0, kind: input, shape index: {}]   ;;  %s4394_s1 = inlined_call_operand.vmem [shape: bf16[9,8,16], index: 1, kind: input, shape index: {}]   ;;  %s4395_s2 = inlined_call_operand.vmem [shape: f32[1,16], index: 2, kind: input, shape index: {}]   ;;  %s4396_s3 = inlined_call_operand.vmem [shape: f32[384,16], index: 3, kind: output, shape index: {}]  }
   0x1 LB: > { %s2464_s13 = sadd.s32 4294967295, %s3229_s12   ;;  %p2467_p0 = scmp.ge.s32.totalorder %s3229_s12, 1  ;;  %s3229_s12 = sphi %s3251_s12, %s13_s12  }
   0x2   : > { %p127_p1 = scmp.lt.s32.totalorder %s3229_s12, 3 }
   0x4   : > { %p128_p2 = pnand %p2467_p0, %p127_p1 }
   0x6   : > { %131 = sbr.rel (%p128_p2) target bundleno = 455 (0x1c7), region = 32 }
   0xd   : > { %v2493_v0 = vld [vmem:[%s4394_s1 + $0x4] sm:$0xf]  ;;  %vm344_vm0 = vcmask 1043456   ;;  %v3265_v1 = vld [vmem:[%s4394_s1 + $0x10] sm:$0xf]  ;;  %s2437_s18 = smul.u32 192, %s2464_s13  ;;  %v204_v2 = vlaneseq }
   0xe   : > { %4450 = vst [vmem:[#allocation2_spill] sm:$0xff] %v3265_v1  ;;  %3205 = vmatprep.subr.msk.bf16.mxu1 %vm344_vm0, %v2493_v0  ;;  %3209 = vmatprep.subr.msk.bf16.mxu0 %vm344_vm0, %v3265_v1  ;;  %v346_v3 = vsel %vm344_vm0, %v2493_v0, 0  ;;  %v3275_v4 = vsel %vm344_vm0, %v3265_v1, 0  ;;  %v280_v5 = vld [vmem:[%s4394_s1] sm:$0xf]  ;;  %vm307_vm1 = vcmask 64512  }
   0xf   : > { %4451 = vst [vmem:[#allocation3_spill] sm:$0xff] %v3275_v4  ;;  %2778 = vmatpush3.bf16.msra.mxu1 %v346_v3  ;;  %2882 = vmatpush3.bf16.msra.mxu0 %v3275_v4  ;;  %s3284_s23 = scalar_lea.vmem %s4393_s0, %s2437_s18  ;;  %v2581_v6 = vld [vmem:[%s4394_s1 + $0x14] sm:$0xf]  ;;  %v3304_v12 = vshrl.u32 %v204_v2, 7  ;;  %v514_v20 = vsel %vm344_vm0, %v280_v5, 0  ;;  %s146_s9 = smul.u32 24, %s2464_s13 }
  0x10   : > { %v3290_v7 = vld [vmem:[%s3284_s23 + $0x18] sm:$0xff]  ;;  %v3293_v8 = vld [vmem:[%s3284_s23 + $0x20] sm:$0xff]  ;;  %3206 = vmatprep.subr.msk.bf16.mxu1 %vm344_vm0, %v280_v5  ;;  %v2531_v9 = vld [vmem:[%s3284_s23 + $0x30] sm:$0xff]  ;;  %3211 = vmatprep.subr.msk.bf16.mxu0 %vm344_vm0, %v2581_v6  ;;  %v1436_v24 = vsel %vm344_vm0, %v2581_v6, 0  ;;  %vm2386_vm4 = vcmask 130048  }
  0x11   : > { %v3299_v10 = vld [vmem:[%s3284_s23 + $0x38] sm:$0xff]  ;;  %v3302_v11 = vld [vmem:[%s3284_s23 + $0x28] sm:$0xff]  ;;  %v295_v13 = vpack.c.bf16 %v3293_v8, %v3290_v7  ;;  %v3310_v15 = vld [vmem:[%s3284_s23 + $0x40] sm:$0xff]  ;;  %v3314_v17 = vrot.slane %v2531_v9, 1  ;;  %vm255_vm2 = vcmp.lt.s32.totalorder %v3304_v12, 7  ;;  %v4399_v38 = vrot.slane %v3293_v8, 7 }
  0x12   : > { %v1181_v14 = vpack.c.bf16 %v3299_v10, %v2531_v9  ;;  %v2534_v16 = vld [vmem:[%s3284_s23 + $0x48] sm:$0xff]  ;;  %v4397_v18 = vrot.slane %v3302_v11, 1  ;;  %v296_v19 = vpack.c.bf16 %v2531_v9, %v3302_v11  ;;  %v926_v21 = vrot.slane %v3299_v10, 1  ;;  %v3333_v25 = vld [vmem:[%s3284_s23 + $0x50] sm:$0xff]  ;;  %v3336_v26 = vld [vmem:[%s3284_s23 + $0x58] sm:$0xff]  ;;  %p147_p3 = scmp.lt.s32.totalorder %s146_s9, 47 }
  0x13   : > { %2779 = vmatprep.mubr.msk.bf16.mxu1 %vm307_vm1, %v295_v13  ;;  %4452 = vst [vmem:[#allocation4_spill] sm:$0xff] %v3314_v17  ;;  %v1182_v23 = vpack.c.bf16 %v2534_v16, %v3310_v15  ;;  %v297_v28 = vpack.c.bf16 %v3310_v15, %v3299_v10  ;;  %v2618_v29 = vld [vmem:[%s4394_s1 + $0x18] sm:$0xf]  ;;  %v3352_v30 = vld [vmem:[%s4394_s1 + $0x8] sm:$0xf]  ;;  %v1183_v31 = vpack.c.bf16 %v3336_v26, %v3333_v25  ;;  %v3358_v32 = vld [vmem:[%s3284_s23 + $0x60] sm:$0xff] }
  0x14   : > { %2883 = vmatprep.mubr.msk.bf16.mxu0 %vm307_vm1, %v1181_v14  ;;  %v3327_v22 = vsel %vm255_vm2, %v4397_v18, %v3314_v17  ;;  %2780 = vmatmul.mubr.msk.bf16.vlgmr.msra.gmra.mrb[0].mxu1 %vm307_vm1, %v296_v19  ;;  %v3341_v27 = vsel %vm255_vm2, %v3314_v17, %v926_v21  ;;  %v3361_v33 = vld [vmem:[%s3284_s23 + $0x68] sm:$0xff]  ;;  %v3364_v34 = vpack.c.bf16 %v3333_v25, %v2534_v16  ;;  %v3367_v35 = vld [vmem:[%s3284_s23 + $0x70] sm:$0xff]  ;;  %v3370_v36 = vld [vmem:[%s3284_s23 + $0x78] sm:$0xff]  ;;  %v3381_v39 = vrot.slane %v2531_v9, 7  ;;  %s4612_s9 = smov (!%p147_p3, %s146_s9), 47 }
  0x15   : > { %2804 = vmatpush3.bf16.msra.mxu1 %v514_v20  ;;  %2884 = vmatmul.mubr.msk.bf16.vlgmr.msra.gmra.mrb[0].mxu0 %vm307_vm1, %v1182_v23  ;;  %4453 = vst [vmem:[#allocation5_spill] sm:$0xff] %v3361_v33  ;;  %4455 = vst [vmem:[#allocation7_spill] sm:$0xff] %v3367_v35  ;;  %v3378_v37 = vpack.c.bf16 %v3358_v32, %v3336_v26  ;;  %v1184_v40 = vpack.c.bf16 %v3361_v33, %v3358_v32  ;;  %v4398_v41 = vrot.slane %v3299_v10, 7  ;;  %v3427_v56 = vld [vmem:[%s3284_s23 + $0x80] sm:$0xff]  ;;  %v3430_v57 = vld [vmem:[%s3284_s23 + $0x88] sm:$0xff]  ;;  %s2468_s14 = sshll.u32 %s4612_s9, 3 }
  0x16   : > { %2908 = vmatpush3.bf16.msra.mxu0 %v1436_v24  ;;  %2783 = vmatprep.mubr.msk.bf16.mxu1 %vm307_vm1, %v297_v28  ;;  %4454 = vst [vmem:[#allocation6_spill] sm:$0xff] %v3364_v34  ;;  %4456 = vst [vmem:[#allocation8_spill] sm:$0xff] %v3370_v36  ;;  %v182_v42 = vrot.slane %v3302_v11, 7  ;;  %v879_v43 = vrot.slane %v3310_v15, 7  ;;  %v1185_v44 = vpack.c.bf16 %v3370_v36, %v3367_v35  ;;  %vm206_vm3 = vcmp.lt.s32.totalorder %v3304_v12, 1  ;;  %v3477_v23 = vld [vmem:[%s3284_s23 + $0x90] sm:$0xff]  ;;  %s4317_s16 = scalar_lea.vmem %s4396_s3, %s2468_s14 }
  0x17   : > { %3212 = vmatprep.subr.msk.bf16.mxu0 %vm344_vm0, %v2618_v29  ;;  %3207 = vmatprep.subr.msk.bf16.mxu1 %vm344_vm0, %v3352_v30  ;;  %4457 = vst [vmem:[#allocation9_spill] sm:$0xff] %v3378_v37  ;;  %4458 = vst [vmem:[#allocation10_spill] sm:$0xff] %v3381_v39  ;;  %v3391_v45 = vrot.slane %v2534_v16, 7  ;;  %v927_v46 = vrot.slane %v3310_v15, 1  ;;  %v3396_v47 = vrot.slane %v2534_v16, 1  ;;  %v3405_v51 = vsel %vm344_vm0, %v2618_v29, 0 }
  0x18   : > { %2887 = vmatprep.mubr.msk.bf16.mxu0 %vm307_vm1, %v1183_v31  ;;  %v3410_v52 = vsel %vm206_vm3, %v182_v42, %v3381_v39  ;;  %v3416_v53 = vsel %vm206_vm3, %v4399_v38, %v182_v42  ;;  %v3422_v54 = vsel %vm206_vm3, %v4398_v41, %v879_v43  ;;  %v929_v55 = vrot.slane %v3333_v25, 1  ;;  %4461 = vst [vmem:[#allocation13_spill] sm:$0xff] %v3427_v56  ;;  %v3536_v63 = vld [vmem:[%s3284_s23 + $0xb8] sm:$0xff]  ;;  %v3539_v3 = vld [vmem:[%s3284_s23 + $0xc0] sm:$0xff]  ;;  %v3542_v62 = vld [vmem:[%s3284_s23 + $0xd0] sm:$0xff] }
  0x19   : > { %4459 = vst [vmem:[#allocation11_spill] sm:$0xff] %v3391_v45  ;;  %4460 = vst [vmem:[#allocation12_spill] sm:$0xff] %v3396_v47  ;;  %v3435_v58 = vsel %vm206_vm3, %v879_v43, %v3391_v45  ;;  %v3439_v59 = vpack.c.bf16 %v3367_v35, %v3361_v33  ;;  %v3443_v60 = vsel %vm255_vm2, %v926_v21, %v927_v46  ;;  %v930_v2 = vrot.slane %v3336_v26, 1  ;;  %v3489_v43 = vld [vmem:[%s3284_s23 + $0x98] sm:$0xff] }
  0x1a   : > { %4463 = vst [vmem:[#allocation15_spill] sm:$0xff] %v3443_v60  ;;  %v3448_v61 = vsel %vm255_vm2, %v927_v46, %v3396_v47  ;;  %v3454_v0 = vpack.c.bf16 %v3427_v56, %v3370_v36  ;;  %v931_v5 = vrot.slane %v3358_v32, 1  ;;  %v1186_v6 = vpack.c.bf16 %v3430_v57, %v3427_v56  ;;  %4465 = vst [vmem:[#allocation17_spill] sm:$0xff] %v3477_v23 }
  0x1b   : > { %4462 = vst [vmem:[#allocation14_spill] sm:$0xff] %v3439_v59  ;;  %v3464_v9 = vsel %vm255_vm2, %v3396_v47, %v929_v55  ;;  %v932_v14 = vrot.slane %v3361_v33, 1  ;;  %v1387_v15 = vpack.c.bf16 %v3443_v60, %v3341_v27  ;;  %v933_v20 = vrot.slane %v3367_v35, 1  ;;  %4466 = vst [vmem:[#allocation18_spill] sm:$0xff] %v3489_v43  ;;  %v3589_v47 = vld [vmem:[%s4394_s1 + $0x1c] sm:$0xf] }
  0x1c   : > { %2784 = vmatmul.mubr.msk.bf16.gmra.mrb[4].mxu1 %vm307_vm1, %v3364_v34  ;;  %4464 = vst [vmem:[#allocation16_spill] sm:$0xff] %v3454_v0  ;;  %v934_v21 = vrot.slane %v3370_v36, 1  ;;  %v935_v29 = vrot.slane %v3427_v56, 1  ;;  %v936_v31 = vrot.slane %v3430_v57, 1  ;;  %v246_v42 = vrot.slane %v3477_v23, 1  ;;  %4472 = vst [vmem:[#allocation24_spill] sm:$0xff] %v3536_v63 }
  0x1d   : > { %2787 = vmatprep.mubr.msk.bf16.mxu1 %vm307_vm1, %v3378_v37  ;;  %2888 = vmatmul.mubr.msk.bf16.gmra.mrb[4].mxu0 %vm307_vm1, %v1184_v40  ;;  %v3496_v46 = vsel %vm255_vm2, %v930_v2, %v931_v5  ;;  %v3500_v24 = vsel %vm255_vm2, %v929_v55, %v930_v2  ;;  %v1388_v16 = vpack.c.bf16 %v3464_v9, %v3448_v61  ;;  %v247_v49 = vrot.slane %v3489_v43, 1  ;;  %v3514_v2 = vld [vmem:[%s3284_s23 + $0xa8] sm:$0xff] }
  0x1e   : > { %2891 = vmatprep.mubr.msk.bf16.mxu0 %vm307_vm1, %v1185_v44  ;;  %v3492_v44 = vld [vmem:[%s3284_s23 + $0xa0] sm:$0xff]  ;;  %4469 = vst [vmem:[#allocation21_spill] sm:$0xff] %v3514_v2  ;;  %v3521_v50 = vsel %vm255_vm2, %v932_v14, %v933_v20  ;;  %v3525_v18 = vsel %vm255_vm2, %v931_v5, %v932_v14  ;;  %v1389_v13 = vpack.c.bf16 %v3496_v46, %v3500_v24  ;;  %4473 = vst [vmem:[#allocation25_spill] sm:$0xff] %v3539_v3  ;;  %v3574_v37 = vld [vmem:[%s3284_s23 + $0xc8] sm:$0xff] }
  0x1f   : > { %4467 = vst [vmem:[#allocation19_spill] sm:$0xff] %v3492_v44  ;;  %v248_v55 = vrot.slane %v3492_v44, 1  ;;  %v3529_v19 = vpack.c.bf16 %v3492_v44, %v3489_v43  ;;  %4474 = vst [vmem:[#allocation26_spill] sm:$0xff] %v3542_v62  ;;  %v249_v5 = vrot.slane %v3514_v2, 1  ;;  %v3547_v14 = vsel %vm255_vm2, %v934_v21, %v935_v29 }
  0x20   : > { %v3551_v41 = vsel %vm255_vm2, %v933_v20, %v934_v21  ;;  %v3554_v28 = vrot.slane %v3542_v62, 7  ;;  %v1390_v38 = vpack.c.bf16 %v3521_v50, %v3525_v18  ;;  %v200_v4 = vrot.slane %v3536_v63, 7  ;;  %4477 = vst [vmem:[#allocation29_spill] sm:$0xff] %v3574_v37  ;;  %4478 = vst [vmem:[#allocation30_spill] sm:$0xff] %v3589_v47 }
  0x21   : > { %4471 = vst [vmem:[#allocation23_spill] sm:$0xff] %v3529_v19  ;;  %v251_v21 = vrot.slane %v3536_v63, 1  ;;  %v253_v34 = vrot.slane %v3574_v37, 1  ;;  %v3584_v1 = vsel %vm255_vm2, %v936_v31, %v246_v42  ;;  %v4480_v20 = vrot.slane %v3290_v7, 7 }
  0x22   : > { %v3636_v36 = vsel %vm255_vm2, %v248_v55, %v249_v5  ;;  %v4483_v33 = vrot.slane %v3333_v25, 7 }
  0x23   : > { %v4481_v56 = vmov %v4480_v20 }
  0x24   : > { %2788 = vmatmul.mubr.msk.bf16.gmra.mrb[8].mxu1 %vm307_vm1, %v3439_v59  ;;  %v3571_v59 = vpack.c.bf16 %v3539_v3, %v3536_v63  ;;  %v4479_v63 = vrot.slane %v3293_v8, 7  ;;  %v3609_v35 = vsel %vm206_vm3, %v3554_v28, %v4481_v56 }
  0x25   : > { %2791 = vmatprep.mubr.msk.bf16.mxu1 %vm307_vm1, %v3454_v0  ;;  %2892 = vmatmul.mubr.msk.bf16.gmra.mrb[8].mxu0 %vm307_vm1, %v1186_v6  ;;  %v3505_v6 = vpack.c.bf16 %v3477_v23, %v3430_v57  ;;  %v252_v0 = vrot.slane %v3539_v3, 1 }
  0x26   : > { %2909 = vmatprep.mubr.msk.bf16.mxu0 %vm307_vm1, %v1387_v15  ;;  %v3517_v15 = vld [vmem:[%s3284_s23 + $0xb0] sm:$0xff]  ;;  %4476 = vst [vmem:[#allocation28_spill] sm:$0xff] %v3571_v59  ;;  %v3602_v17 = vsel %vm206_vm3, %v4480_v20, %v4479_v63  ;;  %v3624_v63 = vrot.slane %v3542_v62, 1  ;;  %v3628_v20 = vsel %vm255_vm2, %v246_v42, %v247_v49 }
  0x27   : > { %4468 = vst [vmem:[#allocation20_spill] sm:$0xff] %v3505_v6  ;;  %4470 = vst [vmem:[#allocation22_spill] sm:$0xff] %v3517_v15  ;;  %v250_v40 = vrot.slane %v3517_v15, 1  ;;  %v3559_v48 = vpack.c.bf16 %v3517_v15, %v3514_v2 }
  0x29   : > { %4475 = vst [vmem:[#allocation27_spill] sm:$0xff] %v3559_v48  ;;  %v3632_v56 = vsel %vm255_vm2, %v249_v5, %v250_v40  ;;  %v3651_v42 = vsel %vm255_vm2, %v250_v40, %v251_v21 }
  0x2c   : > { %2792 = vmatmul.mubr.msk.bf16.gmra.mrb[12].mxu1 %vm307_vm1, %v3505_v6  ;;  %v1391_v6 = vpack.c.bf16 %v3547_v14, %v3551_v41 }
  0x2d   : > { %2795 = vmatprep.mubr.msk.bf16.mxu1 %vm307_vm1, %v3529_v19  ;;  %2910 = vmatmul.mubr.msk.bf16.vlgmr.msra.gmra.mrb[0].mxu0 %vm307_vm1, %v1388_v16  ;;  %v3594_v19 = vsel %vm255_vm2, %v935_v29, %v936_v31  ;;  %v3613_v16 = vsel %vm255_vm2, %v247_v49, %v248_v55  ;;  %v3616_v29 = vld [vmem:[%s3284_s23 + $0xd8] sm:$0xff]  ;;  %v3619_v31 = vld [vmem:[%s3284_s23 + $0xe0] sm:$0xff]  ;;  %v3647_v49 = vsel %vm255_vm2, %v251_v21, %v252_v0  ;;  %v4486_v21 = vrot.slane %v3358_v32, 7 }
  0x2e   : > { %2934 = vmatpush3.bf16.msra.mxu0 %v3405_v51  ;;  %2913 = vmatprep.mubr.msk.bf16.mxu0 %vm307_vm1, %v1389_v13  ;;  %v4482_v51 = vrot.slane %v3299_v10, 7  ;;  %v3658_v55 = vsel %vm206_vm3, %v3391_v45, %v4483_v33  ;;  %v3664_v10 = vpack.c.bf16 %v3542_v62, %v3574_v37  ;;  %v1392_v5 = vpack.c.bf16 %v3584_v1, %v3594_v19  ;;  %v3681_v45 = vld [vmem:[%s3284_s23 + $0x100] sm:$0xff] }
  0x2f   : > { %3213 = vmatprep.subr.msk.bf16.mxu0 %vm344_vm0, %v3589_v47  ;;  %v946_v40 = vrot.slane %v3616_v29, 1  ;;  %v1393_v33 = vpack.c.bf16 %v3613_v16, %v3628_v20  ;;  %v3678_v62 = vsel %vm344_vm0, %v3352_v30, 0  ;;  %v3696_v30 = vsel %vm255_vm2, %v253_v34, %v3624_v63 }
  0x30   : > { %v3643_v13 = vsel %vm206_vm3, %v3381_v39, %v4482_v51  ;;  %4484 = vst [vmem:[#allocation31_spill] sm:$0xff] %v3664_v10  ;;  %v281_v51 = vpack.c.bf16 %v3602_v17, %v3609_v35  ;;  %4485 = vst [vmem:[#allocation32_spill] sm:$0xff] %v3678_v62  ;;  %v3700_v39 = vsel %vm255_vm2, %v252_v0, %v253_v34  ;;  %v4487_v47 = vrot.slane %v3336_v26, 7 }
  0x31   : > { %v4491_v34 = vrot.slane %v3619_v31, 1  ;;  %v3729_v26 = vsel %vm255_vm2, %v3624_v63, %v946_v40 }
  0x32   : > { %v3708_v17 = vsel %vm206_vm3, %v4487_v47, %v4486_v21  ;;  %v4489_v35 = vmov %v4487_v47  ;;  %4493 = vst [vmem:[#allocation35_spill] sm:$0xff] %v3729_v26  ;;  %v4494_v47 = vrot.slane %v3477_v23, 7  ;;  %v3832_v23 = vpack.c.bf16 %v3525_v18, %v3496_v46 }
  0x33   : > { %4488 = vst [vmem:[#allocation33_spill] sm:$0xff] %v3708_v17  ;;  %v3724_v0 = vsel %vm255_vm2, %v946_v40, %v4491_v34  ;;  %v4497_v34 = vrot.slane %v3489_v43, 7  ;;  %v3852_v18 = vpack.c.bf16 %v3594_v19, %v3547_v14  ;;  %v4512_v14 = vrot.slane %v3539_v3, 7 }
  0x34   : > { %2796 = vmatmul.mubr.msk.bf16.gmra.mrb[16].mxu1 %vm307_vm1, %v3559_v48  ;;  %v4490_v48 = vrot.slane %v3333_v25, 7  ;;  %4492 = vst [vmem:[#allocation34_spill] sm:$0xff] %v3724_v0 }
  0x35   : > { %2799 = vmatprep.mubr.msk.bf16.mxu1 %vm307_vm1, %v3571_v59  ;;  %2914 = vmatmul.mubr.msk.bf16.gmra.mrb[4].mxu0 %vm307_vm1, %v1390_v38  ;;  %v4498_v25 = vmov %v4497_v34  ;;  %v4499_v59 = vmov %v4494_v47  ;;  %v4501_v38 = vrot.slane %v3514_v2, 7  ;;  %v4506_v2 = vrot.slane %v3293_v8, 1 }
  0x36   : > { %v3716_v62 = vsel %vm206_vm3, %v4490_v48, %v4489_v35  ;;  %v4495_v48 = vrot.slane %v3430_v57, 7  ;;  %v4496_v35 = vrot.slane %v3492_v44, 7  ;;  %v3755_v0 = vsel %vm206_vm3, %v4499_v59, %v4498_v25  ;;  %2917 = vmatprep.mubr.msk.bf16.mxu0 %vm307_vm1, %v1391_v6 }
  0x37   : > { %v4502_v26 = vmov %v4501_v38  ;;  %v4503_v59 = vrot.slane %v3539_v3, 7  ;;  %v4507_v6 = vmov %v4506_v2  ;;  %v1635_v44 = vrot.slane %v3616_v29, 7 }
  0x38   : > { %v3738_v21 = vsel %vm206_vm3, %v4495_v48, %v4494_v47  ;;  %v3747_v40 = vsel %vm206_vm3, %v4497_v34, %v4496_v35  ;;  %v4500_v47 = vrot.slane %v3517_v15, 7  ;;  %v3771_v34 = vsel %vm206_vm3, %v4496_v35, %v4502_v26  ;;  %v3803_v15 = vld [vmem:[%s3284_s23 + $0xf0] sm:$0xff] }
  0x39   : > { %v3778_v25 = vsel %vm206_vm3, %v200_v4, %v4503_v59  ;;  %v4508_v35 = vrot.slane %v3290_v7, 1  ;;  %v1686_v3 = vrot.slane %v3803_v15, 1 }
  0x3a   : > { %v3763_v48 = vsel %vm206_vm3, %v4501_v38, %v4500_v47  ;;  %v4504_v43 = vmov %v4500_v47  ;;  %v4505_v38 = vrot.slane %v3302_v11, 1  ;;  %v4509_v11 = vrot.slane %v3574_v37, 7 }
  0x3b   : > { %v3784_v47 = vsel %vm206_vm3, %v4504_v43, %v200_v4  ;;  %v3800_v59 = vsel %vm255_vm2, %v4508_v35, %v4507_v6  ;;  %v3806_v4 = vld [vmem:[%s3284_s23 + $0xf8] sm:$0xff]  ;;  %v3822_v6 = vld [vmem:[%s3284_s23 + $0xe8] sm:$0xff]  ;;  %v3826_v35 = vpack.c.bf16 %v3500_v24, %v3464_v9  ;;  %v3848_v24 = vsel %vm206_vm3, %v3554_v28, %v1635_v44 }
  0x3c   : > { %v3792_v26 = vsel %vm255_vm2, %v4506_v2, %v4505_v38  ;;  %v3813_v43 = vsel %vm206_vm3, %v4509_v11, %v3554_v28  ;;  %v1636_v11 = vrot.slane %v3619_v31, 7  ;;  %v1637_v8 = vrot.slane %v3822_v6, 7  ;;  %2800 = vmatmul.mubr.msk.bf16.gmra.mrb[20].mxu1 %vm307_vm1, %v3664_v10 }
  0x3d   : > { %v1638_v2 = vrot.slane %v3803_v15, 7  ;;  %v3838_v38 = vpack.c.bf16 %v3551_v41, %v3521_v50  ;;  %v1639_v60 = vrot.slane %v3806_v4, 7  ;;  %v4510_v28 = vrot.slane %v3681_v45, 7  ;;  %2805 = vmatprep.mubr.msk.bf16.mxu1 %vm307_vm1, %v281_v51  ;;  %2918 = vmatmul.mubr.msk.bf16.gmra.mrb[8].mxu0 %vm307_vm1, %v1392_v5  ;;  %v4524_v5 = vld [vmem:[#allocation7_spill] sm:$0xff] }
  0x3e   : > { %v3843_v9 = vsel %vm206_vm3, %v1635_v44, %v1636_v11  ;;  %v3864_v46 = vsel %vm206_vm3, %v1636_v11, %v1637_v8  ;;  %v4511_v44 = vrot.slane %v3574_v37, 7  ;;  %2921 = vmatprep.mubr.msk.bf16.mxu0 %vm307_vm1, %v1393_v33  ;;  %v1687_v37 = vrot.slane %v3806_v4, 1 }
  0x3f   : > { %v3860_v50 = vsel %vm206_vm3, %v1637_v8, %v1638_v2  ;;  %v3870_v19 = vsel %vm206_vm3, %v1639_v60, %v4510_v28  ;;  %v3885_v10 = vsel %vm206_vm3, %v1638_v2, %v1639_v60  ;;  %v3889_v28 = vpack.c.bf16 %v3628_v20, %v3584_v1  ;;  %v4522_v2 = vld [vmem:[#allocation8_spill] sm:$0xff] }
  0x40   : > { %v3879_v41 = vsel %vm206_vm3, %v4512_v14, %v4511_v44  ;;  %v3897_v44 = vpack.c.bf16 %v3636_v36, %v3613_v16  ;;  %v3901_v14 = vpack.c.bf16 %v3651_v42, %v3632_v56  ;;  %v3905_v60 = vpack.c.bf16 %v3700_v39, %v3647_v49  ;;  %v4517_v16 = vld [vmem:[#allocation10_spill] sm:$0xff] }
  0x41   : > { %v4515_v1 = vrot.slane %v3290_v7, 1  ;;  %v3919_v33 = vsel %vm206_vm3, %v1637_v8, %v4517_v16  ;;  %v4519_v7 = vld [vmem:[#allocation5_spill] sm:$0xff]  ;;  %v4523_v51 = vrot.slane %v4522_v2, 7  ;;  %v4555_v12 = vpack.c.bf16 %v3792_v26, %v3800_v59  ;;  %v4559_v26 = vld [vmem:[#allocation2_spill] sm:$0xff] }
  0x42   : > { %4513 = vst [vmem:[#allocation36_spill] sm:$0xff] %v3901_v14  ;;  %4514 = vst [vmem:[#allocation37_spill] sm:$0xff] %v3905_v60  ;;  %v4520_v11 = vrot.slane %v4519_v7, 7  ;;  %v4521_v60 = vrot.slane %v3358_v32, 7  ;;  %v4528_v16 = vrot.slane %v4519_v7, 7  ;;  %v4530_v14 = vld [vmem:[#allocation13_spill] sm:$0xff] }
  0x43   : > { %v3912_v20 = vsel %vm255_vm2, %v3624_v63, %v4515_v1  ;;  %4518 = vst [vmem:[#allocation10_spill] sm:$0xff] %v3919_v33  ;;  %v3936_v1 = vld [vmem:[%s4394_s1 + $0xc] sm:$0xf]  ;;  %v4525_v33 = vrot.slane %v4524_v5, 7  ;;  %v4533_v5 = vpack.c.bf16 %v3422_v54, %v3643_v13  ;;  %v4563_v59 = vld [vmem:[#allocation6_spill] sm:$0xff] }
  0x44   : > { %4516 = vst [vmem:[#allocation38_spill] sm:$0xff] %v3912_v20  ;;  %v3931_v63 = vsel %vm206_vm3, %v4521_v60, %v4520_v11  ;;  %v4526_v11 = vpack.c.bf16 %v3410_v52, %v3416_v53  ;;  %v4531_v52 = vrot.slane %v4530_v14, 7  ;;  %v4545_v14 = vld [vmem:[#allocation4_spill] sm:$0xff] }
  0x45   : > { %v3948_v32 = vsel %vm206_vm3, %v4525_v33, %v4523_v51  ;;  %v4527_v8 = vmov %v4525_v33  ;;  %v4529_v33 = vrot.slane %v3430_v57, 7  ;;  %v4535_v57 = vmov %v4523_v51  ;;  %v4551_v60 = vld [vmem:[#allocation24_spill] sm:$0xff] }
  0x46   : > { %2806 = vmatmul.mubr.msk.bf16.vlgmr.msra.gmra.mrb[0].mxu1 %vm307_vm1, %v4526_v11  ;;  %v3962_v20 = vsel %vm206_vm3, %v4528_v16, %v4527_v8  ;;  %v4532_v11 = vld [vmem:[#allocation32_spill] sm:$0xff]  ;;  %v4534_v8 = vmov %v4531_v52 }
  0x47   : > { %v3972_v53 = vsel %vm206_vm3, %v4531_v52, %v4529_v33  ;;  %2830 = vmatpush3.bf16.msra.mxu1 %v4532_v11  ;;  %2809 = vmatprep.mubr.msk.bf16.mxu1 %vm307_vm1, %v4533_v5  ;;  %v3987_v16 = vsel %vm206_vm3, %v4535_v57, %v4534_v8  ;;  %v4536_v52 = vpack.c.bf16 %v3632_v56, %v3636_v36  ;;  %v948_v36 = vrot.slane %v3822_v6, 1 }
  0x48   : > { %3208 = vmatprep.subr.msk.bf16.mxu1 %vm344_vm0, %v3936_v1  ;;  %v4537_v11 = vpack.c.bf16 %v3647_v49, %v3651_v42  ;;  %v285_v49 = vpack.c.bf16 %v3708_v17, %v3716_v62  ;;  %v1396_v42 = vpack.c.bf16 %v3696_v30, %v3700_v39  ;;  %v4540_v56 = vpack.c.bf16 %v3658_v55, %v3435_v58  ;;  %v4548_v17 = vld [vmem:[#allocation11_spill] sm:$0xff] }
  0x49   : > { %2922 = vmatmul.mubr.msk.bf16.gmra.mrb[12].mxu0 %vm307_vm1, %v4536_v52  ;;  %v4538_v52 = vld [vmem:[#allocation35_spill] sm:$0xff]  ;;  %v4543_v39 = vrot.slane %v3619_v31, 1  ;;  %v972_v51 = vsel %vm255_vm2, %v948_v36, %v4545_v14  ;;  %v4549_v33 = vrot.slane %v3681_v45, 7  ;;  %v4550_v14 = vld [vmem:[#allocation22_spill] sm:$0xff]  ;;  %v4093_v7 = vsel %vm255_vm2, %v948_v36, %v1686_v3 }
  0x4a   : > { %2925 = vmatprep.mubr.msk.bf16.mxu0 %vm307_vm1, %v4537_v11  ;;  %v4539_v11 = vld [vmem:[#allocation34_spill] sm:$0xff] }
  0x4b   : > { %v1397_v5 = vpack.c.bf16 %v4539_v11, %v4538_v52  ;;  %v4035_v2 = vsel %vm255_vm2, %v4543_v39, %v948_v36  ;;  %v287_v39 = vpack.c.bf16 %v3987_v16, %v3948_v32  ;;  %v4556_v36 = vpack.c.bf16 %v3341_v27, %v3327_v22 }
  0x4c   : > { %4544 = vst [vmem:[#allocation5_spill] sm:$0xff] %v4035_v2  ;;  %v1398_v57 = vpack.c.bf16 %v972_v51, %v4035_v2  ;;  %v288_v51 = vpack.c.bf16 %v3738_v21, %v3972_v53  ;;  %v4554_v2 = vld [vmem:[#allocation12_spill] sm:$0xff]  ;;  %v4560_v22 = vpack.c.bf16 %v3843_v9, %v3848_v24  ;;  %v4561_v27 = vpack.c.bf16 %v3860_v50, %v3864_v46 }
  0x4e   : > { %2810 = vmatmul.mubr.msk.bf16.gmra.mrb[4].mxu1 %vm307_vm1, %v4540_v56  ;;  %v290_v56 = vpack.c.bf16 %v3763_v48, %v3771_v34 }
  0x4f   : > { %2813 = vmatprep.mubr.msk.bf16.mxu1 %vm307_vm1, %v285_v49 }
  0x51   : > { %2926 = vmatmul.mubr.msk.bf16.gmra.mrb[16].mxu0 %vm307_vm1, %v1396_v42  ;;  %v286_v42 = vpack.c.bf16 %v3962_v20, %v3931_v63 }
  0x52   : > { %2929 = vmatprep.mubr.msk.bf16.mxu0 %vm307_vm1, %v1397_v5  ;;  %v1664_v5 = vsel %vm206_vm3, %v4549_v33, %v4548_v17  ;;  %v289_v33 = vpack.c.bf16 %v3747_v40, %v3755_v0 }
  0x53   : > { %v1715_v8 = vpack.c.bf16 %v3658_v55, %v1664_v5 }
  0x56   : > { %2814 = vmatmul.mubr.msk.bf16.gmra.mrb[8].mxu1 %vm307_vm1, %v286_v42 }
  0x57   : > { %2817 = vmatprep.mubr.msk.bf16.mxu1 %vm307_vm1, %v287_v39 }
  0x59   : > { %2930 = vmatmul.mubr.msk.bf16.gmra.mrb[20].mxu0 %vm307_vm1, %v1398_v57  ;;  %v4552_v57 = vld [vmem:[#allocation30_spill] sm:$0xff] }
  0x5a   : > { %2935 = vmatprep.mubr.msk.bf16.mxu0 %vm307_vm1, %v1715_v8  ;;  %v1970_v5 = vsel %vm344_vm0, %v4552_v57, 0  ;;  %v2644_v8 = vld [vmem:[%s4394_s1 + $0x20] sm:$0xf]  ;;  %v1688_v57 = vrot.slane %v3681_v45, 1 }
  0x5b   : > { %v2176_v50 = vsel %vm344_vm0, %v2644_v8, 0 }
  0x5c   : > { %v4102_v11 = vsel %vm255_vm2, %v1687_v37, %v1688_v57  ;;  %v4107_v17 = vsel %vm255_vm2, %v1688_v57, %v4554_v2  ;;  %v1024_v2 = vsel %vm344_vm0, %v3936_v1, 0  ;;  %v4564_v1 = vld [vmem:[#allocation9_spill] sm:$0xff]  ;;  %v4570_v57 = vld [vmem:[#allocation38_spill] sm:$0xff] }
  0x5e   : > { %2818 = vmatmul.mubr.msk.bf16.gmra.mrb[12].mxu1 %vm307_vm1, %v288_v51 }
  0x5f   : > { %2821 = vmatprep.mubr.msk.bf16.mxu1 %vm307_vm1, %v289_v33 }
  0x61   : > { %2936 = vmatmul.mubr.msk.bf16.vlgmr.msra.gmra.mrb[0].mxu0 %vm307_vm1, %v285_v49  ;;  %v4089_v49 = vsel %vm255_vm2, %v1686_v3, %v1687_v37  ;;  %v2138_v3 = vpack.c.bf16 %v4107_v17, %v4102_v11  ;;  %v292_v37 = vpack.c.bf16 %v3813_v43, %v3879_v41  ;;  %v4311_v11 = vld [vmem:[%s4395_s2] ss:$0 sm:$0xff] }
  0x62   : > { %2960 = vmatpush3.bf16.msra.mxu0 %v1970_v5  ;;  %2939 = vmatprep.mubr.msk.bf16.mxu0 %vm307_vm1, %v286_v42  ;;  %v291_v5 = vpack.c.bf16 %v3778_v25, %v3784_v47  ;;  %v2137_v42 = vpack.c.bf16 %v4089_v49, %v4093_v7 }
  0x63   : > { %3214 = vmatprep.subr.msk.bf16.mxu0 %vm344_vm0, %v2644_v8  ;;  %v4569_v8 = vld [vmem:[#allocation20_spill] sm:$0xff] }
  0x66   : > { %2822 = vmatmul.mubr.msk.bf16.gmra.mrb[16].mxu1 %vm307_vm1, %v290_v56 }
  0x67   : > { %2825 = vmatprep.mubr.msk.bf16.mxu1 %vm307_vm1, %v291_v5 }
  0x69   : > { %2940 = vmatmul.mubr.msk.bf16.gmra.mrb[4].mxu0 %vm307_vm1, %v287_v39  ;;  %v4557_v39 = vld [vmem:[#allocation15_spill] sm:$0xff] }
  0x6a   : > { %2943 = vmatprep.mubr.msk.bf16.mxu0 %vm307_vm1, %v288_v51  ;;  %v4558_v51 = vpack.c.bf16 %v3448_v61, %v4557_v39  ;;  %v4562_v61 = vpack.c.bf16 %v3870_v19, %v3885_v10  ;;  %v4566_v10 = vld [vmem:[#allocation36_spill] sm:$0xff]  ;;  %v4567_v19 = vld [vmem:[#allocation37_spill] sm:$0xff]  ;;  %v4576_v39 = vpack.c.bf16 %v3435_v58, %v3422_v54  ;;  %v4583_v54 = vpack.c.bf16 %v3948_v32, %v3962_v20 }
  0x6b   : > { %v4584_v58 = vpack.c.bf16 %v3619_v31, %v3616_v29  ;;  %v4587_v20 = vpack.c.bf16 %v3755_v0, %v3738_v21  ;;  %v4590_v32 = vpack.c.bf16 %v3784_v47, %v3763_v48  ;;  %v4592_v0 = vpack.c.bf16 %v3848_v24, %v3813_v43  ;;  %v4594_v21 = vld [vmem:[#allocation18_spill] sm:$0xff] }
  0x6c   : > { %v4601_v43 = vpack.c.bf16 %v4538_v52, %v3696_v30  ;;  %v4605_v24 = vld [vmem:[#allocation26_spill] sm:$0xff] }
  0x6e   : > { %2826 = vmatmul.mubr.msk.bf16.gmra.mrb[20].mxu1 %vm307_vm1, %v292_v37 }
  0x6f   : > { %2831 = vmatprep.mubr.msk.bf16.mxu1 %vm307_vm1, %v4555_v12 }
  0x71   : > { %2944 = vmatmul.mubr.msk.bf16.gmra.mrb[8].mxu0 %vm307_vm1, %v289_v33  ;;  %v4568_v33 = vld [vmem:[#allocation16_spill] sm:$0xff] }
  0x72   : > { %2947 = vmatprep.mubr.msk.bf16.mxu0 %vm307_vm1, %v290_v56  ;;  %v4565_v56 = vld [vmem:[#allocation14_spill] sm:$0xff] }
  0x76   : > { %2832 = vmatmul.mubr.msk.bf16.vlgmr.msra.gmra.mrb[0].mxu1 %vm307_vm1, %v4556_v36  ;;  %v4575_v36 = vld [vmem:[#allocation27_spill] sm:$0xff] }
  0x77   : > { %2856 = vmatpush3.bf16.msra.mxu1 %v1024_v2  ;;  %2835 = vmatprep.mubr.msk.bf16.mxu1 %vm307_vm1, %v4558_v51  ;;  %v4574_v2 = vld [vmem:[#allocation23_spill] sm:$0xff] }
  0x78   : > { %3210 = vmatprep.subr.msk.bf16.mxu1 %vm344_vm0, %v4559_v26  ;;  %v4577_v51 = vld [vmem:[#allocation3_spill] sm:$0xff]  ;;  %v4578_v26 = vpack.c.bf16 %v3716_v62, %v3658_v55  ;;  %v4585_v62 = vpack.c.bf16 %v3803_v15, %v3822_v6  ;;  %v4586_v55 = vpack.c.bf16 %v3972_v53, %v3987_v16  ;;  %v4589_v15 = vpack.c.bf16 %v3771_v34, %v3747_v40  ;;  %v4595_v40 = vld [vmem:[#allocation17_spill] sm:$0xff] }
  0x79   : > { %2948 = vmatmul.mubr.msk.bf16.gmra.mrb[12].mxu0 %vm307_vm1, %v291_v5  ;;  %v4571_v5 = vpack.c.bf16 %v4570_v57, %v3696_v30  ;;  %v4596_v48 = vpack.c.bf16 %v4594_v21, %v4595_v40  ;;  %v4597_v34 = vld [vmem:[#allocation21_spill] sm:$0xff]  ;;  %v4610_v30 = vpack.c.bf16 %v3822_v6, %v3619_v31 }
  0x7a   : > { %2951 = vmatprep.mubr.msk.bf16.mxu0 %vm307_vm1, %v292_v37  ;;  %v4572_v37 = vld [vmem:[#allocation10_spill] sm:$0xff] }
  0x7b   : > { %v4573_v12 = vpack.c.bf16 %v3643_v13, %v4572_v37  ;;  %v4579_v13 = vld [vmem:[#allocation28_spill] sm:$0xff] }
  0x7e   : > { %2836 = vmatmul.mubr.msk.bf16.gmra.mrb[4].mxu1 %vm307_vm1, %v3826_v35 }
  0x7f   : > { %2839 = vmatprep.mubr.msk.bf16.mxu1 %vm307_vm1, %v3832_v23 }
  0x81   : > { %2952 = vmatmul.mubr.msk.bf16.gmra.mrb[16].mxu0 %vm307_vm1, %v4560_v22  ;;  %v4580_v22 = vld [vmem:[#allocation31_spill] sm:$0xff] }
  0x82   : > { %2955 = vmatprep.mubr.msk.bf16.mxu0 %vm307_vm1, %v4561_v27  ;;  %v4581_v27 = vld [vmem:[#allocation33_spill] sm:$0xff] }
  0x86   : > { %2840 = vmatmul.mubr.msk.bf16.gmra.mrb[8].mxu1 %vm307_vm1, %v3838_v38 }
  0x87   : > { %2843 = vmatprep.mubr.msk.bf16.mxu1 %vm307_vm1, %v3852_v18 }
  0x89   : > { %2956 = vmatmul.mubr.msk.bf16.gmra.mrb[20].mxu0 %vm307_vm1, %v4562_v61  ;;  %v4582_v61 = vpack.c.bf16 %v3931_v63, %v4581_v27  ;;  %v4588_v63 = vpack.c.bf16 %v3681_v45, %v3806_v4  ;;  %v4591_v45 = vpack.c.bf16 %v3879_v41, %v3778_v25  ;;  %v4598_v25 = vld [vmem:[#allocation19_spill] sm:$0xff]  ;;  %v4600_v4 = vpack.c.bf16 %v4551_v60, %v4550_v14  ;;  %v4607_v41 = vld [vmem:[#allocation5_spill] sm:$0xff] }
  0x8a   : > { %2961 = vmatprep.mubr.msk.bf16.mxu0 %vm307_vm1, %v4563_v59  ;;  %v4599_v47 = vpack.c.bf16 %v4597_v34, %v4598_v25 }
  0x8e   : > { %2844 = vmatmul.mubr.msk.bf16.gmra.mrb[12].mxu1 %vm307_vm1, %v3889_v28 }
  0x8f   : > { %2847 = vmatprep.mubr.msk.bf16.mxu1 %vm307_vm1, %v3897_v44 }
  0x91   : > { %2962 = vmatmul.mubr.msk.bf16.vlgmr.msra.gmra.mrb[0].mxu0 %vm307_vm1, %v4564_v1 }
  0x92   : > { %2986 = vmatpush3.bf16.msra.mxu0 %v2176_v50  ;;  %2965 = vmatprep.mubr.msk.bf16.mxu0 %vm307_vm1, %v4565_v56 }
  0x96   : > { %2848 = vmatmul.mubr.msk.bf16.gmra.mrb[16].mxu1 %vm307_vm1, %v4566_v10 }
  0x97   : > { %2851 = vmatprep.mubr.msk.bf16.mxu1 %vm307_vm1, %v4567_v19 }
  0x99   : > { %2966 = vmatmul.mubr.msk.bf16.gmra.mrb[4].mxu0 %vm307_vm1, %v4568_v33 }
  0x9a   : > { %2969 = vmatprep.mubr.msk.bf16.mxu0 %vm307_vm1, %v4569_v8 }
  0x9e   : > { %2852 = vmatmul.mubr.msk.bf16.gmra.mrb[20].mxu1 %vm307_vm1, %v4571_v5 }
  0x9f   : > { %2857 = vmatprep.mubr.msk.bf16.mxu1 %vm307_vm1, %v4573_v12 }
  0xa1   : > { %2970 = vmatmul.mubr.msk.bf16.gmra.mrb[8].mxu0 %vm307_vm1, %v4574_v2 }
  0xa2   : > { %2973 = vmatprep.mubr.msk.bf16.mxu0 %vm307_vm1, %v4575_v36 }
  0xa6   : > { %2858 = vmatmul.mubr.msk.bf16.vlgmr.msra.gmra.mrb[0].mxu1 %vm307_vm1, %v4576_v39 }
  0xa7   : > { %3012 = vmatpush3.bf16.msra.mxu1 %v4577_v51  ;;  %2861 = vmatprep.mubr.msk.bf16.mxu1 %vm307_vm1, %v4578_v26 }
  0xa9   : > { %2974 = vmatmul.mubr.msk.bf16.gmra.mrb[12].mxu0 %vm307_vm1, %v4579_v13 }
  0xaa   : > { %2977 = vmatprep.mubr.msk.bf16.mxu0 %vm307_vm1, %v4580_v22 }
  0xae   : > { %2862 = vmatmul.mubr.msk.bf16.gmra.mrb[4].mxu1 %vm307_vm1, %v4582_v61 }
  0xaf   : > { %2865 = vmatprep.mubr.msk.bf16.mxu1 %vm307_vm1, %v4583_v54 }
  0xb1   : > { %2978 = vmatmul.mubr.msk.bf16.gmra.mrb[16].mxu0 %vm307_vm1, %v4584_v58 }
  0xb2   : > { %2981 = vmatprep.mubr.msk.bf16.mxu0 %vm307_vm1, %v4585_v62 }
  0xb6   : > { %2866 = vmatmul.mubr.msk.bf16.gmra.mrb[8].mxu1 %vm307_vm1, %v4586_v55 }
  0xb7   : > { %2869 = vmatprep.mubr.msk.bf16.mxu1 %vm307_vm1, %v4587_v20 }
  0xb9   : > { %2982 = vmatmul.mubr.msk.bf16.gmra.mrb[20].mxu0 %vm307_vm1, %v4588_v63 }
  0xba   : > { %2987 = vmatprep.mubr.msk.bf16.mxu0 %vm307_vm1, %v3826_v35  ;;  %v4603_v35 = vld [vmem:[#allocation25_spill] sm:$0xff] }
  0xbe   : > { %2870 = vmatmul.mubr.msk.bf16.gmra.mrb[12].mxu1 %vm307_vm1, %v4589_v15 }
  0xbf   : > { %2873 = vmatprep.mubr.msk.bf16.mxu1 %vm307_vm1, %v4590_v32 }
  0xc1   : > { %2988 = vmatmul.mubr.msk.bf16.vlgmr.msra.gmra.mrb[0].mxu0 %vm307_vm1, %v3832_v23  ;;  %v4593_v23 = vpack.c.bf16 %v3864_v46, %v3843_v9  ;;  %v4608_v46 = vld [vmem:[#allocation34_spill] sm:$0xff] }
  0xc2   : > { %2991 = vmatprep.mubr.msk.bf16.mxu0 %vm307_vm1, %v3838_v38  ;;  %v4602_v38 = vld [vmem:[#allocation29_spill] sm:$0xff] }
  0xc3   : > { %v4604_v9 = vpack.c.bf16 %v4602_v38, %v4603_v35 }
  0xc6   : > { %2874 = vmatmul.mubr.msk.bf16.gmra.mrb[16].mxu1 %vm307_vm1, %v4591_v45 }
  0xc7   : > { %2877 = vmatprep.mubr.msk.bf16.mxu1 %vm307_vm1, %v4592_v0 }
  0xc9   : > { %2992 = vmatmul.mubr.msk.bf16.gmra.mrb[4].mxu0 %vm307_vm1, %v3852_v18  ;;  %v4606_v18 = vpack.c.bf16 %v3616_v29, %v4605_v24 }
  0xca   : > { %2995 = vmatprep.mubr.msk.bf16.mxu0 %vm307_vm1, %v3889_v28  ;;  %v4609_v28 = vpack.c.bf16 %v4607_v41, %v4608_v46 }
  0xce   : > { %2878 = vmatmul.mubr.msk.bf16.gmra.mrb[20].mxu1 %vm307_vm1, %v4593_v23 }
  0xcf   : > { %2895 = vmatprep.mubr.msk.bf16.mxu1 %vm307_vm1, %v4596_v48 }
  0xd1   : > { %2996 = vmatmul.mubr.msk.bf16.gmra.mrb[8].mxu0 %vm307_vm1, %v3897_v44 }
  0xd2   : > { %2999 = vmatprep.mubr.msk.bf16.mxu0 %vm307_vm1, %v4566_v10 }
  0xd6   : > { %2896 = vmatmul.mubr.msk.bf16.vlgmr.msra.gmra.mrb[12].mxu1 %vm307_vm1, %v4599_v47 }
  0xd7   : > { %2899 = vmatprep.mubr.msk.bf16.mxu1 %vm307_vm1, %v4600_v4 }
  0xd9   : > { %3000 = vmatmul.mubr.msk.bf16.gmra.mrb[12].mxu0 %vm307_vm1, %v4567_v19 }
  0xda   : > { %3003 = vmatprep.mubr.msk.bf16.mxu0 %vm307_vm1, %v4601_v43 }
  0xde   : > { %2900 = vmatmul.mubr.msk.bf16.gmra.mrb[16].mxu1 %vm307_vm1, %v4604_v9 }
  0xdf   : > { %2903 = vmatprep.mubr.msk.bf16.mxu1 %vm307_vm1, %v4606_v18 }
  0xe1   : > { %3004 = vmatmul.mubr.msk.bf16.gmra.mrb[16].mxu0 %vm307_vm1, %v4609_v28 }
  0xe2   : > { %3007 = vmatprep.mubr.msk.bf16.mxu0 %vm307_vm1, %v2137_v42 }
  0xe6   : > { %2904 = vmatmul.mubr.msk.bf16.gmra.mrb[20].mxu1 %vm307_vm1, %v4610_v30 }
  0xe9   : > { %3008 = vmatmul.mubr.msk.bf16.gmra.mrb[20].mxu0 %vm307_vm1, %v2138_v3 }
 0x179   : > { %v2859_v29 = vpop.f32.mrb[0].mxu1 }
 0x17a   : > { %v1060_v44 = vpop.f32.mrb[1].mxu1 }
 0x17b   : > { %v2860_v60 = vpop.f32.mrb[2].mxu1 }
 0x17c   : > { %v1063_v53 = vpop.f32.mrb[3].mxu1 }
 0x181   : > { %v2863_v16 = vpop.f32.mrb[4].mxu1 }
 0x182   : > { %v1076_v52 = vpop.f32.mrb[5].mxu1 }
 0x183   : > { %v2864_v14 = vpop.f32.mrb[6].mxu1 }
 0x184   : > { %v1079_v7 = vpop.f32.mrb[7].mxu1 }
 0x189   : > { %v2867_v49 = vpop.f32.mrb[8].mxu1 }
 0x18a   : > { %v1092_v42 = vpop.f32.mrb[9].mxu1 }
 0x18b   : > { %v2868_v31 = vpop.f32.mrb[10].mxu1 }
 0x18c   : > { %v1095_v6 = vpop.f32.mrb[11].mxu1 }
 0x194   : > { %v2989_v59 = vpop.f32.mrb[0].mxu0 }
 0x195   : > { %v3013_v17 = vadd.f32 %v2989_v59, %v2859_v29  ;;  %v2212_v3 = vpop.f32.mrb[1].mxu0 }
 0x196   : > { %v3014_v50 = vadd.f32 %v2212_v3, %v1060_v44  ;;  %v2990_v1 = vpop.f32.mrb[2].mxu0 }
 0x197   : > { %v2340_v56 = vadd.f32 %v3013_v17, %v4311_v11  ;;  %v3015_v10 = vadd.f32 %v2990_v1, %v2860_v60  ;;  %v2215_v19 = vpop.f32.mrb[3].mxu0 }
 0x198   : > { %v2338_v33 = vadd.f32 %v3014_v50, %v4311_v11  ;;  %v3016_v8 = vadd.f32 %v2215_v19, %v1063_v53 }
 0x199   : > { %v2364_v57 = vmax.f32 %v2340_v56, 0.0  ;;  %v2341_v5 = vadd.f32 %v3015_v10, %v4311_v11 }
 0x19a   : > { %v2362_v37 = vmax.f32 %v2338_v33, 0.0  ;;  %v2339_v12 = vadd.f32 %v3016_v8, %v4311_v11 }
 0x19b   : > { %2389 = vst.msk [vmem:[%s4317_s16 + $0x10] sm:$0xff] %vm2386_vm4, %v2364_v57  ;;  %v2365_v2 = vmax.f32 %v2341_v5, 0.0 }
 0x19c   : > { %2387 = vst.msk [vmem:[%s4317_s16] sm:$0xff] %vm2386_vm4, %v2362_v37  ;;  %v2363_v36 = vmax.f32 %v2339_v12, 0.0  ;;  %v2993_v39 = vpop.f32.mrb[4].mxu0 }
 0x19d   : > { %2390 = vst.msk [vmem:[%s4317_s16 + $0x18] sm:$0xff] %vm2386_vm4, %v2365_v2  ;;  %v3017_v51 = vadd.f32 %v2993_v39, %v2863_v16  ;;  %v2228_v26 = vpop.f32.mrb[5].mxu0 }
 0x19e   : > { %2388 = vst.msk [vmem:[%s4317_s16 + $0x8] sm:$0xff] %vm2386_vm4, %v2363_v36  ;;  %v3018_v13 = vadd.f32 %v2228_v26, %v1076_v52  ;;  %v2994_v22 = vpop.f32.mrb[6].mxu0 }
 0x19f   : > { %v2344_v27 = vadd.f32 %v3017_v51, %v4311_v11  ;;  %v3019_v61 = vadd.f32 %v2994_v22, %v2864_v14  ;;  %v2231_v54 = vpop.f32.mrb[7].mxu0 }
 0x1a0   : > { %v2342_v58 = vadd.f32 %v3018_v13, %v4311_v11  ;;  %v3020_v62 = vadd.f32 %v2231_v54, %v1079_v7 }
 0x1a1   : > { %v2368_v55 = vmax.f32 %v2344_v27, 0.0  ;;  %v2345_v20 = vadd.f32 %v3019_v61, %v4311_v11 }
 0x1a2   : > { %v2366_v63 = vmax.f32 %v2342_v58, 0.0  ;;  %v2343_v15 = vadd.f32 %v3020_v62, %v4311_v11 }
 0x1a3   : > { %2393 = vst.msk [vmem:[%s4317_s16 + $0x30] sm:$0xff] %vm2386_vm4, %v2368_v55  ;;  %v2369_v32 = vmax.f32 %v2345_v20, 0.0 }
 0x1a4   : > { %2391 = vst.msk [vmem:[%s4317_s16 + $0x20] sm:$0xff] %vm2386_vm4, %v2366_v63  ;;  %v2367_v45 = vmax.f32 %v2343_v15, 0.0  ;;  %v2997_v0 = vpop.f32.mrb[8].mxu0 }
 0x1a5   : > { %2394 = vst.msk [vmem:[%s4317_s16 + $0x38] sm:$0xff] %vm2386_vm4, %v2369_v32  ;;  %v3021_v23 = vadd.f32 %v2997_v0, %v2867_v49  ;;  %v2244_v21 = vpop.f32.mrb[9].mxu0 }
 0x1a6   : > { %2392 = vst.msk [vmem:[%s4317_s16 + $0x28] sm:$0xff] %vm2386_vm4, %v2367_v45  ;;  %v3022_v40 = vadd.f32 %v2244_v21, %v1092_v42  ;;  %v2998_v48 = vpop.f32.mrb[10].mxu0 }
 0x1a7   : > { %v2348_v34 = vadd.f32 %v3021_v23, %v4311_v11  ;;  %v3023_v25 = vadd.f32 %v2998_v48, %v2868_v31  ;;  %v2247_v47 = vpop.f32.mrb[11].mxu0 }
 0x1a8   : > { %v2346_v4 = vadd.f32 %v3022_v40, %v4311_v11  ;;  %v3024_v43 = vadd.f32 %v2247_v47, %v1095_v6 }
 0x1a9   : > { %v2372_v38 = vmax.f32 %v2348_v34, 0.0  ;;  %v2349_v35 = vadd.f32 %v3023_v25, %v4311_v11  ;;  %v2897_v18 = vpop.f32.mrb[12].mxu1 }
 0x1aa   : > { %v2370_v9 = vmax.f32 %v2346_v4, 0.0  ;;  %v2347_v24 = vadd.f32 %v3024_v43, %v4311_v11  ;;  %v1314_v46 = vpop.f32.mrb[13].mxu1 }
 0x1ab   : > { %2397 = vst.msk [vmem:[%s4317_s16 + $0x50] sm:$0xff] %vm2386_vm4, %v2372_v38  ;;  %v2373_v41 = vmax.f32 %v2349_v35, 0.0  ;;  %v2898_v29 = vpop.f32.mrb[14].mxu1 }
 0x1ac   : > { %2395 = vst.msk [vmem:[%s4317_s16 + $0x40] sm:$0xff] %vm2386_vm4, %v2370_v9  ;;  %v2371_v28 = vmax.f32 %v2347_v24, 0.0  ;;  %v3001_v30 = vpop.f32.mrb[12].mxu0  ;;  %v1317_v53 = vpop.f32.mrb[15].mxu1 }
 0x1ad   : > { %2398 = vst.msk [vmem:[%s4317_s16 + $0x58] sm:$0xff] %vm2386_vm4, %v2373_v41  ;;  %v3025_v44 = vadd.f32 %v3001_v30, %v2897_v18  ;;  %v2260_v60 = vpop.f32.mrb[13].mxu0 }
 0x1ae   : > { %2396 = vst.msk [vmem:[%s4317_s16 + $0x48] sm:$0xff] %vm2386_vm4, %v2371_v28  ;;  %v3026_v16 = vadd.f32 %v2260_v60, %v1314_v46  ;;  %v3002_v52 = vpop.f32.mrb[14].mxu0 }
 0x1af   : > { %v2352_v14 = vadd.f32 %v3025_v44, %v4311_v11  ;;  %v3027_v7 = vadd.f32 %v3002_v52, %v2898_v29  ;;  %v2263_v49 = vpop.f32.mrb[15].mxu0 }
 0x1b0   : > { %v2350_v42 = vadd.f32 %v3026_v16, %v4311_v11  ;;  %v3028_v31 = vadd.f32 %v2263_v49, %v1317_v53 }
 0x1b1   : > { %v2376_v6 = vmax.f32 %v2352_v14, 0.0  ;;  %v2353_v59 = vadd.f32 %v3027_v7, %v4311_v11  ;;  %v2901_v50 = vpop.f32.mrb[16].mxu1 }
 0x1b2   : > { %v2374_v17 = vmax.f32 %v2350_v42, 0.0  ;;  %v2351_v3 = vadd.f32 %v3028_v31, %v4311_v11  ;;  %v1330_v56 = vpop.f32.mrb[17].mxu1 }
 0x1b3   : > { %2401 = vst.msk [vmem:[%s4317_s16 + $0x70] sm:$0xff] %vm2386_vm4, %v2376_v6  ;;  %v2377_v1 = vmax.f32 %v2353_v59, 0.0  ;;  %v2902_v33 = vpop.f32.mrb[18].mxu1 }
 0x1b4   : > { %2399 = vst.msk [vmem:[%s4317_s16 + $0x60] sm:$0xff] %vm2386_vm4, %v2374_v17  ;;  %v2375_v10 = vmax.f32 %v2351_v3, 0.0  ;;  %v3005_v19 = vpop.f32.mrb[16].mxu0  ;;  %v1333_v5 = vpop.f32.mrb[19].mxu1 }
 0x1b5   : > { %2402 = vst.msk [vmem:[%s4317_s16 + $0x78] sm:$0xff] %vm2386_vm4, %v2377_v1  ;;  %v3029_v8 = vadd.f32 %v3005_v19, %v2901_v50  ;;  %v2276_v57 = vpop.f32.mrb[17].mxu0 }
 0x1b6   : > { %2400 = vst.msk [vmem:[%s4317_s16 + $0x68] sm:$0xff] %vm2386_vm4, %v2375_v10  ;;  %v3030_v37 = vadd.f32 %v2276_v57, %v1330_v56  ;;  %v3006_v12 = vpop.f32.mrb[18].mxu0 }
 0x1b7   : > { %v2356_v2 = vadd.f32 %v3029_v8, %v4311_v11  ;;  %v3031_v36 = vadd.f32 %v3006_v12, %v2902_v33  ;;  %v2279_v39 = vpop.f32.mrb[19].mxu0 }
 0x1b8   : > { %v2354_v51 = vadd.f32 %v3030_v37, %v4311_v11  ;;  %v3032_v26 = vadd.f32 %v2279_v39, %v1333_v5 }
 0x1b9   : > { %v2380_v13 = vmax.f32 %v2356_v2, 0.0  ;;  %v2357_v22 = vadd.f32 %v3031_v36, %v4311_v11  ;;  %v2905_v54 = vpop.f32.mrb[20].mxu1 }
 0x1ba   : > { %v2378_v27 = vmax.f32 %v2354_v51, 0.0  ;;  %v2355_v61 = vadd.f32 %v3032_v26, %v4311_v11  ;;  %v1346_v62 = vpop.f32.mrb[21].mxu1 }
 0x1bb   : > { %2405 = vst.msk [vmem:[%s4317_s16 + $0x90] sm:$0xff] %vm2386_vm4, %v2380_v13  ;;  %v2381_v58 = vmax.f32 %v2357_v22, 0.0  ;;  %v2906_v63 = vpop.f32.mrb[22].mxu1 }
 0x1bc   : > { %2403 = vst.msk [vmem:[%s4317_s16 + $0x80] sm:$0xff] %vm2386_vm4, %v2378_v27  ;;  %v2379_v55 = vmax.f32 %v2355_v61, 0.0  ;;  %v3009_v20 = vpop.f32.mrb[20].mxu0  ;;  %v1349_v45 = vpop.f32.mrb[23].mxu1 }
 0x1bd   : > { %2406 = vst.msk [vmem:[%s4317_s16 + $0x98] sm:$0xff] %vm2386_vm4, %v2381_v58  ;;  %v3033_v15 = vadd.f32 %v3009_v20, %v2905_v54  ;;  %v2292_v32 = vpop.f32.mrb[21].mxu0 }
 0x1be   : > { %2404 = vst.msk [vmem:[%s4317_s16 + $0x88] sm:$0xff] %vm2386_vm4, %v2379_v55  ;;  %v3034_v0 = vadd.f32 %v2292_v32, %v1346_v62  ;;  %v3010_v23 = vpop.f32.mrb[22].mxu0 }
 0x1bf   : > { %v2360_v21 = vadd.f32 %v3033_v15, %v4311_v11  ;;  %v3035_v40 = vadd.f32 %v3010_v23, %v2906_v63  ;;  %v2295_v48 = vpop.f32.mrb[23].mxu0 }
 0x1c0   : > { %v2358_v34 = vadd.f32 %v3034_v0, %v4311_v11  ;;  %v3036_v25 = vadd.f32 %v2295_v48, %v1349_v45 }
 0x1c1   : > { %v2384_v47 = vmax.f32 %v2360_v21, 0.0  ;;  %v2361_v4 = vadd.f32 %v3035_v40, %v4311_v11 }
 0x1c2   : > { %v2382_v43 = vmax.f32 %v2358_v34, 0.0  ;;  %v2359_v38 = vadd.f32 %v3036_v25, %v4311_v11 }
 0x1c3   : > { %2409 = vst.msk [vmem:[%s4317_s16 + $0xb0] sm:$0xff] %vm2386_vm4, %v2384_v47  ;;  %v2385_v35 = vmax.f32 %v2361_v4, 0.0 }
 0x1c4   : > { %2407 = vst.msk [vmem:[%s4317_s16 + $0xa0] sm:$0xff] %vm2386_vm4, %v2382_v43  ;;  %v2383_v9 = vmax.f32 %v2359_v38, 0.0 }
 0x1c5   : > { %2410 = vst.msk [vmem:[%s4317_s16 + $0xb8] sm:$0xff] %vm2386_vm4, %v2385_v35 }
 0x1c6   : > { %2408 = vst.msk [vmem:[%s4317_s16 + $0xa8] sm:$0xff] %vm2386_vm4, %v2383_v9 }
 0x1c7 PF: > { %s13_s12 = sadd.s32 1, %s3229_s12  }
 0x1c8   : > { %p10_p4 = scmp.ge.s32.totalorder %s13_s12, 4  }
 0x1ca   :  { %12 = sbr.rel (!%p10_p4) target bundleno = 1 (0x1), region = 70 }

// kernel: generalized_rcnn_forward.6
= control target key start
LH: loop header
LB: loop body
LE: loop exit
PB: predicated region body
PF: predicated region fallthrough
CT: control target
= control target key end

     0   :  { %s1720_s0 = inlined_call_operand.vmem [shape: s32[128], index: 0, kind: input, shape index: {}]   ;;  %s1721_s1 = inlined_call_operand.vmem [shape: f32[8,8,16], index: 1, kind: input, shape index: {}]   ;;  %s1722_s2 = inlined_call_operand.vmem [shape: f32[8,1,256], index: 2, kind: output, shape index: {}]  }
   0x1   :  { %s7_s11 = sshll.u32 %s1720_s0, 4  ;;  %s8_s11 = int_to_ptr.vmem [resolvable:$true] %s7_s11 }
   0x2   :  { %s941_s12 = scalar_lea.vmem %s8_s11, 16  ;;  %p946_p1 = scmp.lt.s32.totalorder %s8_s11, %s8_s11 }
   0x3   :  { %p942_p0 = scmp.ne.s32.totalorder %s8_s11, %s941_s12  ;;  %p947_p2 = scmp.lt.s32.totalorder %s941_s12, %s941_s12 }
   0x5   :  { %p948_p3 = por %p947_p2, %p946_p1 }
   0x7   :  { %p949_p4 = pnand %p948_p3, %p942_p0 }
   0x9   :  { %952 = shalt.err (!%p949_p4)  }
   0xa   :  { %s963_s13 = smov [#allocation3]  }
   0xb   :  { %10 = dma.vmem_to_smem %s8_s11, 16, %s963_s13, [#allocation2] }
   0xc   :  { %957 = dma.done.wait [#allocation2], 16 }
   0xd   :  { %958 = vsyncadd [#allocation2], 4294967280 }
   0xe   :  { %12 = sfence }
   0xf   :  { %s990_s14 = smov 0  }
  0x10 LB: > { %s996_s0 = sadd.s32 4294967295, %s961_s14   ;;  %p903_p5 = scmp.ge.s32.totalorder %s961_s14, 1  ;;  %s961_s14 = sphi %s990_s14, %s18_s14  }
  0x11   : > { %p84_p6 = scmp.lt.s32.totalorder %s961_s14, 9 }
  0x13   : > { %p85_p7 = pnand %p903_p5, %p84_p6 }
  0x14   : > { %s1001_s15 = sshll.u32 (!%p85_p7), %s996_s0, 4  ;;  %v111_v0 = vlaneseq (!%p85_p7)  ;;  %v1024_v2 = vld [vmem:[%s1721_s1] sm:$0xff] (!%p85_p7)  ;;  %v1029_v3 = vld [vmem:[%s1721_s1 + $0x8] sm:$0xff] (!%p85_p7)  ;;  %v1034_v4 = vld [vmem:[%s1721_s1 + $0x10] sm:$0xff] (!%p85_p7)  ;;  %vm132_vm2 = vcmask (!%p85_p7), 130048   ;;  %vm436_vm4 = vcmask (!%p85_p7), 1041409  }
  0x15   : > { %88 = sbr.rel (%p85_p7) target bundleno = 279 (0x117), region = 24  ;;  %s266_s16 = sadd.s32 (!%p85_p7), 10, %s1001_s15  ;;  %v1041_v7 = vld [vmem:[%s1721_s1 + $0x18] sm:$0xff] (!%p85_p7)  ;;  %v1046_v8 = vld [vmem:[%s1721_s1 + $0x20] sm:$0xff] (!%p85_p7)  ;;  %v1051_v9 = vld [vmem:[%s1721_s1 + $0x28] sm:$0xff] (!%p85_p7)  ;;  %vm438_vm5 = vcmask (!%p85_p7), 1042434  }
  0x16   : > { %s268_s17 = sadd.s32 (!%p85_p7), 14, %s1001_s15  ;;  %s1005_s18 = sld [smem:[#allocation3 + %s266_s16]] (!%p85_p7)  ;;  %v1016_v1 = vshrl.u32 (!%p85_p7), %v111_v0, 7  ;;  %v1058_v10 = vld [vmem:[%s1721_s1 + $0x30] sm:$0xff] (!%p85_p7)  ;;  %v1063_v11 = vld [vmem:[%s1721_s1 + $0x38] sm:$0xff] (!%p85_p7)  ;;  %vm440_vm6 = vcmask (!%p85_p7), 1043459  }
  0x17   : > { %s1007_s19 = sld [smem:[#allocation3 + %s268_s17]] (!%p85_p7)  ;;  %s419_s21 = sadd.s32 (!%p85_p7), 4, %s1001_s15  ;;  %vm442_vm8 = vcmask (!%p85_p7), 1044484   ;;  %vm444_vm9 = vcmask (!%p85_p7), 1045509   ;;  %vm446_vm11 = vcmask (!%p85_p7), 1046534   ;;  %vm448_vm12 = vcmask (!%p85_p7), 1047559  }
  0x18   : > { %s1010_s20 = sld [smem:[#allocation3 + %s1001_s15]] (!%p85_p7)  ;;  %s190_s23 = sadd.s32 (!%p85_p7), 9, %s1001_s15 }
  0x19   : > { %s1013_s22 = sld [smem:[#allocation3 + %s419_s21]] (!%p85_p7)  ;;  %s192_s13 = sadd.s32 (!%p85_p7), 13, %s1001_s15 }
  0x1a   : > { %s1019_s24 = sld [smem:[#allocation3 + %s190_s23]] (!%p85_p7)  ;;  %s624_s16 = sadd.s32 (!%p85_p7), 2, %s1001_s15 }
  0x1b   : > { %s1115_s17 = sld [smem:[#allocation3 + %s192_s13]] (!%p85_p7)  ;;  %s626_s23 = sadd.s32 (!%p85_p7), 6, %s1001_s15 }
  0x1c   : > { %v270_v5 = vstv %s1005_s18  ;;  %s1128_s25 = sld [smem:[#allocation3 + %s624_s16]]  ;;  %s692_s28 = sadd.s32 3, %s1001_s15 }
  0x1d   : > { %v272_v6 = vstv %s1007_s19  ;;  %vm271_vm0 = vcmp.ge.s32.totalorder %v1016_v1, %v270_v5  ;;  %p341_p8 = scmp.gt.s32.totalorder %s1007_s19, %s1005_s18  ;;  %s1130_s26 = sld [smem:[#allocation3 + %s626_s23]] }
  0x1e   : > { %vm273_vm1 = vcmp.lt.s32.totalorder %v1016_v1, %v272_v6  ;;  %v421_v13 = vstv %s1010_s20  ;;  %s694_s29 = sadd.s32 7, %s1001_s15  ;;  %s342_s30 = sadd.s32 11, %s1001_s15 }
  0x1f   : > { %vm1065_vm3 = vmand %vm271_vm0, %vm273_vm1  ;;  %v423_v17 = vstv %s1013_s22  ;;  %p459_p9 = scmp.gt.s32.totalorder %s1013_s22, %s1010_s20  ;;  %vm1110_vm7 = vcmp.ge.s32.totalorder %v1016_v1, %v421_v13  ;;  %s344_s3 = sadd.s32 15, %s1001_s15 }
  0x20   : > { %v277_v14 = vsel %vm1065_vm3, %v1024_v2, -1e+30  ;;  %v278_v15 = vsel %vm1065_vm3, %v1029_v3, -1e+30  ;;  %v279_v16 = vsel %vm1065_vm3, %v1034_v4, -1e+30  ;;  %v194_v21 = vstv %s1019_s24 }
  0x21   : > { %v280_v18 = vsel %vm1065_vm3, %v1041_v7, -1e+30  ;;  %v281_v19 = vsel %vm1065_vm3, %v1046_v8, -1e+30  ;;  %v282_v20 = vsel %vm1065_vm3, %v1051_v9, -1e+30  ;;  %p1123_p10 = pnand %p459_p9, %p341_p8  ;;  %vm1137_vm10 = vcmp.lt.s32.totalorder %v1016_v1, %v423_v17  ;;  %p265_p11 = scmp.gt.s32.totalorder %s1115_s17, %s1019_s24 }
  0x22   : > { %v283_v22 = vsel %vm1065_vm3, %v1058_v10, -1e+30  ;;  %v284_v23 = vsel %vm1065_vm3, %v1063_v11, -1e+30  ;;  %v285_v24 = vsel %vm132_vm2, %v277_v14, -inf  ;;  %v292_v25 = vsel %vm132_vm2, %v278_v15, -inf  ;;  %vm1158_vm14 = vmand %vm1110_vm7, %vm1137_vm10 }
  0x23   : > { %v286_v26 = vrot.slane %v285_v24, 4  ;;  %v293_v27 = vrot.slane %v292_v25, 4  ;;  %v299_v28 = vsel %vm132_vm2, %v279_v16, -inf  ;;  %v306_v29 = vsel %vm132_vm2, %v280_v18, -inf  ;;  %s908_s27 = scalar_select %p1123_p10, 0, 1 }
  0x24   : > { %v300_v30 = vrot.slane %v299_v28, 4  ;;  %v307_v31 = vrot.slane %v306_v29, 4  ;;  %v313_v32 = vsel %vm132_vm2, %v281_v19, -inf  ;;  %v320_v33 = vsel %vm132_vm2, %v282_v20, -inf  ;;  %s1164_s4 = sld [smem:[#allocation3 + %s692_s28]]  ;;  %s556_s6 = sadd.s32 1, %s1001_s15 }
  0x25   : > { %v287_v34 = vmax.f32 %v285_v24, %v286_v26  ;;  %v294_v35 = vmax.f32 %v292_v25, %v293_v27  ;;  %v314_v36 = vrot.slane %v313_v32, 4  ;;  %v321_v37 = vrot.slane %v320_v33, 4  ;;  %s1166_s5 = sld [smem:[#allocation3 + %s694_s29]]  ;;  %s558_s7 = sadd.s32 5, %s1001_s15 }
  0x26   : > { %v301_v38 = vmax.f32 %v299_v28, %v300_v30  ;;  %v308_v39 = vmax.f32 %v306_v29, %v307_v31  ;;  %v327_v40 = vsel %vm132_vm2, %v283_v22, -inf  ;;  %v334_v41 = vsel %vm132_vm2, %v284_v23, -inf  ;;  %p643_p12 = scmp.gt.s32.totalorder %s1130_s26, %s1128_s25  ;;  %p1222_p13 = pnand %p459_p9, %p265_p11 }
  0x27   : > { %v288_v42 = vrot.slane %v287_v34, 2  ;;  %v295_v43 = vrot.slane %v294_v35, 2  ;;  %v315_v44 = vmax.f32 %v313_v32, %v314_v36  ;;  %v322_v45 = vmax.f32 %v320_v33, %v321_v37  ;;  %s1228_s9 = sld [smem:[#allocation3 + %s342_s30]]  ;;  %s113_s30 = sadd.s32 8, %s1001_s15 }
  0x28   : > { %v302_v47 = vrot.slane %v301_v38, 2  ;;  %v309_v48 = vrot.slane %v308_v39, 2  ;;  %v328_v49 = vrot.slane %v327_v40, 4  ;;  %v335_v50 = vrot.slane %v334_v41, 4  ;;  %s1232_s10 = sld [smem:[#allocation3 + %s344_s3]]  ;;  %p1260_p1 = pnand %p643_p12, %p341_p8 }
  0x29   : > { %v289_v51 = vmax.f32 %v287_v34, %v288_v42  ;;  %v296_v52 = vmax.f32 %v294_v35, %v295_v43  ;;  %v316_v53 = vrot.slane %v315_v44, 2  ;;  %v323_v54 = vrot.slane %v322_v45, 2  ;;  %s1243_s11 = sld [smem:[#allocation3 + %s556_s6]]  ;;  %p1280_p3 = pnand %p643_p12, %p265_p11 }
  0x2a   : > { %v303_v55 = vmax.f32 %v301_v38, %v302_v47  ;;  %v310_v56 = vmax.f32 %v308_v39, %v309_v48  ;;  %v329_v57 = vmax.f32 %v327_v40, %v328_v49  ;;  %v336_v58 = vmax.f32 %v334_v41, %v335_v50  ;;  %s1247_s12 = sld [smem:[#allocation3 + %s558_s7]]  ;;  %s115_s19 = sadd.s32 12, %s1001_s15 }
  0x2b   : > { %v290_v59 = vrot.slane %v289_v51, 1  ;;  %v297_v60 = vrot.slane %v296_v52, 1  ;;  %v317_v61 = vmax.f32 %v315_v44, %v316_v53  ;;  %v324_v62 = vmax.f32 %v322_v45, %v323_v54  ;;  %p711_p0 = scmp.gt.s32.totalorder %s1166_s5, %s1164_s4  ;;  %s1723_s15 = smov 32  }
  0x2c   : > { %v304_v63 = vrot.slane %v303_v55, 1  ;;  %v311_v5 = vrot.slane %v310_v56, 1  ;;  %v330_v6 = vrot.slane %v329_v57, 2  ;;  %v337_v12 = vrot.slane %v336_v58, 2  ;;  %s907_s23 = scalar_select %p1222_p13, 0, 1 }
  0x2d   : > { %v291_v13 = vmax.f32 %v289_v51, %v290_v59  ;;  %v298_v14 = vmax.f32 %v296_v52, %v297_v60  ;;  %v318_v15 = vrot.slane %v317_v61, 1  ;;  %v325_v16 = vrot.slane %v324_v62, 1  ;;  %p1270_p2 = pnand %p711_p0, %p341_p8  ;;  %s1344_s6 = sld [smem:[#allocation3 + %s113_s30]] }
  0x2e   : > { %v305_v18 = vmax.f32 %v303_v55, %v304_v63  ;;  %v312_v19 = vmax.f32 %v310_v56, %v311_v5  ;;  %v331_v20 = vmax.f32 %v329_v57, %v330_v6  ;;  %v338_v22 = vmax.f32 %v336_v58, %v337_v12  ;;  %p417_p4 = scmp.gt.s32.totalorder %s1232_s10, %s1228_s9  ;;  %s1350_s7 = sld [smem:[#allocation3 + %s115_s19]] }
  0x2f   : > { %v319_v23 = vmax.f32 %v317_v61, %v318_v15  ;;  %v326_v24 = vmax.f32 %v324_v62, %v325_v16  ;;  %v504_v26 = vsel %vm436_vm4, %v298_v14, %v291_v13  ;;  %vm195_vm13 = vcmp.ge.s32.totalorder %v1016_v1, %v194_v21  ;;  %s915_s28 = scalar_select %p1280_p3, 0, 1 }
  0x30   : > { %v332_v27 = vrot.slane %v331_v20, 1  ;;  %v339_v28 = vrot.slane %v338_v22, 1  ;;  %v505_v29 = vsel %vm438_vm5, %v305_v18, %v504_v26  ;;  %v196_v17 = vstv %s1115_s17  ;;  %p575_p5 = scmp.gt.s32.totalorder %s1247_s12, %s1243_s11  ;;  %p1311_p7 = pnand %p643_p12, %p417_p4 }
  0x31   : > { %v506_v30 = vsel %vm440_vm6, %v312_v19, %v505_v29  ;;  %vm197_vm15 = vcmp.lt.s32.totalorder %v1016_v1, %v196_v17  ;;  %v1169_v35 = vstv %s908_s27  ;;  %v628_v37 = vstv %s1128_s25  ;;  %s916_s27 = scalar_select %p1260_p1, 0, 1 }
  0x32   : > { %v333_v31 = vmax.f32 %v331_v20, %v332_v27  ;;  %v340_v32 = vmax.f32 %v338_v22, %v339_v28  ;;  %v507_v34 = vsel %vm442_vm8, %v319_v23, %v506_v30  ;;  %vm1171_vm0 = vmand %vm195_vm13, %vm197_vm15  ;;  %v630_v49 = vstv %s1130_s26  ;;  %p1300_p6 = pnand %p575_p5, %p341_p8  ;;  %p1333_p8 = pnand %p459_p9, %p417_p4 }
  0x33   : > { %v508_v21 = vsel %vm444_vm9, %v326_v24, %v507_v34  ;;  %v201_v39 = vsel %vm1171_vm0, %v1024_v2, -1e+30  ;;  %v202_v40 = vsel %vm1171_vm0, %v1029_v3, -1e+30  ;;  %v203_v41 = vsel %vm1171_vm0, %v1034_v4, -1e+30  ;;  %p1581_p3 = pnand %p711_p0, %p265_p11 }
  0x34   : > { %v509_v38 = vsel %vm446_vm11, %v333_v31, %v508_v21  ;;  %v204_v43 = vsel %vm1171_vm0, %v1041_v7, -1e+30  ;;  %v205_v44 = vsel %vm1171_vm0, %v1046_v8, -1e+30  ;;  %v206_v45 = vsel %vm1171_vm0, %v1051_v9, -1e+30  ;;  %p189_p10 = scmp.gt.s32.totalorder %s1350_s7, %s1344_s6 }
  0x35   : > { %v1189_v42 = vsel %vm448_vm12, %v340_v32, %v509_v38  ;;  %v207_v47 = vsel %vm1171_vm0, %v1058_v10, -1e+30  ;;  %v208_v48 = vsel %vm1171_vm0, %v1063_v11, -1e+30  ;;  %v209_v51 = vsel %vm132_vm2, %v201_v39, -inf  ;;  %s1753_s13 = smov 32  }
  0x36   : > { %v512_v46 = vsel %vm1158_vm14, %v1189_v42, -1e+30  ;;  %v216_v52 = vsel %vm132_vm2, %v202_v40, -inf  ;;  %v223_v53 = vsel %vm132_vm2, %v203_v41, -inf  ;;  %v210_v55 = vrot.slane %v209_v51, 4  ;;  %p1446_p13 = pnand %p459_p9, %p189_p10  ;;  %p1461_p9 = pnand %p643_p12, %p189_p10 }
  0x37   : > { %v513_v50 = vsel %vm132_vm2, %v512_v46, -inf  ;;  %v217_v56 = vrot.slane %v216_v52, 4  ;;  %v224_v57 = vrot.slane %v223_v53, 4  ;;  %vm524_vm1 = vcmp.eq.s32.totalorder %v1169_v35, 1  ;;  %s917_s30 = scalar_select %p1311_p7, 0, 1 }
  0x38   : > { %v514_v54 = vrot.slane %v513_v50, 4  ;;  %v230_v58 = vsel %vm132_vm2, %v204_v43, -inf  ;;  %v237_v59 = vsel %vm132_vm2, %v205_v44, -inf  ;;  %v244_v60 = vsel %vm132_vm2, %v206_v45, -inf  ;;  %s965_s22 = smov 16   ;;  %p1548_p12 = pnand %p711_p0, %p189_p10 }
  0x39   : > { %v251_v61 = vsel %vm132_vm2, %v207_v47, -inf  ;;  %v211_v63 = vmax.f32 %v209_v51, %v210_v55  ;;  %v218_v5 = vmax.f32 %v216_v52, %v217_v56  ;;  %v225_v6 = vmax.f32 %v223_v53, %v224_v57  ;;  %p1560_p1 = pnand %p575_p5, %p189_p10  ;;  %s966_s21 = smov 48  }
  0x3a   : > { %v515_v62 = vmax.f32 %v513_v50, %v514_v54  ;;  %vm1250_vm3 = vcmp.ge.s32.totalorder %v1016_v1, %v628_v37  ;;  %v231_v13 = vrot.slane %v230_v58, 4  ;;  %v238_v14 = vrot.slane %v237_v59, 4  ;;  %p1622_p7 = pnand %p575_p5, %p265_p11  ;;  %p1665_p11 = pnand %p711_p0, %p417_p4 }
  0x3b   : > { %v245_v15 = vrot.slane %v244_v60, 4  ;;  %v252_v16 = vrot.slane %v251_v61, 4  ;;  %v212_v19 = vrot.slane %v211_v63, 2  ;;  %v219_v20 = vrot.slane %v218_v5, 2  ;;  %s919_s19 = scalar_select %p1581_p3, 0, 1 }
  0x3c   : > { %v516_v18 = vrot.slane %v515_v62, 2  ;;  %v226_v22 = vrot.slane %v225_v6, 2  ;;  %v232_v23 = vmax.f32 %v230_v58, %v231_v13  ;;  %v239_v24 = vmax.f32 %v237_v59, %v238_v14  ;;  %s920_s24 = scalar_select %p1270_p2, 0, 1 }
  0x3d   : > { %v246_v25 = vmax.f32 %v244_v60, %v245_v15  ;;  %v253_v26 = vmax.f32 %v251_v61, %v252_v16  ;;  %v213_v28 = vmax.f32 %v211_v63, %v212_v19  ;;  %v220_v29 = vmax.f32 %v218_v5, %v219_v20  ;;  %s911_s17 = scalar_select %p1622_p7, 0, 1 }
  0x3e   : > { %v517_v27 = vmax.f32 %v515_v62, %v516_v18  ;;  %v227_v30 = vmax.f32 %v225_v6, %v226_v22  ;;  %v233_v17 = vrot.slane %v232_v23, 2  ;;  %v240_v31 = vrot.slane %v239_v24, 2  ;;  %s912_s16 = scalar_select %p1300_p6, 0, 1 }
  0x3f   : > { %v247_v32 = vrot.slane %v246_v25, 2  ;;  %v254_v34 = vrot.slane %v253_v26, 2  ;;  %v214_v37 = vrot.slane %v213_v28, 1  ;;  %v221_v38 = vrot.slane %v220_v29, 1  ;;  %p1678_p2 = pnand %p575_p5, %p417_p4  ;;  %p98_p0 = scmp.lt.s32.totalorder %s996_s0, 7 }
  0x40   : > { %v518_v21 = vrot.slane %v517_v27, 1  ;;  %v228_v39 = vrot.slane %v227_v30, 1  ;;  %v234_v40 = vmax.f32 %v232_v23, %v233_v17  ;;  %v241_v41 = vmax.f32 %v239_v24, %v240_v31  ;;  %s914_s3 = scalar_select %p1461_p9, 0, 1 }
  0x41   : > { %v248_v43 = vmax.f32 %v246_v25, %v247_v32  ;;  %v255_v44 = vmax.f32 %v253_v26, %v254_v34  ;;  %v215_v46 = vmax.f32 %v213_v28, %v214_v37  ;;  %v222_v47 = vmax.f32 %v220_v29, %v221_v38  ;;  %s1770_s0 = smov (!%p98_p0, %s996_s0), 7 }
  0x42   : > { %v519_v45 = vmax.f32 %v517_v27, %v518_v21  ;;  %v229_v50 = vmax.f32 %v227_v30, %v228_v39  ;;  %v235_v51 = vrot.slane %v234_v40, 1  ;;  %v242_v52 = vrot.slane %v241_v41, 1 }
  0x43   : > { %v249_v53 = vrot.slane %v248_v43, 1  ;;  %v256_v54 = vrot.slane %v255_v44, 1  ;;  %v258_v56 = vsel %vm132_vm2, %v208_v48, -inf  ;;  %v474_v57 = vsel %vm436_vm4, %v222_v47, %v215_v46 }
  0x44   : > { %v525_v55 = vsel %vm524_vm1, %v519_v45, 0.0  ;;  %vm631_vm7 = vcmp.lt.s32.totalorder %v1016_v1, %v630_v49  ;;  %v236_v35 = vmax.f32 %v234_v40, %v235_v51  ;;  %v243_v36 = vmax.f32 %v241_v41, %v242_v52 }
  0x45   : > { %765 = vrot.lane.b32.xlu1 %v525_v55, %s1723_s15  ;;  %v250_v48 = vmax.f32 %v248_v43, %v249_v53  ;;  %vm1340_vm10 = vmand %vm1250_vm3, %vm631_vm7  ;;  %v259_v49 = vrot.slane %v258_v56, 4  ;;  %v475_v59 = vsel %vm438_vm5, %v229_v50, %v474_v57  ;;  %v257_v61 = vmax.f32 %v255_v44, %v256_v54  ;;  %s909_s15 = scalar_select %p1333_p8, 0, 1 }
  0x46   : > { %v664_v60 = vsel %vm1340_vm10, %v1189_v42, -1e+30  ;;  %v476_v62 = vsel %vm440_vm6, %v236_v35, %v475_v59  ;;  %v675_v13 = vstv %s916_s27  ;;  %v346_v15 = vstv %s1228_s9  ;;  %s918_s27 = scalar_select %p1548_p12, 0, 1 }
  0x47   : > { %v665_v63 = vsel %vm132_vm2, %v664_v60, -inf  ;;  %v260_v5 = vmax.f32 %v258_v56, %v259_v49  ;;  %v477_v6 = vsel %vm442_vm8, %v243_v36, %v476_v62  ;;  %v348_v16 = vstv %s1232_s10  ;;  %s967_s9 = smov 64  }
  0x48   : > { %v666_v12 = vrot.slane %v665_v63, 4  ;;  %v478_v14 = vsel %vm444_vm9, %v250_v48, %v477_v6  ;;  %v1368_v19 = vstv %s907_s23  ;;  %vm347_vm13 = vcmp.ge.s32.totalorder %v1016_v1, %v346_v15  ;;  %s913_s10 = scalar_select %p1678_p2, 0, 1 }
  0x49   : > { %v261_v18 = vrot.slane %v260_v5, 2  ;;  %vm676_vm15 = vcmp.eq.s32.totalorder %v675_v13, 1  ;;  %v1374_v22 = vstv %s915_s28  ;;  %vm349_vm0 = vcmp.lt.s32.totalorder %v1016_v1, %v348_v16  ;;  %s910_s28 = scalar_select %p1560_p1, 0, 1 }
  0x4a   : > { %v667_v20 = vmax.f32 %v665_v63, %v666_v12  ;;  %v1377_v23 = vstv %s917_s30  ;;  %v479_v25 = vsel %vm446_vm11, %v257_v61, %v478_v14  ;;  %vm1380_vm1 = vmand %vm347_vm13, %vm349_vm0  ;;  %v1384_v28 = vstv %s909_s15  ;;  %s969_s15 = smov 96  }
  0x4b   : > { %v262_v24 = vmax.f32 %v260_v5, %v261_v18  ;;  %v353_v29 = vsel %vm1380_vm1, %v1024_v2, -1e+30  ;;  %v354_v30 = vsel %vm1380_vm1, %v1029_v3, -1e+30  ;;  %v355_v17 = vsel %vm1380_vm1, %v1034_v4, -1e+30 }
  0x4c   : > { %v668_v26 = vrot.slane %v667_v20, 2  ;;  %v117_v31 = vstv %s1344_s6  ;;  %v356_v21 = vsel %vm1380_vm1, %v1041_v7, -1e+30  ;;  %v357_v37 = vsel %vm1380_vm1, %v1046_v8, -1e+30  ;;  %s970_s6 = smov 112  }
  0x4d   : > { %v263_v32 = vrot.slane %v262_v24, 1  ;;  %v358_v38 = vsel %vm1380_vm1, %v1051_v9, -1e+30  ;;  %v359_v39 = vsel %vm1380_vm1, %v1058_v10, -1e+30  ;;  %v119_v41 = vstv %s1350_s7  ;;  %s904_s7 = sshll.u32 %s1770_s0, 1 }
  0x4e   : > { %v669_v34 = vmax.f32 %v667_v20, %v668_v26  ;;  %v360_v40 = vsel %vm1380_vm1, %v1063_v11, -1e+30  ;;  %v361_v45 = vsel %vm132_vm2, %v353_v29, -inf  ;;  %v368_v46 = vsel %vm132_vm2, %v354_v30, -inf }
  0x4f   : > { %v264_v43 = vmax.f32 %v262_v24, %v263_v32  ;;  %v362_v47 = vrot.slane %v361_v45, 4  ;;  %v369_v50 = vrot.slane %v368_v46, 4  ;;  %v375_v51 = vsel %vm132_vm2, %v355_v17, -inf }
  0x50   : > { %v670_v44 = vrot.slane %v669_v34, 1  ;;  %v382_v52 = vsel %vm132_vm2, %v356_v21, -inf  ;;  %v376_v55 = vrot.slane %v375_v51, 4  ;;  %vm1431_vm3 = vcmp.ge.s32.totalorder %v1016_v1, %v117_v31 }
  0x51   : > { %v1417_v53 = vsel %vm448_vm12, %v264_v43, %v479_v25  ;;  %v383_v56 = vrot.slane %v382_v52, 4  ;;  %v363_v36 = vmax.f32 %v361_v45, %v362_v47  ;;  %v370_v48 = vmax.f32 %v368_v46, %v369_v50 }
  0x52   : > { %v671_v54 = vmax.f32 %v669_v34, %v670_v44  ;;  %v482_v57 = vsel %vm1158_vm14, %v1417_v53, -1e+30  ;;  %v650_v35 = vsel %vm1340_vm10, %v1417_v53, -1e+30  ;;  %v377_v61 = vmax.f32 %v375_v51, %v376_v55 }
  0x53   : > { %v483_v49 = vsel %vm132_vm2, %v482_v57, -inf  ;;  %v651_v60 = vsel %vm132_vm2, %v650_v35, -inf  ;;  %vm1436_vm7 = vcmp.lt.s32.totalorder %v1016_v1, %v119_v41  ;;  %v364_v12 = vrot.slane %v363_v36, 2 }
  0x54   : > { %v677_v59 = vsel %vm676_vm15, %v671_v54, 0.0  ;;  %v484_v5 = vrot.slane %v483_v49, 4  ;;  %v652_v6 = vrot.slane %v651_v60, 4  ;;  %v371_v13 = vrot.slane %v370_v48, 2  ;;  %vm1480_vm0 = vmand %vm1431_vm3, %vm1436_vm7 }
  0x55   : > { %793 = vrot.lane.b32.xlu1 %v677_v59, %s1753_s13  ;;  %vm494_vm13 = vcmp.eq.s32.totalorder %v1368_v19, 1  ;;  %vm662_vm15 = vcmp.eq.s32.totalorder %v1374_v22, 1  ;;  %v378_v14 = vrot.slane %v377_v61, 2  ;;  %v384_v15 = vmax.f32 %v382_v52, %v383_v56  ;;  %s101_s13 = scalar_lea.vmem %s1722_s2, %s904_s7 }
  0x56   : > { %v389_v16 = vsel %vm132_vm2, %v357_v37, -inf  ;;  %v396_v18 = vsel %vm132_vm2, %v358_v38, -inf  ;;  %v485_v20 = vmax.f32 %v483_v49, %v484_v5  ;;  %v653_v24 = vmax.f32 %v651_v60, %v652_v6 }
  0x57   : > { %v365_v25 = vmax.f32 %v363_v36, %v364_v12  ;;  %v372_v26 = vmax.f32 %v370_v48, %v371_v13  ;;  %v379_v29 = vmax.f32 %v377_v61, %v378_v14  ;;  %v385_v30 = vrot.slane %v384_v15, 2 }
  0x58   : > { %v390_v17 = vrot.slane %v389_v16, 4  ;;  %v397_v31 = vrot.slane %v396_v18, 4  ;;  %v486_v32 = vrot.slane %v485_v20, 2  ;;  %v654_v34 = vrot.slane %v653_v24, 2 }
  0x59   : > { %v366_v21 = vrot.slane %v365_v25, 1  ;;  %v373_v37 = vrot.slane %v372_v26, 1  ;;  %v380_v41 = vrot.slane %v379_v29, 1  ;;  %v386_v38 = vmax.f32 %v384_v15, %v385_v30 }
  0x5a   : > { %v391_v43 = vmax.f32 %v389_v16, %v390_v17  ;;  %v398_v44 = vmax.f32 %v396_v18, %v397_v31  ;;  %v487_v45 = vmax.f32 %v485_v20, %v486_v32  ;;  %v655_v46 = vmax.f32 %v653_v24, %v654_v34 }
  0x5b   : > { %v367_v47 = vmax.f32 %v365_v25, %v366_v21  ;;  %v374_v50 = vmax.f32 %v372_v26, %v373_v37  ;;  %v381_v51 = vmax.f32 %v379_v29, %v380_v41  ;;  %v387_v52 = vrot.slane %v386_v38, 1 }
  0x5c   : > { %v392_v54 = vrot.slane %v391_v43, 2  ;;  %v399_v55 = vrot.slane %v398_v44, 2  ;;  %v488_v56 = vrot.slane %v487_v45, 1  ;;  %v656_v57 = vrot.slane %v655_v46, 1 }
  0x5d   : > { %v403_v35 = vsel %vm132_vm2, %v359_v39, -inf  ;;  %v410_v36 = vsel %vm132_vm2, %v360_v40, -inf  ;;  %v388_v48 = vmax.f32 %v386_v38, %v387_v52  ;;  %v534_v12 = vsel %vm436_vm4, %v374_v50, %v367_v47 }
  0x5e   : > { %v393_v49 = vmax.f32 %v391_v43, %v392_v54  ;;  %v400_v59 = vmax.f32 %v398_v44, %v399_v55  ;;  %v404_v60 = vrot.slane %v403_v35, 4  ;;  %v489_v61 = vmax.f32 %v487_v45, %v488_v56 }
  0x5f   : > { %v657_v5 = vmax.f32 %v655_v46, %v656_v57  ;;  %v411_v6 = vrot.slane %v410_v36, 4  ;;  %v535_v14 = vsel %vm438_vm5, %v381_v51, %v534_v12  ;;  %v124_v25 = vsel %vm1480_vm0, %v1024_v2, -1e+30 }
  0x60   : > { %v394_v27 = vrot.slane %v393_v49, 1  ;;  %v401_v13 = vrot.slane %v400_v59, 1  ;;  %v405_v40 = vmax.f32 %v403_v35, %v404_v60  ;;  %v495_v15 = vsel %vm494_vm13, %v489_v61, 0.0 }
  0x61   : > { %v663_v16 = vsel %vm662_vm15, %v657_v5, 0.0  ;;  %v412_v18 = vmax.f32 %v410_v36, %v411_v6  ;;  %v536_v63 = vsel %vm440_vm6, %v388_v48, %v535_v14  ;;  %761 = vrot.lane.b32.xlu0 %v495_v15, %s965_s22  ;;  %v125_v19 = vsel %vm1480_vm0, %v1029_v3, -1e+30 }
  0x62   : > { %v395_v62 = vmax.f32 %v393_v49, %v394_v27  ;;  %v402_v20 = vmax.f32 %v400_v59, %v401_v13  ;;  %v406_v24 = vrot.slane %v405_v40, 2  ;;  %v126_v22 = vsel %vm1480_vm0, %v1034_v4, -1e+30 }
  0x63   : > { %v413_v26 = vrot.slane %v412_v18, 2  ;;  %v133_v29 = vsel %vm132_vm2, %v124_v25, -inf  ;;  %v127_v31 = vsel %vm1480_vm0, %v1041_v7, -1e+30  ;;  %v128_v2 = vsel %vm1480_vm0, %v1046_v8, -1e+30 }
  0x64   : > { %v407_v30 = vmax.f32 %v405_v40, %v406_v24  ;;  %v537_v17 = vsel %vm442_vm8, %v395_v62, %v536_v63  ;;  %v129_v4 = vsel %vm1480_vm0, %v1051_v9, -1e+30  ;;  %v130_v34 = vsel %vm1480_vm0, %v1058_v10, -1e+30 }
  0x65   : > { %v414_v32 = vmax.f32 %v412_v18, %v413_v26  ;;  %v538_v3 = vsel %vm444_vm9, %v402_v20, %v537_v17  ;;  %789 = vrot.lane.b32.xlu0 %v663_v16, %s965_s22  ;;  %v131_v7 = vsel %vm1480_vm0, %v1063_v11, -1e+30  ;;  %v134_v37 = vrot.slane %v133_v29, 4 }
  0x66   : > { %v408_v21 = vrot.slane %v407_v30, 1  ;;  %v140_v8 = vsel %vm132_vm2, %v125_v19, -inf  ;;  %v147_v43 = vsel %vm132_vm2, %v126_v22, -inf  ;;  %v154_v44 = vsel %vm132_vm2, %v127_v31, -inf }
  0x67   : > { %v415_v41 = vrot.slane %v414_v32, 1  ;;  %v141_v38 = vrot.slane %v140_v8, 4  ;;  %v135_v45 = vmax.f32 %v133_v29, %v134_v37  ;;  %v148_v46 = vrot.slane %v147_v43, 4 }
  0x68   : > { %v409_v9 = vmax.f32 %v407_v30, %v408_v21  ;;  %v155_v47 = vrot.slane %v154_v44, 4  ;;  %v161_v51 = vsel %vm132_vm2, %v128_v2, -inf  ;;  %v168_v52 = vsel %vm132_vm2, %v129_v4, -inf }
  0x69   : > { %v416_v10 = vmax.f32 %v414_v32, %v415_v41  ;;  %v142_v50 = vmax.f32 %v140_v8, %v141_v38  ;;  %v136_v54 = vrot.slane %v135_v45, 2  ;;  %v149_v55 = vmax.f32 %v147_v43, %v148_v46 }
  0x6a   : > { %v539_v11 = vsel %vm446_vm11, %v409_v9, %v538_v3  ;;  %v156_v56 = vmax.f32 %v154_v44, %v155_v47  ;;  %v162_v36 = vrot.slane %v161_v51, 4  ;;  %v169_v48 = vrot.slane %v168_v52, 4 }
  0x6b   : > { %v1524_v57 = vsel %vm448_vm12, %v416_v10, %v539_v11  ;;  %v143_v35 = vrot.slane %v142_v50, 2  ;;  %v137_v60 = vmax.f32 %v135_v45, %v136_v54  ;;  %v150_v61 = vrot.slane %v149_v55, 2 }
  0x6c   : > { %v678_v49 = vsel %vm1340_vm10, %v1524_v57, -1e+30  ;;  %v542_v59 = vsel %vm1158_vm14, %v1524_v57, -1e+30  ;;  %v157_v39 = vrot.slane %v156_v56, 2  ;;  %vm690_vm1 = vcmp.eq.s32.totalorder %v1377_v23, 1 }
  0x6d   : > { %v679_v5 = vsel %vm132_vm2, %v678_v49, -inf  ;;  %v543_v6 = vsel %vm132_vm2, %v542_v59, -inf  ;;  %v144_v12 = vmax.f32 %v142_v50, %v143_v35  ;;  %v138_v40 = vrot.slane %v137_v60, 1 }
  0x6e   : > { %v680_v27 = vrot.slane %v679_v5, 4  ;;  %v544_v13 = vrot.slane %v543_v6, 4  ;;  %v151_v14 = vmax.f32 %v149_v55, %v150_v61  ;;  %v158_v16 = vmax.f32 %v156_v56, %v157_v39 }
  0x6f   : > { %v145_v15 = vrot.slane %v144_v12, 1  ;;  %v163_v18 = vmax.f32 %v161_v51, %v162_v36  ;;  %v170_v63 = vmax.f32 %v168_v52, %v169_v48  ;;  %v139_v24 = vmax.f32 %v137_v60, %v138_v40 }
  0x70   : > { %v681_v62 = vmax.f32 %v679_v5, %v680_v27  ;;  %v545_v20 = vmax.f32 %v543_v6, %v544_v13  ;;  %v152_v25 = vrot.slane %v151_v14, 1  ;;  %v159_v19 = vrot.slane %v158_v16, 1 }
  0x71   : > { %v146_v26 = vmax.f32 %v144_v12, %v145_v15  ;;  %v164_v22 = vrot.slane %v163_v18, 2  ;;  %v171_v29 = vrot.slane %v170_v63, 2  ;;  %v175_v2 = vsel %vm132_vm2, %v130_v34, -inf }
  0x72   : > { %v682_v30 = vrot.slane %v681_v62, 2  ;;  %v546_v17 = vrot.slane %v545_v20, 2  ;;  %v153_v31 = vmax.f32 %v151_v14, %v152_v25  ;;  %v160_v32 = vmax.f32 %v158_v16, %v159_v19 }
  0x73   : > { %v165_v3 = vmax.f32 %v163_v18, %v164_v22  ;;  %v172_v4 = vmax.f32 %v170_v63, %v171_v29  ;;  %v176_v21 = vrot.slane %v175_v2, 4  ;;  %v182_v41 = vsel %vm132_vm2, %v131_v7, -inf }
  0x74   : > { %v683_v37 = vmax.f32 %v681_v62, %v682_v30  ;;  %v547_v8 = vmax.f32 %v545_v20, %v546_v17  ;;  %v437_v38 = vsel %vm436_vm4, %v146_v26, %v139_v24  ;;  %v183_v45 = vrot.slane %v182_v41, 4 }
  0x75   : > { %v166_v43 = vrot.slane %v165_v3, 1  ;;  %v173_v44 = vrot.slane %v172_v4, 1  ;;  %v177_v9 = vmax.f32 %v175_v2, %v176_v21  ;;  %vm554_vm3 = vcmp.eq.s32.totalorder %v1384_v28, 1 }
  0x76   : > { %v684_v34 = vrot.slane %v683_v37, 1  ;;  %v548_v46 = vrot.slane %v547_v8, 1  ;;  %v439_v7 = vsel %vm438_vm5, %v153_v31, %v437_v38  ;;  %v184_v50 = vmax.f32 %v182_v41, %v183_v45 }
  0x77   : > { %v167_v47 = vmax.f32 %v165_v3, %v166_v43  ;;  %v178_v10 = vrot.slane %v177_v9, 2  ;;  %v696_v51 = vstv %s1164_s4  ;;  %v174_v54 = vmax.f32 %v172_v4, %v173_v44 }
  0x78   : > { %v685_v52 = vmax.f32 %v683_v37, %v684_v34  ;;  %v549_v11 = vmax.f32 %v547_v8, %v548_v46  ;;  %v441_v55 = vsel %vm440_vm6, %v160_v32, %v439_v7  ;;  %v185_v35 = vrot.slane %v184_v50, 2 }
  0x79   : > { %v179_v56 = vmax.f32 %v177_v9, %v178_v10  ;;  %v443_v36 = vsel %vm442_vm8, %v167_v47, %v441_v55  ;;  %v698_v48 = vstv %s1166_s5  ;;  %vm1569_vm4 = vcmp.ge.s32.totalorder %v1016_v1, %v696_v51  ;;  %s921_s5 = scalar_select %p1665_p11, 0, 1 }
  0x7a   : > { %v691_v49 = vsel %vm690_vm1, %v685_v52, 0.0  ;;  %v555_v59 = vsel %vm554_vm3, %v549_v11, 0.0  ;;  %vm699_vm5 = vcmp.lt.s32.totalorder %v1016_v1, %v698_v48  ;;  %v186_v5 = vmax.f32 %v184_v50, %v185_v35 }
  0x7b   : > { %797 = vrot.lane.b32.xlu1 %v691_v49, %s966_s21  ;;  %769 = vrot.lane.b32.xlu0 %v555_v59, %s966_s21  ;;  %v180_v61 = vrot.slane %v179_v56, 1  ;;  %v560_v6 = vstv %s1243_s11  ;;  %v445_v23 = vsel %vm444_vm9, %v174_v54, %v443_v36  ;;  %v562_v28 = vstv %s1247_s12  ;;  %vm1592_vm8 = vmand %vm1569_vm4, %vm699_vm5  ;;  %s906_s11 = scalar_select %p1446_p13, 0, 1 }
  0x7c   : > { %vm561_vm6 = vcmp.ge.s32.totalorder %v1016_v1, %v560_v6  ;;  %v187_v39 = vrot.slane %v186_v5, 1  ;;  %vm563_vm9 = vcmp.lt.s32.totalorder %v1016_v1, %v562_v28  ;;  %v718_v13 = vsel %vm1592_vm8, %v1417_v53, -1e+30  ;;  %s968_s12 = smov 80  }
  0x7d   : > { %v181_v12 = vmax.f32 %v179_v56, %v180_v61  ;;  %v732_v40 = vsel %vm1592_vm8, %v1189_v42, -1e+30  ;;  %vm1606_vm7 = vmand %vm561_vm6, %vm563_vm9  ;;  %v719_v18 = vsel %vm132_vm2, %v718_v13, -inf  ;;  %v1611_v63 = vstv %s918_s27 }
  0x7e   : > { %v188_v14 = vmax.f32 %v186_v5, %v187_v39  ;;  %v720_v62 = vrot.slane %v719_v18, 4  ;;  %v582_v20 = vsel %vm1606_vm7, %v1417_v53, -1e+30  ;;  %v733_v24 = vsel %vm132_vm2, %v732_v40, -inf }
  0x7f   : > { %v447_v15 = vsel %vm446_vm11, %v181_v12, %v445_v23  ;;  %v1630_v26 = vstv %s910_s28  ;;  %v583_v19 = vsel %vm132_vm2, %v582_v20, -inf  ;;  %v734_v22 = vrot.slane %v733_v24, 4 }
  0x80   : > { %v1628_v25 = vsel %vm448_vm12, %v188_v14, %v447_v15  ;;  %v721_v30 = vmax.f32 %v719_v18, %v720_v62  ;;  %v584_v17 = vrot.slane %v583_v19, 4  ;;  %vm716_vm11 = vcmp.eq.s32.totalorder %v1611_v63, 1 }
  0x81   : > { %v703_v53 = vsel %vm1592_vm8, %v1628_v25, -1e+30  ;;  %v567_v29 = vsel %vm1606_vm7, %v1628_v25, -1e+30  ;;  %v735_v32 = vmax.f32 %v733_v24, %v734_v22  ;;  %vm580_vm12 = vcmp.eq.s32.totalorder %v1630_v26, 1 }
  0x82   : > { %v704_v31 = vsel %vm132_vm2, %v703_v53, -inf  ;;  %v568_v2 = vsel %vm132_vm2, %v567_v29, -inf  ;;  %v722_v21 = vrot.slane %v721_v30, 2  ;;  %v585_v37 = vmax.f32 %v583_v19, %v584_v17 }
  0x83   : > { %v705_v3 = vrot.slane %v704_v31, 4  ;;  %v569_v4 = vrot.slane %v568_v2, 4  ;;  %v729_v8 = vstv %s919_s19  ;;  %v736_v41 = vrot.slane %v735_v32, 2 }
  0x84   : > { %v596_v38 = vsel %vm1606_vm7, %v1189_v42, -1e+30  ;;  %v746_v43 = vsel %vm1592_vm8, %v1524_v57, -1e+30  ;;  %v723_v45 = vmax.f32 %v721_v30, %v722_v21  ;;  %v586_v34 = vrot.slane %v585_v37, 2 }
  0x85   : > { %v706_v44 = vmax.f32 %v704_v31, %v705_v3  ;;  %v570_v9 = vmax.f32 %v568_v2, %v569_v4  ;;  %v737_v46 = vmax.f32 %v735_v32, %v736_v41  ;;  %v743_v7 = vstv %s920_s24 }
  0x86   : > { %v597_v47 = vsel %vm132_vm2, %v596_v38, -inf  ;;  %v747_v10 = vsel %vm132_vm2, %v746_v43, -inf  ;;  %v724_v42 = vrot.slane %v723_v45, 1  ;;  %v587_v52 = vmax.f32 %v585_v37, %v586_v34 }
  0x87   : > { %v707_v50 = vrot.slane %v706_v44, 2  ;;  %v571_v51 = vrot.slane %v570_v9, 2  ;;  %v593_v11 = vstv %s911_s17  ;;  %v738_v54 = vrot.slane %v737_v46, 1 }
  0x88   : > { %v598_v55 = vrot.slane %v597_v47, 4  ;;  %v748_v56 = vrot.slane %v747_v10, 4  ;;  %v588_v48 = vrot.slane %v587_v52, 1  ;;  %vm744_vm13 = vcmp.eq.s32.totalorder %v743_v7, 1 }
  0x89   : > { %v708_v35 = vmax.f32 %v706_v44, %v707_v50  ;;  %v572_v36 = vmax.f32 %v570_v9, %v571_v51  ;;  %vm730_vm15 = vcmp.eq.s32.totalorder %v729_v8, 1  ;;  %v739_v49 = vmax.f32 %v737_v46, %v738_v54 }
  0x8a   : > { %v599_v59 = vmax.f32 %v597_v47, %v598_v55  ;;  %v749_v60 = vmax.f32 %v747_v10, %v748_v56  ;;  %v725_v6 = vmax.f32 %v723_v45, %v724_v42  ;;  %v607_v23 = vstv %s912_s16 }
  0x8b   : > { %v709_v61 = vrot.slane %v708_v35, 1  ;;  %v573_v5 = vrot.slane %v572_v36, 1  ;;  %v745_v28 = vsel %vm744_vm13, %v739_v49, 0.0  ;;  %v610_v27 = vsel %vm1606_vm7, %v1524_v57, -1e+30 }
  0x8c   : > { %v600_v12 = vrot.slane %v599_v59, 2  ;;  %v750_v39 = vrot.slane %v749_v60, 2  ;;  %v589_v14 = vmax.f32 %v587_v52, %v588_v48  ;;  %v611_v15 = vsel %vm132_vm2, %v610_v27, -inf }
  0x8d   : > { %v710_v13 = vmax.f32 %v708_v35, %v709_v61  ;;  %v574_v40 = vmax.f32 %v572_v36, %v573_v5  ;;  %vm594_vm0 = vcmp.eq.s32.totalorder %v593_v11, 1  ;;  %v612_v20 = vrot.slane %v611_v15, 4 }
  0x8e   : > { %v601_v18 = vmax.f32 %v599_v59, %v600_v12  ;;  %v751_v62 = vmax.f32 %v749_v60, %v750_v39  ;;  %vm608_vm1 = vcmp.eq.s32.totalorder %v607_v23, 1  ;;  %v451_v24 = vsel %vm1158_vm14, %v1628_v25, -1e+30 }
  0x8f   : > { %v717_v57 = vsel %vm716_vm11, %v710_v13, 0.0  ;;  %v581_v16 = vsel %vm580_vm12, %v574_v40, 0.0  ;;  %v731_v19 = vsel %vm730_vm15, %v725_v6, 0.0  ;;  %v613_v53 = vmax.f32 %v611_v15, %v612_v20 }
  0x90   : > { %801 = vrot.lane.b32.xlu1 %v717_v57, %s967_s9  ;;  %773 = vrot.lane.b32.xlu0 %v581_v16, %s967_s9  ;;  %v602_v22 = vrot.slane %v601_v18, 1  ;;  %v452_v63 = vsel %vm132_vm2, %v451_v24, -inf  ;;  %v595_v26 = vsel %vm594_vm0, %v589_v14, 0.0  ;;  %v752_v29 = vrot.slane %v751_v62, 1 }
  0x91   : > { %v453_v30 = vrot.slane %v452_v63, 4  ;;  %v635_v33 = vsel %vm1340_vm10, %v1628_v25, -1e+30  ;;  %v614_v31 = vrot.slane %v613_v53, 2  ;;  %v757_v2 = vstv %s921_s5 }
  0x92   : > { %v603_v17 = vmax.f32 %v601_v18, %v602_v22  ;;  %v636_v3 = vsel %vm132_vm2, %v635_v33, -inf  ;;  %v621_v37 = vstv %s913_s10  ;;  %v753_v41 = vmax.f32 %v751_v62, %v752_v29 }
  0x93   : > { %v454_v32 = vmax.f32 %v452_v63, %v453_v30  ;;  %v615_v21 = vmax.f32 %v613_v53, %v614_v31  ;;  %v637_v8 = vrot.slane %v636_v3, 4  ;;  %vm758_vm14 = vcmp.eq.s32.totalorder %v757_v2, 1 }
  0x94   : > { %805 = vrot.lane.b32.xlu1 %v731_v19, %s968_s12  ;;  %777 = vrot.lane.b32.xlu0 %v595_v26, %s968_s12  ;;  %v609_v4 = vsel %vm608_vm1, %v603_v17, 0.0  ;;  %vm622_vm10 = vcmp.eq.s32.totalorder %v621_v37, 1  ;;  %v463_v44 = vstv %s906_s11  ;;  %v759_v34 = vsel %vm758_vm14, %v753_v41, 0.0 }
  0x95   : > { %v455_v58 = vrot.slane %v454_v32, 2  ;;  %v616_v25 = vrot.slane %v615_v21, 1  ;;  %v638_v38 = vmax.f32 %v636_v3, %v637_v8  ;;  %vm464_vm3 = vcmp.eq.s32.totalorder %v463_v44, 1 }
  0x96   : > { %v647_v10 = vstv %s914_s3  ;;  %v971_v5 = vmov 1966171168   ;;  %vm817_vm5 = vcmask 261120   ;;  %vm819_vm6 = vcmask 392192  }
  0x97   : > { %v456_v43 = vmax.f32 %v454_v32, %v455_v58  ;;  %v617_v9 = vmax.f32 %v615_v21, %v616_v25  ;;  %v639_v45 = vrot.slane %v638_v38, 2  ;;  %vm648_vm4 = vcmp.eq.s32.totalorder %v647_v10, 1 }
  0x98   : > { %809 = vrot.lane.b32.xlu1 %v745_v28, %s969_s15  ;;  %781 = vrot.lane.b32.xlu0 %v609_v4, %s969_s15  ;;  %v840_v6 = vunpack.c.l.s4 %v971_v5  ;;  %vm821_vm8 = vcmask 523264   ;;  %vm823_vm9 = vcmask 654336   ;;  %vm825_vm7 = vcmask 785408  }
  0x99   : > { %v457_v46 = vrot.slane %v456_v43, 1  ;;  %v623_v7 = vsel %vm622_vm10, %v617_v9, 0.0  ;;  %v640_v47 = vmax.f32 %v638_v38, %v639_v45  ;;  %vm827_vm11 = vcmask 916480  }
  0x9a   : > { %v841_v40 = vunpack.c.0.s8 %v840_v6 }
  0x9b   : > { %v458_v50 = vmax.f32 %v456_v43, %v457_v46  ;;  %v641_v51 = vrot.slane %v640_v47, 1 }
  0x9c   : > { %813 = vrot.lane.b32.xlu1 %v759_v34, %s970_s6  ;;  %785 = vrot.lane.b32.xlu0 %v623_v7, %s970_s6  ;;  %v844_v22 = vsub.s32 %v841_v40, %v1016_v1 }
  0x9d   : > { %v465_v42 = vsel %vm464_vm3, %v458_v50, 0.0  ;;  %v642_v52 = vmax.f32 %v640_v47, %v641_v51 }
  0x9f   : > { %v649_v11 = vsel %vm648_vm4, %v642_v52, 0.0 }
  0xb7   : > { %v766_v54 = vpop.permute.xlu1 %765 }
  0xc7   : > { %v794_v56 = vpop.permute.xlu1 %793 }
  0xd3   : > { %v762_v55 = vpop.permute.xlu0 %761 }
  0xd4   : > { %v816_v23 = vsel %vm132_vm2, %v465_v42, %v762_v55 }
  0xd5   : > { %v818_v39 = vsel %vm817_vm5, %v816_v23, %v766_v54 }
  0xd7   : > { %v790_v35 = vpop.permute.xlu0 %789 }
  0xd8   : > { %v829_v28 = vsel %vm132_vm2, %v649_v11, %v790_v35  ;;  %vm856_vm2 = vcmp.lt.s32.totalorder %v111_v0, 256 }
  0xd9   : > { %v830_v12 = vsel %vm817_vm5, %v829_v28, %v794_v56 }
  0xed   : > { %v798_v36 = vpop.permute.xlu1 %797  ;;  %v770_v48 = vpop.permute.xlu0 %769 }
  0xee   : > { %v831_v14 = vsel %vm819_vm6, %v830_v12, %v798_v36  ;;  %v820_v15 = vsel %vm819_vm6, %v818_v39, %v770_v48 }
 0x102   : > { %v802_v49 = vpop.permute.xlu1 %801  ;;  %v774_v59 = vpop.permute.xlu0 %773 }
 0x103   : > { %v832_v18 = vsel %vm821_vm8, %v831_v14, %v802_v49  ;;  %v822_v62 = vsel %vm821_vm8, %v820_v15, %v774_v59 }
 0x106   : > { %v806_v60 = vpop.permute.xlu1 %805  ;;  %v778_v61 = vpop.permute.xlu0 %777 }
 0x107   : > { %v833_v20 = vsel %vm823_vm9, %v832_v18, %v806_v60  ;;  %v824_v57 = vsel %vm823_vm9, %v822_v62, %v778_v61 }
 0x10a   : > { %v810_v27 = vpop.permute.xlu1 %809  ;;  %v782_v13 = vpop.permute.xlu0 %781 }
 0x10b   : > { %v834_v16 = vsel %vm825_vm7, %v833_v20, %v810_v27  ;;  %v826_v24 = vsel %vm825_vm7, %v824_v57, %v782_v13 }
 0x10e   : > { %v814_v19 = vpop.permute.xlu1 %813  ;;  %v786_v53 = vpop.permute.xlu0 %785 }
 0x10f   : > { %v835_v63 = vsel %vm827_vm11, %v834_v16, %v814_v19  ;;  %v828_v26 = vsel %vm827_vm11, %v826_v24, %v786_v53 }
 0x110   : > { %v838_v29 = vcombine.low %v828_v26, %v835_v63 }
 0x112   : > { %v845_v30 = vrot.slane %v838_v29, %v844_v22 }
 0x114   : > { %v852_v33 = vrot.slane %v845_v30, %v844_v22 }
 0x116   : > { %858 = vst.msk [vmem:[%s101_s13] sm:$0x3] %vm856_vm2, %v852_v33 }
 0x117 PF: > { %s18_s14 = sadd.s32 1, %s961_s14  }
 0x118   : > { %p15_p4 = scmp.ge.s32.totalorder %s18_s14, 10  }
 0x11a   :  { %17 = sbr.rel (!%p15_p4) target bundleno = 16 (0x10), region = 51 }

// kernel: tile.8
= control target key start
LH: loop header
LB: loop body
LE: loop exit
PB: predicated region body
PF: predicated region fallthrough
CT: control target
= control target key end

     0   :  { %s34_s0 = inlined_call_operand.vmem [shape: f32[4], index: 0, kind: input, shape index: {}]   ;;  %s35_s1 = inlined_call_operand.vmem [shape: f32[21,4], index: 1, kind: output, shape index: {}]  }
   0x1   :  { %v4_v0 = vld [vmem:[%s34_s0] ss:$0 sm:$0xff] }
   0x2   :  { %5 = vst [vmem:[%s35_s1] sm:$0xff] %v4_v0  ;;  %10 = vst [vmem:[%s35_s1 + $0x8] sm:$0xff] %v4_v0 }
   0x3   :  { %11 = vst [vmem:[%s35_s1 + $0x10] sm:$0xff] %v4_v0 }

// kernel: generalized_rcnn_forward.7
= control target key start
LH: loop header
LB: loop body
LE: loop exit
PB: predicated region body
PF: predicated region fallthrough
CT: control target
= control target key end

     0   :  { %v1108_v1 = vmov 0.0   ;;  %vm1109_vm0 = vmmov 0   ;;  %vm250_vm1 = vcmask 523264   ;;  %s1455_s1 = inlined_call_operand.vmem [shape: bf16[256,64], index: 1, kind: input, shape index: {}]   ;;  %s1456_s0 = inlined_call_operand.vmem [shape: f32[8,256], index: 0, kind: input, shape index: {}]   ;;  %s1457_s3 = inlined_call_operand.vmem [shape: bf16[64,64], index: 3, kind: input, shape index: {}]   ;;  %s1458_s5 = inlined_call_operand.vmem [shape: bf16[64,1024], index: 5, kind: input, shape index: {}]   ;;  %s1459_s2 = inlined_call_operand.vmem [shape: f32[1,64], index: 2, kind: input, shape index: {}]   ;;  %s1460_s4 = inlined_call_operand.vmem [shape: f32[1,64], index: 4, kind: input, shape index: {}]   ;;  %s1461_s7 = inlined_call_operand.vmem [shape: f32[2,1024], index: 7, kind: input, shape index: {}]   ;;  %s1462_s6 = inlined_call_operand.vmem [shape: f32[1,1024], index: 6, kind: input, shape index: {}]   ;;  %s1463_s8 = inlined_call_operand.vmem [shape: f32[8,768], index: 8, kind: output, shape index: {}]  }
   0x1   :  { %v1060_v0 = vld [vmem:[%s1455_s1 + $0x40] sm:$0xff]   ;;  %1044 = vmatprep.subr.bf16.mxu1 %v1108_v1  ;;  %v1062_v3 = vld [vmem:[%s1455_s1 + $0x48] sm:$0xff]   ;;  %v1064_v5 = vld [vmem:[%s1455_s1 + $0x50] sm:$0xff]   ;;  %1052 = vmatprep.mubr.msk.bf16.mxu1 %vm1109_vm0, %v1108_v1 }
   0x2   :  { %v1061_v2 = vld [vmem:[%s1455_s1] sm:$0xff]   ;;  %1017 = vmatprep.subr.bf16.mxu0 %v1060_v0  ;;  %v1063_v4 = vld [vmem:[%s1455_s1 + $0x8] sm:$0xff]   ;;  %v1065_v6 = vld [vmem:[%s1455_s1 + $0x10] sm:$0xff]  }
   0x3   :  { %1018 = vmatpush3.bf16.msra.mxu0 %v1061_v2  ;;  %v1066_v7 = vld [vmem:[%s1455_s1 + $0x58] sm:$0xff]   ;;  %v1068_v9 = vld [vmem:[%s1455_s1 + $0x60] sm:$0xff]   ;;  %v1070_v11 = vld [vmem:[%s1455_s1 + $0x68] sm:$0xff]  }
   0x4   :  { %1019 = vmatprep.subr.bf16.mxu0 %v1062_v3  ;;  %v1067_v8 = vld [vmem:[%s1455_s1 + $0x18] sm:$0xff]   ;;  %v1069_v10 = vld [vmem:[%s1455_s1 + $0x20] sm:$0xff]   ;;  %v31_v12 = vld [vmem:[%s1456_s0 + $0x8] sm:$0xff] }
   0x5   :  { %v33_v13 = vpack.c.bf16 %v31_v12, %v31_v12  ;;  %v1076_v14 = vld [vmem:[%s1457_s3] sm:$0xff]   ;;  %v1071_v15 = vld [vmem:[%s1455_s1 + $0x28] sm:$0xff]   ;;  %v1072_v16 = vld [vmem:[%s1455_s1 + $0x70] sm:$0xff]  }
   0x6   :  { %1045 = vmatpush3.bf16.msra.mxu1 %v1076_v14  ;;  %v1077_v17 = vld [vmem:[%s1457_s3 + $0x8] sm:$0xff]   ;;  %v1073_v18 = vld [vmem:[%s1455_s1 + $0x30] sm:$0xff]   ;;  %v1074_v19 = vld [vmem:[%s1455_s1 + $0x78] sm:$0xff]  }
   0x7   :  { %1020 = vmatpush3.bf16.msra.mxu0 %v1063_v4  ;;  %201 = vmatprep.mubr.bf16.mxu0 %v33_v13  ;;  %v1075_v20 = vld [vmem:[%s1455_s1 + $0x38] sm:$0xff]   ;;  %v30_v21 = vld [vmem:[%s1456_s0] sm:$0xff]  ;;  %v1078_v23 = vld [vmem:[%s1457_s3 + $0x10] sm:$0xff]  }
   0x8   :  { %1021 = vmatprep.subr.bf16.mxu0 %v1064_v5  ;;  %1046 = vmatprep.subr.bf16.mxu1 %v1108_v1  ;;  %v32_v22 = vpack.c.bf16 %v30_v21, %v30_v21  ;;  %v1079_v24 = vld [vmem:[%s1457_s3 + $0x18] sm:$0xff]   ;;  %v296_v25 = vld [vmem:[%s1458_s5] sm:$0xff]  ;;  %v297_v27 = vld [vmem:[%s1458_s5 + $0x8] sm:$0xff] }
   0x9   :  { %v300_v26 = vld [vmem:[%s1458_s5 + $0x20] sm:$0xff]  ;;  %v301_v30 = vld [vmem:[%s1458_s5 + $0x28] sm:$0xff]  ;;  %v298_v2 = vld [vmem:[%s1458_s5 + $0x10] sm:$0xff] }
   0xa   :  { %1047 = vmatpush3.bf16.msra.mxu1 %v1077_v17  ;;  %v981_v28 = vcombine.low %v296_v25, %v300_v26  ;;  %v982_v29 = vcombine.high %v296_v25, %v300_v26  ;;  %v983_v31 = vcombine.low %v297_v27, %v301_v30  ;;  %v984_v32 = vcombine.high %v297_v27, %v301_v30  ;;  %v305_v33 = vld [vmem:[%s1458_s5 + $0x48] sm:$0xff]  ;;  %v958_v42 = vld [vmem:[%s1459_s2] ss:$0 sm:$0xff]  ;;  %v302_v3 = vld [vmem:[%s1458_s5 + $0x30] sm:$0xff] }
   0xb   :  { %1022 = vmatpush3.bf16.msra.mxu0 %v1065_v6  ;;  %1048 = vmatprep.subr.bf16.mxu1 %v1108_v1  ;;  %v309_v34 = vld [vmem:[%s1458_s5 + $0x68] sm:$0xff]  ;;  %v304_v48 = vld [vmem:[%s1458_s5 + $0x40] sm:$0xff]  ;;  %v299_v4 = vld [vmem:[%s1458_s5 + $0x18] sm:$0xff]  ;;  %v986_v5 = vcombine.high %v298_v2, %v302_v3 }
   0xc   :  { %1023 = vmatprep.subr.bf16.mxu0 %v1066_v7  ;;  %v992_v35 = vcombine.high %v305_v33, %v309_v34  ;;  %v991_v36 = vcombine.low %v305_v33, %v309_v34  ;;  %v313_v37 = vld [vmem:[%s1458_s5 + $0x88] sm:$0xff]  ;;  %v308_v49 = vld [vmem:[%s1458_s5 + $0x60] sm:$0xff]  ;;  %v303_v6 = vld [vmem:[%s1458_s5 + $0x38] sm:$0xff]  ;;  %v985_v7 = vcombine.low %v298_v2, %v302_v3 }
   0xd   :  { %v317_v38 = vld [vmem:[%s1458_s5 + $0xa8] sm:$0xff]  ;;  %v990_v52 = vcombine.high %v304_v48, %v308_v49  ;;  %v312_v53 = vld [vmem:[%s1458_s5 + $0x80] sm:$0xff]  ;;  %v989_v55 = vcombine.low %v304_v48, %v308_v49  ;;  %v310_v17 = vld [vmem:[%s1458_s5 + $0x70] sm:$0xff] }
   0xe   :  { %1049 = vmatpush3.bf16.msra.mxu1 %v1078_v23  ;;  %v1000_v39 = vcombine.high %v313_v37, %v317_v38  ;;  %v999_v40 = vcombine.low %v313_v37, %v317_v38  ;;  %v316_v54 = vld [vmem:[%s1458_s5 + $0xa0] sm:$0xff]  ;;  %v321_v60 = vld [vmem:[%s1458_s5 + $0xc8] sm:$0xff]  ;;  %v314_v25 = vld [vmem:[%s1458_s5 + $0x90] sm:$0xff] }
   0xf   :  { %1024 = vmatpush3.bf16.msra.mxu0 %v1067_v8  ;;  %1050 = vmatprep.subr.bf16.mxu1 %v1108_v1  ;;  %v998_v56 = vcombine.high %v312_v53, %v316_v54  ;;  %v997_v57 = vcombine.low %v312_v53, %v316_v54  ;;  %v320_v58 = vld [vmem:[%s1458_s5 + $0xc0] sm:$0xff]  ;;  %v325_v62 = vld [vmem:[%s1458_s5 + $0xe8] sm:$0xff]  ;;  %v987_v8 = vcombine.low %v299_v4, %v303_v6  ;;  %v318_v26 = vld [vmem:[%s1458_s5 + $0xb0] sm:$0xff] }
  0x10   :  { %1025 = vmatprep.subr.bf16.mxu0 %v1068_v9  ;;  %v324_v59 = vld [vmem:[%s1458_s5 + $0xe0] sm:$0xff]  ;;  %v1007_v0 = vcombine.low %v321_v60, %v325_v62  ;;  %v1008_v1 = vcombine.high %v321_v60, %v325_v62  ;;  %v988_v9 = vcombine.high %v299_v4, %v303_v6  ;;  %v315_v27 = vld [vmem:[%s1458_s5 + $0x98] sm:$0xff]  ;;  %v322_v33 = vld [vmem:[%s1458_s5 + $0xd0] sm:$0xff]  ;;  %v1001_v37 = vcombine.low %v314_v25, %v318_v26 }
  0x11   :  { %v1006_v61 = vcombine.high %v320_v58, %v324_v59  ;;  %v1005_v63 = vcombine.low %v320_v58, %v324_v59  ;;  %v326_v34 = vld [vmem:[%s1458_s5 + $0xf0] sm:$0xff]  ;;  %v1346_v53 = vld [vmem:[%s1461_s7 + $0x8] sm:$0xff]  ;;  %v1364_v60 = vld [vmem:[%s1462_s6] sm:$0xff] }
  0x12   :  { %1051 = vmatpush3.bf16.msra.mxu1 %v1079_v24 }
  0x13   :  { %1026 = vmatpush3.bf16.msra.mxu0 %v1069_v10  ;;  %533 = vmatprep.subr.bf16.mxu1 %v982_v29  ;;  %v1110_v10 = vmov 0  }
  0x14   :  { %1027 = vmatprep.subr.bf16.mxu0 %v1070_v11  ;;  %1059 = vset.pattern.permute.xlu0 %v1110_v10  ;;  %v975_v11 = vld [vmem:[%s1460_s4] ss:$0 sm:$0xff] }
  0x17   :  { %1028 = vmatpush3.bf16.msra.mxu0 %v1071_v15  ;;  %v306_v15 = vld [vmem:[%s1458_s5 + $0x50] sm:$0xff] }
  0x18   :  { %1029 = vmatprep.subr.bf16.mxu0 %v1072_v16  ;;  %v994_v23 = vcombine.high %v306_v15, %v310_v17  ;;  %v993_v29 = vcombine.low %v306_v15, %v310_v17 }
  0x1b   :  { %1030 = vmatpush3.bf16.msra.mxu0 %v1073_v18  ;;  %v307_v18 = vld [vmem:[%s1458_s5 + $0x58] sm:$0xff] }
  0x1c   :  { %1031 = vmatprep.subr.bf16.mxu0 %v1074_v19  ;;  %v311_v19 = vld [vmem:[%s1458_s5 + $0x78] sm:$0xff] }
  0x1d   :  { %v996_v24 = vcombine.high %v307_v18, %v311_v19  ;;  %v995_v30 = vcombine.low %v307_v18, %v311_v19 }
  0x1f   :  { %1032 = vmatpush3.bf16.msra.mxu0 %v1075_v20 }
  0x20   :  { %574 = vmatprep.subr.bf16.mxu0 %v984_v32 }
  0x22   :  { %202 = vmatmul.mubr.bf16.vlgmr.msra.gmra.mrb[0].mxu0 %v32_v22 }
  0x23   :  { %575 = vmatpush1.bf16.msra.mxu0 %v983_v31  ;;  %606 = vmatprep.mubr.bf16.mxu0 %v1110_v10  ;;  %v1002_v31 = vcombine.high %v314_v25, %v318_v26 }
  0x24   :  { %576 = vmatprep.subr.bf16.mxu0 %v992_v35  ;;  %v323_v35 = vld [vmem:[%s1458_s5 + $0xd8] sm:$0xff] }
  0x27   :  { %577 = vmatpush1.bf16.msra.mxu0 %v991_v36  ;;  %v327_v36 = vld [vmem:[%s1458_s5 + $0xf8] sm:$0xff] }
  0x28   :  { %578 = vmatprep.subr.bf16.mxu0 %v1000_v39  ;;  %v1010_v39 = vcombine.high %v322_v33, %v326_v34 }
  0x2b   :  { %579 = vmatpush1.bf16.msra.mxu0 %v999_v40  ;;  %v1012_v40 = vcombine.high %v323_v35, %v327_v36 }
  0x2c   :  { %580 = vmatprep.subr.bf16.mxu0 %v1008_v1 }
  0x2f   :  { %581 = vmatpush1.bf16.msra.mxu0 %v1007_v0 }
  0x30   :  { %656 = vmatprep.subr.bf16.mxu0 %v988_v9 }
  0xf5   :  { %v1033_v41 = vpop.f32.mrb[0].mxu0 }
  0xf6   :  { %v1034_v43 = vpop.f32.mrb[1].mxu0 }
  0xf7   :  { %v1035_v44 = vadd.f32 %v1034_v43, %v1033_v41  ;;  %v1036_v45 = vpop.f32.mrb[2].mxu0  ;;  %v1009_v41 = vcombine.low %v322_v33, %v326_v34  ;;  %v330_v43 = vlaneseq }
  0xf8   :  { %v1037_v46 = vpop.f32.mrb[3].mxu0 }
  0xf9   :  { %v204_v47 = vadd.f32 %v1035_v44, %v958_v42  ;;  %v1011_v42 = vcombine.low %v323_v35, %v327_v36  ;;  %v331_v44 = vshrl.u32 %v330_v43, 7  ;;  %v697_v46 = vld [vmem:[%s1461_s7] sm:$0xff] }
  0xfb   :  { %v209_v50 = vmax.f32 %v204_v47, 0.0  ;;  %v1329_v45 = vsub.s32 2, %v331_v44  ;;  %v1334_v47 = vsub.s32 3, %v331_v44  ;;  %v1337_v49 = vsub.s32 1, %v331_v44 }
  0xfc   :  { %v1348_v54 = vsub.s32 7, %v331_v44  ;;  %v1357_v58 = vsub.s32 0, %v331_v44  ;;  %v1359_v59 = vsub.s32 4, %v331_v44 }
  0xfd   :  { %v210_v51 = vpack.c.bf16 %v209_v50, %v209_v50  ;;  %v708_v48 = vrot.slane %v697_v46, %v1329_v45  ;;  %v788_v50 = vrot.slane %v697_v46, %v1334_v47  ;;  %v341_v2 = vrot.slane %v1364_v60, %v1329_v45 }
  0xfe   :  { %v712_v62 = vrot.slane %v697_v46, %v1359_v59  ;;  %v333_v1 = vrot.slane %v1364_v60, %v1357_v58  ;;  %v784_v3 = vrot.slane %v697_v46, %v1337_v49  ;;  %v337_v4 = vrot.slane %v1364_v60, %v1337_v49 }
  0xff   :  { %1053 = vmatmul.mubr.msk.bf16.vlgmr.msra.gmra.mrb[0].mxu1 %vm250_vm1, %v210_v51  ;;  %v828_v51 = vrot.slane %v788_v50, %v1337_v49  ;;  %v796_v6 = vrot.slane %v697_v46, %v1348_v54  ;;  %v361_v50 = vrot.slane %v1364_v60, %v1348_v54 }
 0x100   :  { %534 = vmatpush1.bf16.msra.mxu1 %v981_v28  ;;  %565 = vmatprep.mubr.bf16.mxu1 %v1110_v10  ;;  %v319_v28 = vld [vmem:[%s1458_s5 + $0xb8] sm:$0xff]  ;;  %v824_v19 = vrot.slane %v784_v3, %v1337_v49 }
 0x101   :  { %535 = vmatprep.subr.bf16.mxu1 %v990_v52  ;;  %v1004_v32 = vcombine.high %v315_v27, %v319_v28  ;;  %v1003_v38 = vcombine.low %v315_v27, %v319_v28  ;;  %v1341_v52 = vsub.s32 6, %v331_v44 }
 0x103   :  { %v716_v0 = vrot.slane %v697_v46, %v1341_v52 }
 0x104   :  { %536 = vmatpush1.bf16.msra.mxu1 %v989_v55  ;;  %v732_v55 = vrot.slane %v1346_v53, %v1341_v52 }
 0x105   :  { %537 = vmatprep.subr.bf16.mxu1 %v998_v56  ;;  %v812_v56 = vrot.slane %v1346_v53, %v1348_v54 }
 0x108   :  { %538 = vmatpush1.bf16.msra.mxu1 %v997_v57  ;;  %v1355_v57 = vrot.slane %v812_v56, %v1337_v49 }
 0x109   :  { %539 = vmatprep.subr.bf16.mxu1 %v1006_v61  ;;  %v704_v61 = vrot.slane %v697_v46, %v1357_v58 }
 0x10c   :  { %540 = vmatpush1.bf16.msra.mxu1 %v1005_v63  ;;  %v1368_v63 = vsub.s32 5, %v331_v44 }
 0x10d   :  { %615 = vmatprep.subr.bf16.mxu1 %v986_v5  ;;  %v345_v5 = vrot.slane %v1364_v60, %v1334_v47 }
 0x10e   :  { %v792_v9 = vrot.slane %v697_v46, %v1368_v63  ;;  %v808_v44 = vrot.slane %v1346_v53, %v1368_v63  ;;  %v800_v46 = vrot.slane %v1346_v53, %v1337_v49 }
 0x110   :  { %v848_v54 = vrot.slane %v808_v44, %v1337_v49 }
 0x1d2   :  { %v288_v12 = vpop.f32.mrb[0].mxu1 }
 0x1d3   :  { %v289_v13 = vadd.f32 %v975_v11, %v288_v12  ;;  %v1054_v14 = vpop.f32.mrb[1].mxu1  ;;  %v748_v12 = vrot.slane %v708_v48, %v1357_v58  ;;  %v353_v48 = vrot.slane %v1364_v60, %v1368_v63 }
 0x1d4   :  { %v291_v16 = vpop.f32.mrb[2].mxu1  ;;  %v1386_v14 = vand.u32 127, %v330_v43  ;;  %v357_v43 = vrot.slane %v1364_v60, %v1341_v52 }
 0x1d5   :  { %v294_v20 = vmax.f32 %v289_v13, 0.0  ;;  %v1055_v21 = vpop.f32.mrb[3].mxu1  ;;  %v756_v13 = vrot.slane %v716_v0, %v1357_v58  ;;  %v772_v0 = vrot.slane %v732_v55, %v1357_v58 }
 0x1d6   :  { %vm863_vm2 = vcmp.lt.s32.totalorder %v1386_v14, 20  ;;  %vm899_vm3 = vcmp.lt.s32.totalorder %v1386_v14, 21 }
 0x1d7   :  { %v295_v22 = vpack.c.bf16 %v294_v20, %v294_v20 }
 0x1d9   :  { %1013 = vmatmul.mubr.msk.bf16.vlgmr.msra.gmra.mrb[4].mxu1 %vm250_vm1, %v295_v22  ;;  %1014 = vmatmul.mubr.msk.bf16.vlgmr.msra.gmra.mrb[4].mxu0 %vm250_vm1, %v295_v22 }
 0x1da   :  { %616 = vmatpush1.bf16.msra.mxu1 %v985_v7  ;;  %657 = vmatpush1.bf16.msra.mxu0 %v987_v8  ;;  %v744_v7 = vrot.slane %v704_v61, %v1357_v58  ;;  %v752_v8 = vrot.slane %v712_v62, %v1357_v58 }
 0x1db   :  { %617 = vmatprep.subr.bf16.mxu1 %v994_v23  ;;  %658 = vmatprep.subr.bf16.mxu0 %v996_v24  ;;  %v836_v24 = vrot.slane %v796_v6, %v1337_v49 }
 0x1dc   :  { %647 = vmatprep.mubr.bf16.mxu1 %v1110_v10  ;;  %688 = vmatprep.mubr.bf16.mxu0 %v1110_v10 }
 0x1de   :  { %618 = vmatpush1.bf16.msra.mxu1 %v993_v29  ;;  %659 = vmatpush1.bf16.msra.mxu0 %v995_v30  ;;  %v832_v29 = vrot.slane %v792_v9, %v1337_v49 }
 0x1df   :  { %619 = vmatprep.subr.bf16.mxu1 %v1002_v31  ;;  %660 = vmatprep.subr.bf16.mxu0 %v1004_v32 }
 0x1e2   :  { %620 = vmatpush1.bf16.msra.mxu1 %v1001_v37  ;;  %661 = vmatpush1.bf16.msra.mxu0 %v1003_v38 }
 0x1e3   :  { %621 = vmatprep.subr.bf16.mxu1 %v1010_v39  ;;  %662 = vmatprep.subr.bf16.mxu0 %v1012_v40  ;;  %v720_v39 = vrot.slane %v1346_v53, %v1357_v58  ;;  %v728_v40 = vrot.slane %v1346_v53, %v1359_v59 }
 0x1e5   :  { %v768_v56 = vrot.slane %v728_v40, %v1357_v58 }
 0x1e6   :  { %622 = vmatpush1.bf16.msra.mxu1 %v1009_v41  ;;  %663 = vmatpush1.bf16.msra.mxu0 %v1011_v42  ;;  %v724_v41 = vrot.slane %v1346_v53, %v1329_v45  ;;  %v349_v42 = vrot.slane %v1364_v60, %v1359_v59  ;;  %v804_v45 = vrot.slane %v1346_v53, %v1334_v47 }
 0x1e7   :  { %v840_v47 = vrot.slane %v800_v46, %v1337_v49 }
 0x1e8   :  { %v764_v62 = vrot.slane %v724_v41, %v1357_v58 }
 0x1e9   :  { %1015 = vmatmul.mubr.msk.bf16.vlgmr.msra.gmra.mrb[8].mxu1 %vm250_vm1, %v295_v22  ;;  %1016 = vmatmul.mubr.msk.bf16.vlgmr.msra.gmra.mrb[8].mxu0 %vm250_vm1, %v295_v22 }
 0x2ac   :  { %v567_v10 = vpop.f32.mrb[4].mxu1  ;;  %v608_v11 = vpop.f32.mrb[4].mxu0 }
 0x2ad   :  { %v568_v15 = vadd.f32 %v567_v10, %v333_v1  ;;  %v609_v16 = vadd.f32 %v608_v11, %v341_v2  ;;  %v569_v17 = vpop.f32.mrb[5].mxu1  ;;  %v610_v18 = vpop.f32.mrb[5].mxu0 }
 0x2ae   :  { %v570_v20 = vadd.f32 %v569_v17, %v337_v4  ;;  %v611_v21 = vadd.f32 %v610_v18, %v345_v5  ;;  %v571_v22 = vpop.f32.mrb[6].mxu1  ;;  %v612_v23 = vpop.f32.mrb[6].mxu0 }
 0x2af   :  { %v773_v25 = vmul.f32 %v744_v7, %v568_v15  ;;  %v775_v26 = vmul.f32 %v752_v8, %v609_v16  ;;  %v572_v27 = vpop.f32.mrb[7].mxu1  ;;  %v613_v28 = vpop.f32.mrb[7].mxu0  ;;  %v844_v7 = vrot.slane %v804_v45, %v1337_v49 }
 0x2b0   :  { %v774_v30 = vmul.f32 %v748_v12, %v570_v20  ;;  %v776_v31 = vmul.f32 %v756_v13, %v611_v21 }
 0x2b1   :  { %v853_v32 = vadd.f32 %v824_v19, %v773_v25  ;;  %v855_v36 = vadd.f32 %v832_v29, %v775_v26 }
 0x2b2   :  { %v1393_v33 = vadd.f32 %v828_v51, %v774_v30  ;;  %v856_v34 = vadd.f32 %v836_v24, %v776_v31  ;;  %v760_v51 = vrot.slane %v720_v39, %v1357_v58 }
 0x2b3   :  { %v864_v35 = vsel %vm863_vm2, %v853_v32, -1e+30  ;;  %v900_v38 = vsel %vm899_vm3, %v855_v36, -1e+30 }
 0x2b4   :  { %865 = vmax.xlane.f32.xlu0 %v864_v35  ;;  %v917_v37 = vsel %vm899_vm3, %v856_v34, -1e+30  ;;  %v874_v40 = vrot.slane %v1393_v33, 4 }
 0x2b5   :  { %918 = vmax.xlane.f32.xlu1 %v917_v37 }
 0x2b6   :  { %v875_v41 = vmax.f32 %v1393_v33, %v874_v40 }
 0x2b8   :  { %901 = vmax.xlane.f32.xlu0 %v900_v38 }
 0x2bc   :  { %v649_v59 = vpop.f32.mrb[8].mxu1  ;;  %v690_v61 = vpop.f32.mrb[8].mxu0 }
 0x2bd   :  { %v650_v63 = vadd.f32 %v649_v59, %v349_v42  ;;  %v691_v1 = vadd.f32 %v690_v61, %v357_v43  ;;  %v651_v60 = vpop.f32.mrb[9].mxu1  ;;  %v692_v2 = vpop.f32.mrb[9].mxu0  ;;  %v876_v42 = vrot.slane %v875_v41, 2 }
 0x2be   :  { %v652_v3 = vadd.f32 %v651_v60, %v353_v48  ;;  %v693_v4 = vadd.f32 %v692_v2, %v361_v50  ;;  %v653_v5 = vpop.f32.mrb[10].mxu1  ;;  %v694_v6 = vpop.f32.mrb[10].mxu0 }
 0x2bf   :  { %v777_v8 = vmul.f32 %v760_v51, %v650_v63  ;;  %v779_v9 = vmul.f32 %v768_v56, %v691_v1  ;;  %v654_v10 = vpop.f32.mrb[11].mxu1  ;;  %v695_v11 = vpop.f32.mrb[11].mxu0  ;;  %v877_v43 = vmax.f32 %v875_v41, %v876_v42 }
 0x2c0   :  { %v778_v52 = vmul.f32 %v764_v62, %v652_v3  ;;  %v780_v53 = vmul.f32 %v772_v0, %v693_v4 }
 0x2c1   :  { %v859_v55 = vadd.f32 %v848_v54, %v779_v9  ;;  %v857_v58 = vadd.f32 %v840_v47, %v777_v8  ;;  %v878_v44 = vrot.slane %v877_v43, 1 }
 0x2c2   :  { %v860_v12 = vadd.f32 %v1355_v57, %v780_v53  ;;  %v858_v13 = vadd.f32 %v844_v7, %v778_v52 }
 0x2c3   :  { %953 = vst [vmem:[%s1463_s8 + $0x28] sm:$0xff] %v859_v55  ;;  %v929_v15 = vsel %vm899_vm3, %v857_v58, -1e+30  ;;  %v879_v46 = vmax.f32 %v877_v43, %v878_v44 }
 0x2c4   :  { %930 = vmax.xlane.f32.xlu1 %v929_v15  ;;  %v941_v49 = vsel %vm899_vm3, %v858_v13, -1e+30  ;;  %v893_v28 = vsub.f32 0.0, %v860_v12 }
 0x2c5   :  { %942 = vmax.xlane.f32.xlu0 %v941_v49  ;;  %v880_v48 = vsub.f32 %v1393_v33, %v879_v46 }
 0x2c6   :  { %v894_v34 = vmul.f32 1.442695, %v893_v28 }
 0x2c7   :  { %v881_v50 = vmul.f32 1.442695, %v880_v48 }
 0x341   :  { %v866_v16 = vpop.xlane.xlu0 %865 }
 0x342   :  { %v867_v17 = vsub.f32 %v864_v35, %v866_v16  ;;  %v919_v18 = vpop.xlane.xlu1 %918 }
 0x343   :  { %v920_v19 = vsub.f32 %v917_v37, %v919_v18 }
 0x344   :  { %v868_v20 = vmul.f32 1.442695, %v867_v17 }
 0x345   :  { %v921_v21 = vmul.f32 1.442695, %v920_v19  ;;  %v902_v57 = vpop.xlane.xlu0 %901 }
 0x346   :  { %1080 = vpow2.f32 %v868_v20  ;;  %v903_v22 = vsub.f32 %v900_v38, %v902_v57 }
 0x347   :  { %1082 = vpow2.f32 %v921_v21 }
 0x348   :  { %v904_v23 = vmul.f32 1.442695, %v903_v22 }
 0x34a   :  { %1084 = vpow2.f32 %v904_v23 }
 0x350   :  { %v1081_v24 = vpop.eup %1080 }
 0x351   :  { %v931_v25 = vpop.xlane.xlu1 %930  ;;  %870 = vadd.xlane.f32.xlu1 %v1081_v24  ;;  %v1083_v14 = vpop.eup %1082 }
 0x352   :  { %v932_v26 = vsub.f32 %v929_v15, %v931_v25  ;;  %v943_v27 = vpop.xlane.xlu0 %942 }
 0x353   :  { %v944_v29 = vsub.f32 %v941_v49, %v943_v27 }
 0x354   :  { %v1085_v30 = vpop.eup %1084  ;;  %v933_v31 = vmul.f32 1.442695, %v932_v26 }
 0x355   :  { %v945_v32 = vmul.f32 1.442695, %v944_v29  ;;  %923 = vadd.xlane.f32.xlu1 %v1083_v14  ;;  %906 = vadd.xlane.f32.xlu0 %v1085_v30 }
 0x356   :  { %1086 = vpow2.f32 %v933_v31 }
 0x357   :  { %1088 = vpow2.f32 %v945_v32 }
 0x358   :  { %1090 = vpow2.f32 %v894_v34 }
 0x360   :  { %v1087_v35 = vpop.eup %1086 }
 0x361   :  { %v1089_v36 = vpop.eup %1088  ;;  %935 = vadd.xlane.f32.xlu0 %v1087_v35 }
 0x362   :  { %947 = vadd.xlane.f32.xlu1 %v1089_v36  ;;  %v1091_v37 = vpop.eup %1090 }
 0x363   :  { %v896_v38 = vadd.f32 1.0, %v1091_v37 }
 0x365   :  { %1092 = vrcp.f32 %v896_v38 }
 0x366   :  { %1094 = vpow2.f32 %v881_v50 }
 0x36f   :  { %v1093_v39 = vpop.eup %1092 }
 0x370   :  { %v1095_v45 = vpop.eup %1094 }
 0x371   :  { %v883_v51 = vrot.slane %v1095_v45, 4 }
 0x373   :  { %v884_v56 = vadd.f32 %v1095_v45, %v883_v51 }
 0x375   :  { %v885_v59 = vrot.slane %v884_v56, 2 }
 0x377   :  { %912 = vperm.xlu0 %1059, %v1093_v39   ;;  %v886_v61 = vadd.f32 %v885_v59, %v884_v56 }
 0x379   :  { %v887_v62 = vrot.slane %v886_v61, 1 }
 0x37b   :  { %v888_v0 = vadd.f32 %v887_v62, %v886_v61 }
 0x37d   :  { %1096 = vrcp.f32 %v888_v0 }
 0x387   :  { %v1097_v60 = vpop.eup %1096 }
 0x388   :  { %v890_v47 = vmul.f32 %v1097_v60, %v1095_v45 }
 0x3de   :  { %v871_v63 = vpop.xlane.xlu1 %870 }
 0x3df   :  { %1098 = vrcp.f32 %v871_v63 }
 0x3e2   :  { %v924_v1 = vpop.xlane.xlu1 %923  ;;  %v907_v54 = vpop.xlane.xlu0 %906 }
 0x3e3   :  { %1100 = vrcp.f32 %v924_v1 }
 0x3e4   :  { %1102 = vrcp.f32 %v907_v54 }
 0x3e9   :  { %v1099_v2 = vpop.eup %1098 }
 0x3ea   :  { %v873_v33 = vmul.f32 %v1099_v2, %v1081_v24 }
 0x3ec   :  { %v891_v3 = vmul.f32 %v890_v47, %v873_v33 }
 0x3ed   :  { %v1101_v6 = vpop.eup %1100 }
 0x3ee   :  { %892 = vst [vmem:[%s1463_s8] sm:$0xff] %v891_v3  ;;  %v936_v4 = vpop.xlane.xlu0 %935  ;;  %v1103_v7 = vpop.eup %1102  ;;  %v926_v9 = vmul.f32 %v1101_v6, %v1083_v14 }
 0x3ef   :  { %1104 = vrcp.f32 %v936_v4  ;;  %v948_v5 = vpop.xlane.xlu1 %947  ;;  %v909_v8 = vmul.f32 %v1103_v7, %v1085_v30 }
 0x3f0   :  { %1106 = vrcp.f32 %v948_v5 }
 0x3f6   :  { %v913_v10 = vpop.permute.xlu0 %912 }
 0x3f7   :  { %v915_v11 = vmul.f32 %v913_v10, %v909_v8  ;;  %v927_v52 = vmul.f32 %v926_v9, %v913_v10 }
 0x3f9   :  { %v1105_v53 = vpop.eup %1104  ;;  %916 = vst [vmem:[%s1463_s8 + $0x8] sm:$0xff] %v915_v11  ;;  %928 = vst [vmem:[%s1463_s8 + $0x10] sm:$0xff] %v927_v52 }
 0x3fa   :  { %v1107_v55 = vpop.eup %1106  ;;  %v938_v58 = vmul.f32 %v1105_v53, %v1087_v35 }
 0x3fb   :  { %v950_v12 = vmul.f32 %v1107_v55, %v1089_v36 }
 0x3fc   :  { %v939_v13 = vmul.f32 %v938_v58, %v913_v10 }
 0x3fd   :  { %v951_v15 = vmul.f32 %v950_v12, %v913_v10 }
 0x3fe   :  { %940 = vst [vmem:[%s1463_s8 + $0x18] sm:$0xff] %v939_v13 }
 0x3ff   :  { %952 = vst [vmem:[%s1463_s8 + $0x20] sm:$0xff] %v951_v15 }

</bundles_post_ra>
